<compile_context>
chip_gen: v7x
topology: tpu7x:2x2x1
jax: 0.10.0
libtpu: 0.0.40
codegen_flags: <defaults>
</compile_context>

<pallas_src>
import numpy as np
import jax
import jax.numpy as jnp
from jax.experimental import pallas as pl
from jax.experimental.pallas import tpu as pltpu

BN_EPS = 1e-5

# Architecture constants implied by the module (192 = 16 * 2 * 6 => 16x32 input).
_C0, _H0, _W0 = 3, 16, 32          # input
_C1, _H1, _W1 = 8, 14, 30          # after conv1
_C2, _H2, _W2 = 8, 12, 28          # after conv2
_H2P, _W2P = 6, 14                 # after pool1
_C3, _H3, _W3 = 16, 4, 12          # after conv3
_H3P, _W3P = 2, 6                  # after pool2
_F1, _F2, _F3 = 80, 8, 2           # fc widths


# ----------------------------------------------------------------------------
# The single fused Pallas kernel (batch stacked along the sublane axis)
# ----------------------------------------------------------------------------
def _fused_kernel(
    x_ref,                                              # (N*16, 96) channel-minor input
    m1_ref, b1_ref,                                     # conv1 packed weights / bias row
    m2_ref, s2_ref, t2_ref, g2_ref, be2_ref,            # conv2 + bn2 fold/broadcast mats
    mk2_ref, ce1_ref, r1_ref,                           # bn2 valid-row mask, pool1 selectors
    m3_ref, s3_ref, t3_ref, g3_ref, be3_ref,            # conv3 + bn3
    mk3_ref, ce2_ref, r2_ref,                           # bn3 valid-row mask, pool2 selectors
    w1p_ref, gf1_ref, bf1_ref,                          # fc1 (flatten folded in) + bn
    w2_ref, gf2_ref, bf2_ref,                           # fc2 + bn
    w3_ref, gf3_ref, bf3_ref,                           # fc3 + bn
    out_ref,                                            # (N, 2) softmax output
):
    f32 = jnp.float32
    n = out_ref.shape[0]

    def mm(a, b):
        return jnp.dot(a, b, preferred_element_type=f32)

    def conv3x3(a, m_ref):
        # One matmul per kernel row for the WHOLE batch (rows are batch-stacked).
        # NOTE: the kh=1,2 sublane slices may cost a small VMEM relayout; a
        # pltpu.roll-based variant would move that onto the XLU if it shows up
        # in the bundle dump.
        r = a.shape[0] - 2
        return (mm(a[0:r, :], m_ref[0])
                + mm(a[1:r + 1, :], m_ref[1])
                + mm(a[2:r + 2, :], m_ref[2]))

    def bn_relu_conv(y, mask_ref, count, s_ref, t_ref, g_ref, b_ref):
        # Train-mode BN folded to a per-lane scale/shift.  The row mask removes
        # the batch-stride garbage rows from the statistics.  The (w,c)->c fold
        # and the c->(w,c) broadcast are ONE stacked matmul each.
        ym = y * mask_ref[...]
        st = jnp.concatenate(
            [jnp.sum(ym, axis=0, keepdims=True),
             jnp.sum(ym * y, axis=0, keepdims=True)], axis=0)          # (2, W*C)
        cs = mm(st, s_ref[...]) * (1.0 / count)                        # (2, C)
        mean = cs[0:1, :]
        var = jnp.maximum(cs[1:2, :] - mean * mean, 0.0)               # single-pass, biased
        scale = g_ref[...] * jax.lax.rsqrt(var + BN_EPS)
        shift = b_ref[...] - mean * scale
        bc = mm(jnp.concatenate([scale, shift], axis=0), t_ref[...])   # (2, W*C)
        return jnp.maximum(y * bc[0:1, :] + bc[1:2, :], 0.0)

    def pool_cols(y, ce_ref, c):
        # 2x1 column max via a lane shift (no odd selector), then ONE
        # even-window selection matmul.
        k = y.shape[1]
        return mm(jnp.maximum(y[:, : k - c], y[:, c:]), ce_ref[...])

    def pool_rows(y, sel_ref):
        # 1x2 row max via a sublane shift, then ONE selector matmul that also
        # compacts the per-sample row stride (drops garbage rows).
        r = y.shape[0]
        return mm(sel_ref[...], jnp.maximum(y[0:r - 1, :], y[1:r, :]))

    # ---- conv1 + bias + ReLU -------------------------------------------------
    y1 = jnp.maximum(conv3x3(x_ref[...], m1_ref) + b1_ref[...], 0.0)   # (16N-2, 240)

    # ---- conv2 -> bn2 -> relu -> pool1 ----------------------------------------
    y2 = conv3x3(y1, m2_ref)                                           # (16N-4, 224)
    a2 = bn_relu_conv(y2, mk2_ref, float(n * _H2 * _W2),
                      s2_ref, t2_ref, g2_ref, be2_ref)
    p1 = pool_rows(pool_cols(a2, ce1_ref, _C2), r1_ref)                # (6N, 112)

    # ---- conv3 -> bn3 -> relu -> pool2 ----------------------------------------
    y3 = conv3x3(p1, m3_ref)                                           # (6N-2, 192)
    a3 = bn_relu_conv(y3, mk3_ref, float(n * _H3 * _W3),
                      s3_ref, t3_ref, g3_ref, be3_ref)
    pr = pool_rows(pool_cols(a3, ce2_ref, _C3), r2_ref)                # (2N, 96)

    # ---- fc1 (torch NCHW flatten folded into w1p; rows 0/1 already split) -----
    f = mm(pr[0:n, :], w1p_ref[0]) + mm(pr[n:2 * n, :], w1p_ref[1])    # (N, 80)

    # ---- fc1-bn-relu -> fc2-bn-relu -> fc3-bn-softmax --------------------------
    def bn_rows(y, g_ref, b_ref):
        mean = jnp.mean(y, axis=0, keepdims=True)
        var = jnp.maximum(jnp.mean(y * y, axis=0, keepdims=True) - mean * mean, 0.0)
        scale = g_ref[...] * jax.lax.rsqrt(var + BN_EPS)
        return y * scale + (b_ref[...] - mean * scale)

    h = jnp.maximum(bn_rows(f, gf1_ref, bf1_ref), 0.0)                 # (N, 80)
    h = jnp.maximum(bn_rows(mm(h, w2_ref[...]), gf2_ref, bf2_ref), 0.0)  # (N, 8)
    h = bn_rows(mm(h, w3_ref[...]), gf3_ref, bf3_ref)                  # (N, 2)
    h = h - jnp.max(h, axis=1, keepdims=True)
    e = jnp.exp(h)
    out_ref[...] = (e / jnp.sum(e, axis=1, keepdims=True)).astype(out_ref.dtype)


# ----------------------------------------------------------------------------
# One-time (outside jit) repacking of PyTorch-layout parameters
# ----------------------------------------------------------------------------
def _pack_conv_packed(w_oihw, w_in):
    """3x3 'valid' conv weights for a channel-minor packed (rows, W_in*Cin)
    activation tile.  Returns (3, W_in*Cin, W_out*Cout)."""
    c_out, c_in, kh_n, kw_n = w_oihw.shape
    w_out = w_in - kw_n + 1
    w = np.asarray(w_oihw, np.float32)
    m = np.zeros((kh_n, w_in * c_in, w_out * c_out), np.float32)
    for kh in range(kh_n):
        for wo in range(w_out):
            for kw in range(kw_n):
                r0 = (wo + kw) * c_in
                m[kh, r0:r0 + c_in, wo * c_out:(wo + 1) * c_out] = w[:, :, kh, kw].T
    return m


def _chan_mats(w, c):
    """Packed-lane (w, c) -> per-channel fold matrix and its transpose (broadcast)."""
    s = np.zeros((w * c, c), np.float32)
    for wp in range(w):
        for ci in range(c):
            s[wp * c + ci, ci] = 1.0
    return s, np.ascontiguousarray(s.T)


def _colpool_even_sel(w, c):
    """Even-window selector for the 2x1 column max-pool after a lane shift of c.
    Input lanes: (w-1)*c (= max(y[:, :-c], y[:, c:])); output lanes (w//2)*c."""
    m = np.zeros(((w - 1) * c, (w // 2) * c), np.float32)
    for w2 in range(w // 2):
        for ci in range(c):
            m[(2 * w2) * c + ci, w2 * c + ci] = 1.0
    return m


def _batch_row_aux(n):
    """Batch-size-dependent constants (built with numpy under jit since N is
    static): BN valid-row masks + row-pool/compaction selectors."""
    # conv2 output has 16n-4 rows; rows with (r % 16) < 12 are valid.
    mk2 = ((np.arange(16 * n - 4) % 16) < _H2).astype(np.float32).reshape(-1, 1)
    # conv3 output has 6n-2 rows; rows with (r % 6) < 4 are valid.
    mk3 = ((np.arange(6 * n - 2) % 6) < _H3).astype(np.float32).reshape(-1, 1)
    # pool1 row selector: pick row-max at absolute rows b*16 + 2i (i < 6), compact to stride 6.
    r1 = np.zeros((_H2P * n, 16 * n - 5), np.float32)
    for b in range(n):
        for i in range(_H2P):
            r1[b * _H2P + i, b * 16 + 2 * i] = 1.0
    # pool2 row selector: rows [0:n] -> pooled row 0 (abs b*6), rows [n:2n] -> pooled row 1 (abs b*6+2).
    r2 = np.zeros((2 * n, 6 * n - 3), np.float32)
    for b in range(n):
        r2[b, b * 6] = 1.0
        r2[n + b, b * 6 + 2] = 1.0
    return mk2, mk3, r1, r2


def prepare_params(p):
    """Repack PyTorch-shaped params into the constant matrices the fused kernel
    consumes.  Runs once, outside jit.  conv2/conv3/fc1/fc2/fc3 biases are
    intentionally unused: the training-mode BatchNorm mean subtraction cancels
    them exactly."""
    f = np.float32

    def row(v):
        return np.asarray(v, f).reshape(1, -1)

    s2, t2 = _chan_mats(_W2, _C2)
    s3, t3 = _chan_mats(_W3, _C3)

    # fc1 weight: torch flatten order is (c, h, w); our pooled tile rows are h
    # with lanes w*C + c.
    w1p = (np.asarray(p["fc1_w"], f)
           .reshape(_F1, _C3, _H3P, _W3P)
           .transpose(2, 3, 1, 0)
           .reshape(_H3P, _W3P * _C3, _F1))                             # (2, 96, 80)

    d = dict(
        m1=_pack_conv_packed(p["conv1_w"], _W0),                        # (3, 96, 240)
        b1=np.tile(np.asarray(p["conv1_b"], f), _W1).reshape(1, _W1 * _C1),
        m2=_pack_conv_packed(p["conv2_w"], _W1),                        # (3, 240, 224)
        s2=s2, t2=t2, g2=row(p["bn2_g"]), be2=row(p["bn2_b"]),
        ce1=_colpool_even_sel(_W2, _C2),                                # (216, 112)
        m3=_pack_conv_packed(p["conv3_w"], _W2P),                       # (3, 112, 192)
        s3=s3, t3=t3, g3=row(p["bn3_g"]), be3=row(p["bn3_b"]),
        ce2=_colpool_even_sel(_W3, _C3),                                # (176, 96)
        w1p=w1p, gf1=row(p["bn_fc1_g"]), bf1=row(p["bn_fc1_b"]),
        w2=np.ascontiguousarray(np.asarray(p["fc2_w"], f).T),           # (80, 8)
        gf2=row(p["bn_fc2_g"]), bf2=row(p["bn_fc2_b"]),
        w3=np.ascontiguousarray(np.asarray(p["fc3_w"], f).T),           # (8, 2)
        gf3=row(p["bn_fc3_g"]), bf3=row(p["bn_fc3_b"]),
    )
    # TODO(synk): on v5e, storing m1/m2/m3/w1p as bf16 would halve weight DMA.
    return {k: jnp.asarray(v) for k, v in d.items()}


# ----------------------------------------------------------------------------
# Forward = a single fused pallas_call (no grid, everything VMEM resident)
# ----------------------------------------------------------------------------
def forward(x_nchw, prepped):
    assert x_nchw.shape[1:] == (_C0, _H0, _W0)
    n = x_nchw.shape[0]
    # Channel-minor repack (N,C,H,W) -> (N*H, W*C): pure layout plumbing (~12 KiB).
    x = (x_nchw.astype(jnp.float32)
         .transpose(0, 2, 3, 1)
         .reshape(n * _H0, _W0 * _C0))
    mk2, mk3, r1, r2 = _batch_row_aux(n)
    p = prepped
    args = (x,
            p["m1"], p["b1"],
            p["m2"], p["s2"], p["t2"], p["g2"], p["be2"],
            jnp.asarray(mk2), p["ce1"], jnp.asarray(r1),
            p["m3"], p["s3"], p["t3"], p["g3"], p["be3"],
            jnp.asarray(mk3), p["ce2"], jnp.asarray(r2),
            p["w1p"], p["gf1"], p["bf1"],
            p["w2"], p["gf2"], p["bf2"],
            p["w3"], p["gf3"], p["bf3"])

    cost = pl.CostEstimate(flops=9_000_000 * n,
                           transcendentals=2 * n + 8,
                           bytes_accessed=700_000 + 13_000 * n)

    # TODO(synk): for large batches on v7x, add a batch grid with
    # dimension_semantics=("parallel",) to use both TensorCores; kept grid-less
    # here because on v5e/v6e (1 TC) a grid is a serial loop adding overhead.
    return pl.pallas_call(
        _fused_kernel,
        out_shape=jax.ShapeDtypeStruct((n, _F3), jnp.float32),
        in_specs=[pl.BlockSpec(memory_space=pltpu.MemorySpace.VMEM)
                  for _ in args],
        out_specs=pl.BlockSpec(memory_space=pltpu.MemorySpace.VMEM),
        cost_estimate=cost,
    )(*args)


# ----------------------------------------------------------------------------
# Plain-JAX reference (mirrors the PyTorch module exactly) for self-check
# ----------------------------------------------------------------------------
def reference_forward(x, p):
    def conv(x, w, b):
        y = jax.lax.conv_general_dilated(
            x, w, (1, 1), "VALID", dimension_numbers=("NCHW", "OIHW", "NCHW"))
        return y + b.reshape(1, -1, 1, 1)

    def bn2d(x, g, b):
        m = jnp.mean(x, axis=(0, 2, 3), keepdims=True)
        v = jnp.mean((x - m) ** 2, axis=(0, 2, 3), keepdims=True)
        return ((x - m) * jax.lax.rsqrt(v + BN_EPS) * g.reshape(1, -1, 1, 1)
                + b.reshape(1, -1, 1, 1))

    def bn1d(x, g, b):
        m = jnp.mean(x, axis=0, keepdims=True)
        v = jnp.mean((x - m) ** 2, axis=0, keepdims=True)
        return (x - m) * jax.lax.rsqrt(v + BN_EPS) * g + b

    def pool(x):
        return jax.lax.reduce_window(x, -jnp.inf, jax.lax.max,
                                     (1, 1, 2, 2), (1, 1, 2, 2), "VALID")

    x = jax.nn.relu(conv(x, p["conv1_w"], p["conv1_b"]))
    x = jax.nn.relu(bn2d(conv(x, p["conv2_w"], p["conv2_b"]), p["bn2_g"], p["bn2_b"]))
    x = pool(x)
    x = jax.nn.relu(bn2d(conv(x, p["conv3_w"], p["conv3_b"]), p["bn3_g"], p["bn3_b"]))
    x = pool(x)
    x = x.reshape(x.shape[0], -1)
    x = jax.nn.relu(bn1d(x @ p["fc1_w"].T + p["fc1_b"], p["bn_fc1_g"], p["bn_fc1_b"]))
    x = jax.nn.relu(bn1d(x @ p["fc2_w"].T + p["fc2_b"], p["bn_fc2_g"], p["bn_fc2_b"]))
    x = jax.nn.softmax(bn1d(x @ p["fc3_w"].T + p["fc3_b"], p["bn_fc3_g"], p["bn_fc3_b"]),
                       axis=1)
    return x


# ----------------------------------------------------------------------------
# Deterministic parameter init (PyTorch parameter shapes, synthetic values)
# ----------------------------------------------------------------------------
def init_params(key):
    def nrm(k, shape, scale=0.1):
        return scale * jax.random.normal(k, shape, dtype=jnp.float32)

    ks = jax.random.split(key, 22)
    p = {}
    p["conv1_w"] = nrm(ks[0], (8, 3, 3, 3))
    p["conv1_b"] = nrm(ks[1], (8,))
    p["conv2_w"] = nrm(ks[2], (8, 8, 3, 3))
    p["conv2_b"] = nrm(ks[3], (8,))
    p["bn2_g"] = 1.0 + nrm(ks[4], (8,))
    p["bn2_b"] = nrm(ks[5], (8,))
    p["conv3_w"] = nrm(ks[6], (16, 8, 3, 3))
    p["conv3_b"] = nrm(ks[7], (16,))
    p["bn3_g"] = 1.0 + nrm(ks[8], (16,))
    p["bn3_b"] = nrm(ks[9], (16,))
    p["fc1_w"] = nrm(ks[10], (80, 192))
    p["fc1_b"] = nrm(ks[11], (80,))
    p["bn_fc1_g"] = 1.0 + nrm(ks[12], (80,))
    p["bn_fc1_b"] = nrm(ks[13], (80,))
    p["fc2_w"] = nrm(ks[14], (8, 80))
    p["fc2_b"] = nrm(ks[15], (8,))
    p["bn_fc2_g"] = 1.0 + nrm(ks[16], (8,))
    p["bn_fc2_b"] = nrm(ks[17], (8,))
    p["fc3_w"] = nrm(ks[18], (2, 8))
    p["fc3_b"] = nrm(ks[19], (2,))
    p["bn_fc3_g"] = 1.0 + nrm(ks[20], (2,))
    p["bn_fc3_b"] = nrm(ks[21], (2,))
    return p


if __name__ == "__main__":
    key = jax.random.PRNGKey(0)
    pkey, xkey = jax.random.split(key)
    params = init_params(pkey)
    prepped = prepare_params(params)       # one-time repack, outside jit

    # The conv/pool geometry of the module implies a 16x32 spatial input
    # (16 * 2 * 6 = 192 flattened features): NCHW input (2, 3, 16, 32).
    x = jax.random.normal(xkey, (2, 3, _H0, _W0), dtype=jnp.float32)

    out = jax.jit(forward)(x, prepped)
    out = jax.block_until_ready(out)

    ref = jax.jit(reference_forward)(x, params)
    ref = jax.block_until_ready(ref)

    assert out.shape == (2, 2)
    assert bool(jnp.all(jnp.isfinite(out)))
    # Exact softmax divide: rows sum to 1.
    assert bool(jnp.allclose(jnp.sum(out, axis=1), 1.0, atol=1e-3))
    # Matches the plain-JAX / PyTorch-equivalent reference.
    assert bool(jnp.allclose(out, ref, atol=5e-3, rtol=5e-3))
    print("KERNEL_OK")
</pallas_src>

<mosaic_0001>
module attributes {stable_mosaic.version = 11 : i64} {
  func.func @_fused_kernel(%arg0: memref<32x96xf32, #tpu.memory_space<vmem>>, %arg1: memref<3x96x240xf32, #tpu.memory_space<vmem>>, %arg2: memref<1x240xf32, #tpu.memory_space<vmem>>, %arg3: memref<3x240x224xf32, #tpu.memory_space<vmem>>, %arg4: memref<224x8xf32, #tpu.memory_space<vmem>>, %arg5: memref<8x224xf32, #tpu.memory_space<vmem>>, %arg6: memref<1x8xf32, #tpu.memory_space<vmem>>, %arg7: memref<1x8xf32, #tpu.memory_space<vmem>>, %arg8: memref<28x1xf32, #tpu.memory_space<vmem>>, %arg9: memref<216x112xf32, #tpu.memory_space<vmem>>, %arg10: memref<12x27xf32, #tpu.memory_space<vmem>>, %arg11: memref<3x112x192xf32, #tpu.memory_space<vmem>>, %arg12: memref<192x16xf32, #tpu.memory_space<vmem>>, %arg13: memref<16x192xf32, #tpu.memory_space<vmem>>, %arg14: memref<1x16xf32, #tpu.memory_space<vmem>>, %arg15: memref<1x16xf32, #tpu.memory_space<vmem>>, %arg16: memref<10x1xf32, #tpu.memory_space<vmem>>, %arg17: memref<176x96xf32, #tpu.memory_space<vmem>>, %arg18: memref<4x9xf32, #tpu.memory_space<vmem>>, %arg19: memref<2x96x80xf32, #tpu.memory_space<vmem>>, %arg20: memref<1x80xf32, #tpu.memory_space<vmem>>, %arg21: memref<1x80xf32, #tpu.memory_space<vmem>>, %arg22: memref<80x8xf32, #tpu.memory_space<vmem>>, %arg23: memref<1x8xf32, #tpu.memory_space<vmem>>, %arg24: memref<1x8xf32, #tpu.memory_space<vmem>>, %arg25: memref<8x2xf32, #tpu.memory_space<vmem>>, %arg26: memref<1x2xf32, #tpu.memory_space<vmem>>, %arg27: memref<1x2xf32, #tpu.memory_space<vmem>>, %arg28: memref<2x2xf32, #tpu.memory_space<vmem>>) attributes {dimension_semantics = [], scalar_prefetch = 0 : i64, scratch_operands = 0 : i64, tpu.core_type = #tpu.core_type<tc>} {
    %c0 = arith.constant 0 : index
    %c0_0 = arith.constant 0 : index
    %0 = vector.load %arg0[%c0, %c0_0] : memref<32x96xf32, #tpu.memory_space<vmem>>, vector<32x96xf32>
    %1 = vector.extract_strided_slice %0 {offsets = [0, 0], sizes = [30, 96], strides = [1, 1]} : vector<32x96xf32> to vector<30x96xf32>
    %c0_1 = arith.constant 0 : index
    %c0_2 = arith.constant 0 : index
    %c0_3 = arith.constant 0 : index
    %2 = vector.load %arg1[%c0_1, %c0_2, %c0_3] : memref<3x96x240xf32, #tpu.memory_space<vmem>>, vector<1x96x240xf32>
    %3 = vector.shape_cast %2 : vector<1x96x240xf32> to vector<96x240xf32>
    %cst = arith.constant dense<0.000000e+00> : vector<30x240xf32>
    %4 = tpu.matmul %1, %3, %cst {dimension_numbers = #tpu.dot_dimension_numbers<[1], [0], [0], [1], [0, 0, 1, 1], [], []>} : vector<30x96xf32>, vector<96x240xf32>, vector<30x240xf32> -> vector<30x240xf32>
    %5 = vector.extract_strided_slice %0 {offsets = [1, 0], sizes = [30, 96], strides = [1, 1]} : vector<32x96xf32> to vector<30x96xf32>
    %c1 = arith.constant 1 : index
    %c0_4 = arith.constant 0 : index
    %c0_5 = arith.constant 0 : index
    %6 = vector.load %arg1[%c1, %c0_4, %c0_5] : memref<3x96x240xf32, #tpu.memory_space<vmem>>, vector<1x96x240xf32>
    %7 = vector.shape_cast %6 : vector<1x96x240xf32> to vector<96x240xf32>
    %cst_6 = arith.constant dense<0.000000e+00> : vector<30x240xf32>
    %8 = tpu.matmul %5, %7, %cst_6 {dimension_numbers = #tpu.dot_dimension_numbers<[1], [0], [0], [1], [0, 0, 1, 1], [], []>} : vector<30x96xf32>, vector<96x240xf32>, vector<30x240xf32> -> vector<30x240xf32>
    %9 = arith.addf %4, %8 : vector<30x240xf32>
    %10 = vector.extract_strided_slice %0 {offsets = [2, 0], sizes = [30, 96], strides = [1, 1]} : vector<32x96xf32> to vector<30x96xf32>
    %c2 = arith.constant 2 : index
    %c0_7 = arith.constant 0 : index
    %c0_8 = arith.constant 0 : index
    %11 = vector.load %arg1[%c2, %c0_7, %c0_8] : memref<3x96x240xf32, #tpu.memory_space<vmem>>, vector<1x96x240xf32>
    %12 = vector.shape_cast %11 : vector<1x96x240xf32> to vector<96x240xf32>
    %cst_9 = arith.constant dense<0.000000e+00> : vector<30x240xf32>
    %13 = tpu.matmul %10, %12, %cst_9 {dimension_numbers = #tpu.dot_dimension_numbers<[1], [0], [0], [1], [0, 0, 1, 1], [], []>} : vector<30x96xf32>, vector<96x240xf32>, vector<30x240xf32> -> vector<30x240xf32>
    %14 = arith.addf %9, %13 : vector<30x240xf32>
    %c0_10 = arith.constant 0 : index
    %c0_11 = arith.constant 0 : index
    %15 = vector.load %arg2[%c0_10, %c0_11] : memref<1x240xf32, #tpu.memory_space<vmem>>, vector<1x240xf32>
    %16 = vector.broadcast %15 : vector<1x240xf32> to vector<30x240xf32>
    %17 = arith.addf %14, %16 : vector<30x240xf32>
    %cst_12 = arith.constant 0.000000e+00 : f32
    %18 = vector.broadcast %cst_12 : f32 to vector<30x240xf32>
    %19 = arith.maximumf %17, %18 : vector<30x240xf32>
    %20 = vector.extract_strided_slice %19 {offsets = [0, 0], sizes = [28, 240], strides = [1, 1]} : vector<30x240xf32> to vector<28x240xf32>
    %c0_13 = arith.constant 0 : index
    %c0_14 = arith.constant 0 : index
    %c0_15 = arith.constant 0 : index
    %21 = vector.load %arg3[%c0_13, %c0_14, %c0_15] : memref<3x240x224xf32, #tpu.memory_space<vmem>>, vector<1x240x224xf32>
    %22 = vector.shape_cast %21 : vector<1x240x224xf32> to vector<240x224xf32>
    %cst_16 = arith.constant dense<0.000000e+00> : vector<28x224xf32>
    %23 = tpu.matmul %20, %22, %cst_16 {dimension_numbers = #tpu.dot_dimension_numbers<[1], [0], [0], [1], [0, 0, 1, 1], [], []>} : vector<28x240xf32>, vector<240x224xf32>, vector<28x224xf32> -> vector<28x224xf32>
    %24 = vector.extract_strided_slice %19 {offsets = [1, 0], sizes = [28, 240], strides = [1, 1]} : vector<30x240xf32> to vector<28x240xf32>
    %c1_17 = arith.constant 1 : index
    %c0_18 = arith.constant 0 : index
    %c0_19 = arith.constant 0 : index
    %25 = vector.load %arg3[%c1_17, %c0_18, %c0_19] : memref<3x240x224xf32, #tpu.memory_space<vmem>>, vector<1x240x224xf32>
    %26 = vector.shape_cast %25 : vector<1x240x224xf32> to vector<240x224xf32>
    %cst_20 = arith.constant dense<0.000000e+00> : vector<28x224xf32>
    %27 = tpu.matmul %24, %26, %cst_20 {dimension_numbers = #tpu.dot_dimension_numbers<[1], [0], [0], [1], [0, 0, 1, 1], [], []>} : vector<28x240xf32>, vector<240x224xf32>, vector<28x224xf32> -> vector<28x224xf32>
    %28 = arith.addf %23, %27 : vector<28x224xf32>
    %29 = vector.extract_strided_slice %19 {offsets = [2, 0], sizes = [28, 240], strides = [1, 1]} : vector<30x240xf32> to vector<28x240xf32>
    %c2_21 = arith.constant 2 : index
    %c0_22 = arith.constant 0 : index
    %c0_23 = arith.constant 0 : index
    %30 = vector.load %arg3[%c2_21, %c0_22, %c0_23] : memref<3x240x224xf32, #tpu.memory_space<vmem>>, vector<1x240x224xf32>
    %31 = vector.shape_cast %30 : vector<1x240x224xf32> to vector<240x224xf32>
    %cst_24 = arith.constant dense<0.000000e+00> : vector<28x224xf32>
    %32 = tpu.matmul %29, %31, %cst_24 {dimension_numbers = #tpu.dot_dimension_numbers<[1], [0], [0], [1], [0, 0, 1, 1], [], []>} : vector<28x240xf32>, vector<240x224xf32>, vector<28x224xf32> -> vector<28x224xf32>
    %33 = arith.addf %28, %32 : vector<28x224xf32>
    %c0_25 = arith.constant 0 : index
    %c0_26 = arith.constant 0 : index
    %34 = vector.load %arg8[%c0_25, %c0_26] : memref<28x1xf32, #tpu.memory_space<vmem>>, vector<28x1xf32>
    %35 = vector.broadcast %34 : vector<28x1xf32> to vector<28x224xf32>
    %36 = arith.mulf %33, %35 : vector<28x224xf32>
    %cst_27 = arith.constant dense<0.000000e+00> : vector<224xf32>
    %37 = vector.multi_reduction <add>, %36, %cst_27 [0] : vector<28x224xf32> to vector<224xf32>
    %38 = vector.shape_cast %37 : vector<224xf32> to vector<1x224xf32>
    %39 = arith.mulf %36, %33 : vector<28x224xf32>
    %cst_28 = arith.constant dense<0.000000e+00> : vector<224xf32>
    %40 = vector.multi_reduction <add>, %39, %cst_28 [0] : vector<28x224xf32> to vector<224xf32>
    %41 = vector.shape_cast %40 : vector<224xf32> to vector<1x224xf32>
    %42 = tpu.concatenate %38, %41 in 0 : vector<1x224xf32>, vector<1x224xf32> -> vector<2x224xf32>
    %c0_29 = arith.constant 0 : index
    %c0_30 = arith.constant 0 : index
    %43 = vector.load %arg4[%c0_29, %c0_30] : memref<224x8xf32, #tpu.memory_space<vmem>>, vector<224x8xf32>
    %cst_31 = arith.constant dense<0.000000e+00> : vector<2x8xf32>
    %44 = tpu.matmul %42, %43, %cst_31 {dimension_numbers = #tpu.dot_dimension_numbers<[1], [0], [0], [1], [0, 0, 1, 1], [], []>} : vector<2x224xf32>, vector<224x8xf32>, vector<2x8xf32> -> vector<2x8xf32>
    %cst_32 = arith.constant 0.00148809527 : f32
    %45 = vector.broadcast %cst_32 : f32 to vector<2x8xf32>
    %46 = arith.mulf %44, %45 : vector<2x8xf32>
    %47 = vector.extract_strided_slice %46 {offsets = [0, 0], sizes = [1, 8], strides = [1, 1]} : vector<2x8xf32> to vector<1x8xf32>
    %48 = vector.extract_strided_slice %46 {offsets = [1, 0], sizes = [1, 8], strides = [1, 1]} : vector<2x8xf32> to vector<1x8xf32>
    %49 = arith.mulf %47, %47 : vector<1x8xf32>
    %50 = arith.subf %48, %49 : vector<1x8xf32>
    %cst_33 = arith.constant 0.000000e+00 : f32
    %51 = vector.broadcast %cst_33 : f32 to vector<1x8xf32>
    %52 = arith.maximumf %50, %51 : vector<1x8xf32>
    %c0_34 = arith.constant 0 : index
    %c0_35 = arith.constant 0 : index
    %53 = vector.load %arg6[%c0_34, %c0_35] : memref<1x8xf32, #tpu.memory_space<vmem>>, vector<1x8xf32>
    %cst_36 = arith.constant 9.99999974E-6 : f32
    %54 = vector.broadcast %cst_36 : f32 to vector<1x8xf32>
    %55 = arith.addf %52, %54 : vector<1x8xf32>
    %56 = math.rsqrt %55 : vector<1x8xf32>
    %57 = arith.mulf %53, %56 : vector<1x8xf32>
    %c0_37 = arith.constant 0 : index
    %c0_38 = arith.constant 0 : index
    %58 = vector.load %arg7[%c0_37, %c0_38] : memref<1x8xf32, #tpu.memory_space<vmem>>, vector<1x8xf32>
    %59 = arith.mulf %47, %57 : vector<1x8xf32>
    %60 = arith.subf %58, %59 : vector<1x8xf32>
    %61 = tpu.concatenate %57, %60 in 0 : vector<1x8xf32>, vector<1x8xf32> -> vector<2x8xf32>
    %c0_39 = arith.constant 0 : index
    %c0_40 = arith.constant 0 : index
    %62 = vector.load %arg5[%c0_39, %c0_40] : memref<8x224xf32, #tpu.memory_space<vmem>>, vector<8x224xf32>
    %cst_41 = arith.constant dense<0.000000e+00> : vector<2x224xf32>
    %63 = tpu.matmul %61, %62, %cst_41 {dimension_numbers = #tpu.dot_dimension_numbers<[1], [0], [0], [1], [0, 0, 1, 1], [], []>} : vector<2x8xf32>, vector<8x224xf32>, vector<2x224xf32> -> vector<2x224xf32>
    %64 = vector.extract_strided_slice %63 {offsets = [0, 0], sizes = [1, 224], strides = [1, 1]} : vector<2x224xf32> to vector<1x224xf32>
    %65 = vector.broadcast %64 : vector<1x224xf32> to vector<28x224xf32>
    %66 = arith.mulf %33, %65 : vector<28x224xf32>
    %67 = vector.extract_strided_slice %63 {offsets = [1, 0], sizes = [1, 224], strides = [1, 1]} : vector<2x224xf32> to vector<1x224xf32>
    %68 = vector.broadcast %67 : vector<1x224xf32> to vector<28x224xf32>
    %69 = arith.addf %66, %68 : vector<28x224xf32>
    %cst_42 = arith.constant 0.000000e+00 : f32
    %70 = vector.broadcast %cst_42 : f32 to vector<28x224xf32>
    %71 = arith.maximumf %69, %70 : vector<28x224xf32>
    %72 = vector.extract_strided_slice %71 {offsets = [0, 0], sizes = [28, 216], strides = [1, 1]} : vector<28x224xf32> to vector<28x216xf32>
    %73 = vector.extract_strided_slice %71 {offsets = [0, 8], sizes = [28, 216], strides = [1, 1]} : vector<28x224xf32> to vector<28x216xf32>
    %74 = arith.maximumf %72, %73 : vector<28x216xf32>
    %c0_43 = arith.constant 0 : index
    %c0_44 = arith.constant 0 : index
    %75 = vector.load %arg9[%c0_43, %c0_44] : memref<216x112xf32, #tpu.memory_space<vmem>>, vector<216x112xf32>
    %cst_45 = arith.constant dense<0.000000e+00> : vector<28x112xf32>
    %76 = tpu.matmul %74, %75, %cst_45 {dimension_numbers = #tpu.dot_dimension_numbers<[1], [0], [0], [1], [0, 0, 1, 1], [], []>} : vector<28x216xf32>, vector<216x112xf32>, vector<28x112xf32> -> vector<28x112xf32>
    %c0_46 = arith.constant 0 : index
    %c0_47 = arith.constant 0 : index
    %77 = vector.load %arg10[%c0_46, %c0_47] : memref<12x27xf32, #tpu.memory_space<vmem>>, vector<12x27xf32>
    %78 = vector.extract_strided_slice %76 {offsets = [0, 0], sizes = [27, 112], strides = [1, 1]} : vector<28x112xf32> to vector<27x112xf32>
    %79 = vector.extract_strided_slice %76 {offsets = [1, 0], sizes = [27, 112], strides = [1, 1]} : vector<28x112xf32> to vector<27x112xf32>
    %80 = arith.maximumf %78, %79 : vector<27x112xf32>
    %cst_48 = arith.constant dense<0.000000e+00> : vector<12x112xf32>
    %81 = tpu.matmul %77, %80, %cst_48 {dimension_numbers = #tpu.dot_dimension_numbers<[1], [0], [0], [1], [0, 0, 1, 1], [], []>} : vector<12x27xf32>, vector<27x112xf32>, vector<12x112xf32> -> vector<12x112xf32>
    %82 = vector.extract_strided_slice %81 {offsets = [0, 0], sizes = [10, 112], strides = [1, 1]} : vector<12x112xf32> to vector<10x112xf32>
    %c0_49 = arith.constant 0 : index
    %c0_50 = arith.constant 0 : index
    %c0_51 = arith.constant 0 : index
    %83 = vector.load %arg11[%c0_49, %c0_50, %c0_51] : memref<3x112x192xf32, #tpu.memory_space<vmem>>, vector<1x112x192xf32>
    %84 = vector.shape_cast %83 : vector<1x112x192xf32> to vector<112x192xf32>
    %cst_52 = arith.constant dense<0.000000e+00> : vector<10x192xf32>
    %85 = tpu.matmul %82, %84, %cst_52 {dimension_numbers = #tpu.dot_dimension_numbers<[1], [0], [0], [1], [0, 0, 1, 1], [], []>} : vector<10x112xf32>, vector<112x192xf32>, vector<10x192xf32> -> vector<10x192xf32>
    %86 = vector.extract_strided_slice %81 {offsets = [1, 0], sizes = [10, 112], strides = [1, 1]} : vector<12x112xf32> to vector<10x112xf32>
    %c1_53 = arith.constant 1 : index
    %c0_54 = arith.constant 0 : index
    %c0_55 = arith.constant 0 : index
    %87 = vector.load %arg11[%c1_53, %c0_54, %c0_55] : memref<3x112x192xf32, #tpu.memory_space<vmem>>, vector<1x112x192xf32>
    %88 = vector.shape_cast %87 : vector<1x112x192xf32> to vector<112x192xf32>
    %cst_56 = arith.constant dense<0.000000e+00> : vector<10x192xf32>
    %89 = tpu.matmul %86, %88, %cst_56 {dimension_numbers = #tpu.dot_dimension_numbers<[1], [0], [0], [1], [0, 0, 1, 1], [], []>} : vector<10x112xf32>, vector<112x192xf32>, vector<10x192xf32> -> vector<10x192xf32>
    %90 = arith.addf %85, %89 : vector<10x192xf32>
    %91 = vector.extract_strided_slice %81 {offsets = [2, 0], sizes = [10, 112], strides = [1, 1]} : vector<12x112xf32> to vector<10x112xf32>
    %c2_57 = arith.constant 2 : index
    %c0_58 = arith.constant 0 : index
    %c0_59 = arith.constant 0 : index
    %92 = vector.load %arg11[%c2_57, %c0_58, %c0_59] : memref<3x112x192xf32, #tpu.memory_space<vmem>>, vector<1x112x192xf32>
    %93 = vector.shape_cast %92 : vector<1x112x192xf32> to vector<112x192xf32>
    %cst_60 = arith.constant dense<0.000000e+00> : vector<10x192xf32>
    %94 = tpu.matmul %91, %93, %cst_60 {dimension_numbers = #tpu.dot_dimension_numbers<[1], [0], [0], [1], [0, 0, 1, 1], [], []>} : vector<10x112xf32>, vector<112x192xf32>, vector<10x192xf32> -> vector<10x192xf32>
    %95 = arith.addf %90, %94 : vector<10x192xf32>
    %c0_61 = arith.constant 0 : index
    %c0_62 = arith.constant 0 : index
    %96 = vector.load %arg16[%c0_61, %c0_62] : memref<10x1xf32, #tpu.memory_space<vmem>>, vector<10x1xf32>
    %97 = vector.broadcast %96 : vector<10x1xf32> to vector<10x192xf32>
    %98 = arith.mulf %95, %97 : vector<10x192xf32>
    %cst_63 = arith.constant dense<0.000000e+00> : vector<192xf32>
    %99 = vector.multi_reduction <add>, %98, %cst_63 [0] : vector<10x192xf32> to vector<192xf32>
    %100 = vector.shape_cast %99 : vector<192xf32> to vector<1x192xf32>
    %101 = arith.mulf %98, %95 : vector<10x192xf32>
    %cst_64 = arith.constant dense<0.000000e+00> : vector<192xf32>
    %102 = vector.multi_reduction <add>, %101, %cst_64 [0] : vector<10x192xf32> to vector<192xf32>
    %103 = vector.shape_cast %102 : vector<192xf32> to vector<1x192xf32>
    %104 = tpu.concatenate %100, %103 in 0 : vector<1x192xf32>, vector<1x192xf32> -> vector<2x192xf32>
    %c0_65 = arith.constant 0 : index
    %c0_66 = arith.constant 0 : index
    %105 = vector.load %arg12[%c0_65, %c0_66] : memref<192x16xf32, #tpu.memory_space<vmem>>, vector<192x16xf32>
    %cst_67 = arith.constant dense<0.000000e+00> : vector<2x16xf32>
    %106 = tpu.matmul %104, %105, %cst_67 {dimension_numbers = #tpu.dot_dimension_numbers<[1], [0], [0], [1], [0, 0, 1, 1], [], []>} : vector<2x192xf32>, vector<192x16xf32>, vector<2x16xf32> -> vector<2x16xf32>
    %cst_68 = arith.constant 0.010416667 : f32
    %107 = vector.broadcast %cst_68 : f32 to vector<2x16xf32>
    %108 = arith.mulf %106, %107 : vector<2x16xf32>
    %109 = vector.extract_strided_slice %108 {offsets = [0, 0], sizes = [1, 16], strides = [1, 1]} : vector<2x16xf32> to vector<1x16xf32>
    %110 = vector.extract_strided_slice %108 {offsets = [1, 0], sizes = [1, 16], strides = [1, 1]} : vector<2x16xf32> to vector<1x16xf32>
    %111 = arith.mulf %109, %109 : vector<1x16xf32>
    %112 = arith.subf %110, %111 : vector<1x16xf32>
    %cst_69 = arith.constant 0.000000e+00 : f32
    %113 = vector.broadcast %cst_69 : f32 to vector<1x16xf32>
    %114 = arith.maximumf %112, %113 : vector<1x16xf32>
    %c0_70 = arith.constant 0 : index
    %c0_71 = arith.constant 0 : index
    %115 = vector.load %arg14[%c0_70, %c0_71] : memref<1x16xf32, #tpu.memory_space<vmem>>, vector<1x16xf32>
    %cst_72 = arith.constant 9.99999974E-6 : f32
    %116 = vector.broadcast %cst_72 : f32 to vector<1x16xf32>
    %117 = arith.addf %114, %116 : vector<1x16xf32>
    %118 = math.rsqrt %117 : vector<1x16xf32>
    %119 = arith.mulf %115, %118 : vector<1x16xf32>
    %c0_73 = arith.constant 0 : index
    %c0_74 = arith.constant 0 : index
    %120 = vector.load %arg15[%c0_73, %c0_74] : memref<1x16xf32, #tpu.memory_space<vmem>>, vector<1x16xf32>
    %121 = arith.mulf %109, %119 : vector<1x16xf32>
    %122 = arith.subf %120, %121 : vector<1x16xf32>
    %123 = tpu.concatenate %119, %122 in 0 : vector<1x16xf32>, vector<1x16xf32> -> vector<2x16xf32>
    %c0_75 = arith.constant 0 : index
    %c0_76 = arith.constant 0 : index
    %124 = vector.load %arg13[%c0_75, %c0_76] : memref<16x192xf32, #tpu.memory_space<vmem>>, vector<16x192xf32>
    %cst_77 = arith.constant dense<0.000000e+00> : vector<2x192xf32>
    %125 = tpu.matmul %123, %124, %cst_77 {dimension_numbers = #tpu.dot_dimension_numbers<[1], [0], [0], [1], [0, 0, 1, 1], [], []>} : vector<2x16xf32>, vector<16x192xf32>, vector<2x192xf32> -> vector<2x192xf32>
    %126 = vector.extract_strided_slice %125 {offsets = [0, 0], sizes = [1, 192], strides = [1, 1]} : vector<2x192xf32> to vector<1x192xf32>
    %127 = vector.broadcast %126 : vector<1x192xf32> to vector<10x192xf32>
    %128 = arith.mulf %95, %127 : vector<10x192xf32>
    %129 = vector.extract_strided_slice %125 {offsets = [1, 0], sizes = [1, 192], strides = [1, 1]} : vector<2x192xf32> to vector<1x192xf32>
    %130 = vector.broadcast %129 : vector<1x192xf32> to vector<10x192xf32>
    %131 = arith.addf %128, %130 : vector<10x192xf32>
    %cst_78 = arith.constant 0.000000e+00 : f32
    %132 = vector.broadcast %cst_78 : f32 to vector<10x192xf32>
    %133 = arith.maximumf %131, %132 : vector<10x192xf32>
    %134 = vector.extract_strided_slice %133 {offsets = [0, 0], sizes = [10, 176], strides = [1, 1]} : vector<10x192xf32> to vector<10x176xf32>
    %135 = vector.extract_strided_slice %133 {offsets = [0, 16], sizes = [10, 176], strides = [1, 1]} : vector<10x192xf32> to vector<10x176xf32>
    %136 = arith.maximumf %134, %135 : vector<10x176xf32>
    %c0_79 = arith.constant 0 : index
    %c0_80 = arith.constant 0 : index
    %137 = vector.load %arg17[%c0_79, %c0_80] : memref<176x96xf32, #tpu.memory_space<vmem>>, vector<176x96xf32>
    %cst_81 = arith.constant dense<0.000000e+00> : vector<10x96xf32>
    %138 = tpu.matmul %136, %137, %cst_81 {dimension_numbers = #tpu.dot_dimension_numbers<[1], [0], [0], [1], [0, 0, 1, 1], [], []>} : vector<10x176xf32>, vector<176x96xf32>, vector<10x96xf32> -> vector<10x96xf32>
    %c0_82 = arith.constant 0 : index
    %c0_83 = arith.constant 0 : index
    %139 = vector.load %arg18[%c0_82, %c0_83] : memref<4x9xf32, #tpu.memory_space<vmem>>, vector<4x9xf32>
    %140 = vector.extract_strided_slice %138 {offsets = [0, 0], sizes = [9, 96], strides = [1, 1]} : vector<10x96xf32> to vector<9x96xf32>
    %141 = vector.extract_strided_slice %138 {offsets = [1, 0], sizes = [9, 96], strides = [1, 1]} : vector<10x96xf32> to vector<9x96xf32>
    %142 = arith.maximumf %140, %141 : vector<9x96xf32>
    %cst_84 = arith.constant dense<0.000000e+00> : vector<4x96xf32>
    %143 = tpu.matmul %139, %142, %cst_84 {dimension_numbers = #tpu.dot_dimension_numbers<[1], [0], [0], [1], [0, 0, 1, 1], [], []>} : vector<4x9xf32>, vector<9x96xf32>, vector<4x96xf32> -> vector<4x96xf32>
    %144 = vector.extract_strided_slice %143 {offsets = [0, 0], sizes = [2, 96], strides = [1, 1]} : vector<4x96xf32> to vector<2x96xf32>
    %c0_85 = arith.constant 0 : index
    %c0_86 = arith.constant 0 : index
    %c0_87 = arith.constant 0 : index
    %145 = vector.load %arg19[%c0_85, %c0_86, %c0_87] : memref<2x96x80xf32, #tpu.memory_space<vmem>>, vector<1x96x80xf32>
    %146 = vector.shape_cast %145 : vector<1x96x80xf32> to vector<96x80xf32>
    %cst_88 = arith.constant dense<0.000000e+00> : vector<2x80xf32>
    %147 = tpu.matmul %144, %146, %cst_88 {dimension_numbers = #tpu.dot_dimension_numbers<[1], [0], [0], [1], [0, 0, 1, 1], [], []>} : vector<2x96xf32>, vector<96x80xf32>, vector<2x80xf32> -> vector<2x80xf32>
    %148 = vector.extract_strided_slice %143 {offsets = [2, 0], sizes = [2, 96], strides = [1, 1]} : vector<4x96xf32> to vector<2x96xf32>
    %c1_89 = arith.constant 1 : index
    %c0_90 = arith.constant 0 : index
    %c0_91 = arith.constant 0 : index
    %149 = vector.load %arg19[%c1_89, %c0_90, %c0_91] : memref<2x96x80xf32, #tpu.memory_space<vmem>>, vector<1x96x80xf32>
    %150 = vector.shape_cast %149 : vector<1x96x80xf32> to vector<96x80xf32>
    %cst_92 = arith.constant dense<0.000000e+00> : vector<2x80xf32>
    %151 = tpu.matmul %148, %150, %cst_92 {dimension_numbers = #tpu.dot_dimension_numbers<[1], [0], [0], [1], [0, 0, 1, 1], [], []>} : vector<2x96xf32>, vector<96x80xf32>, vector<2x80xf32> -> vector<2x80xf32>
    %152 = arith.addf %147, %151 : vector<2x80xf32>
    %cst_93 = arith.constant dense<0.000000e+00> : vector<80xf32>
    %153 = vector.multi_reduction <add>, %152, %cst_93 [0] : vector<2x80xf32> to vector<80xf32>
    %154 = vector.shape_cast %153 : vector<80xf32> to vector<1x80xf32>
    %cst_94 = arith.constant 2.000000e+00 : f32
    %155 = vector.broadcast %cst_94 : f32 to vector<1x80xf32>
    %156 = arith.divf %154, %155 : vector<1x80xf32>
    %157 = arith.mulf %152, %152 : vector<2x80xf32>
    %cst_95 = arith.constant dense<0.000000e+00> : vector<80xf32>
    %158 = vector.multi_reduction <add>, %157, %cst_95 [0] : vector<2x80xf32> to vector<80xf32>
    %159 = vector.shape_cast %158 : vector<80xf32> to vector<1x80xf32>
    %cst_96 = arith.constant 2.000000e+00 : f32
    %160 = vector.broadcast %cst_96 : f32 to vector<1x80xf32>
    %161 = arith.divf %159, %160 : vector<1x80xf32>
    %162 = arith.mulf %156, %156 : vector<1x80xf32>
    %163 = arith.subf %161, %162 : vector<1x80xf32>
    %cst_97 = arith.constant 0.000000e+00 : f32
    %164 = vector.broadcast %cst_97 : f32 to vector<1x80xf32>
    %165 = arith.maximumf %163, %164 : vector<1x80xf32>
    %c0_98 = arith.constant 0 : index
    %c0_99 = arith.constant 0 : index
    %166 = vector.load %arg20[%c0_98, %c0_99] : memref<1x80xf32, #tpu.memory_space<vmem>>, vector<1x80xf32>
    %cst_100 = arith.constant 9.99999974E-6 : f32
    %167 = vector.broadcast %cst_100 : f32 to vector<1x80xf32>
    %168 = arith.addf %165, %167 : vector<1x80xf32>
    %169 = math.rsqrt %168 : vector<1x80xf32>
    %170 = arith.mulf %166, %169 : vector<1x80xf32>
    %171 = vector.broadcast %170 : vector<1x80xf32> to vector<2x80xf32>
    %172 = arith.mulf %152, %171 : vector<2x80xf32>
    %c0_101 = arith.constant 0 : index
    %c0_102 = arith.constant 0 : index
    %173 = vector.load %arg21[%c0_101, %c0_102] : memref<1x80xf32, #tpu.memory_space<vmem>>, vector<1x80xf32>
    %174 = arith.mulf %156, %170 : vector<1x80xf32>
    %175 = arith.subf %173, %174 : vector<1x80xf32>
    %176 = vector.broadcast %175 : vector<1x80xf32> to vector<2x80xf32>
    %177 = arith.addf %172, %176 : vector<2x80xf32>
    %cst_103 = arith.constant 0.000000e+00 : f32
    %178 = vector.broadcast %cst_103 : f32 to vector<2x80xf32>
    %179 = arith.maximumf %177, %178 : vector<2x80xf32>
    %c0_104 = arith.constant 0 : index
    %c0_105 = arith.constant 0 : index
    %180 = vector.load %arg22[%c0_104, %c0_105] : memref<80x8xf32, #tpu.memory_space<vmem>>, vector<80x8xf32>
    %cst_106 = arith.constant dense<0.000000e+00> : vector<2x8xf32>
    %181 = tpu.matmul %179, %180, %cst_106 {dimension_numbers = #tpu.dot_dimension_numbers<[1], [0], [0], [1], [0, 0, 1, 1], [], []>} : vector<2x80xf32>, vector<80x8xf32>, vector<2x8xf32> -> vector<2x8xf32>
    %cst_107 = arith.constant dense<0.000000e+00> : vector<8xf32>
    %182 = vector.multi_reduction <add>, %181, %cst_107 [0] : vector<2x8xf32> to vector<8xf32>
    %183 = vector.shape_cast %182 : vector<8xf32> to vector<1x8xf32>
    %cst_108 = arith.constant 2.000000e+00 : f32
    %184 = vector.broadcast %cst_108 : f32 to vector<1x8xf32>
    %185 = arith.divf %183, %184 : vector<1x8xf32>
    %186 = arith.mulf %181, %181 : vector<2x8xf32>
    %cst_109 = arith.constant dense<0.000000e+00> : vector<8xf32>
    %187 = vector.multi_reduction <add>, %186, %cst_109 [0] : vector<2x8xf32> to vector<8xf32>
    %188 = vector.shape_cast %187 : vector<8xf32> to vector<1x8xf32>
    %cst_110 = arith.constant 2.000000e+00 : f32
    %189 = vector.broadcast %cst_110 : f32 to vector<1x8xf32>
    %190 = arith.divf %188, %189 : vector<1x8xf32>
    %191 = arith.mulf %185, %185 : vector<1x8xf32>
    %192 = arith.subf %190, %191 : vector<1x8xf32>
    %cst_111 = arith.constant 0.000000e+00 : f32
    %193 = vector.broadcast %cst_111 : f32 to vector<1x8xf32>
    %194 = arith.maximumf %192, %193 : vector<1x8xf32>
    %c0_112 = arith.constant 0 : index
    %c0_113 = arith.constant 0 : index
    %195 = vector.load %arg23[%c0_112, %c0_113] : memref<1x8xf32, #tpu.memory_space<vmem>>, vector<1x8xf32>
    %cst_114 = arith.constant 9.99999974E-6 : f32
    %196 = vector.broadcast %cst_114 : f32 to vector<1x8xf32>
    %197 = arith.addf %194, %196 : vector<1x8xf32>
    %198 = math.rsqrt %197 : vector<1x8xf32>
    %199 = arith.mulf %195, %198 : vector<1x8xf32>
    %200 = vector.broadcast %199 : vector<1x8xf32> to vector<2x8xf32>
    %201 = arith.mulf %181, %200 : vector<2x8xf32>
    %c0_115 = arith.constant 0 : index
    %c0_116 = arith.constant 0 : index
    %202 = vector.load %arg24[%c0_115, %c0_116] : memref<1x8xf32, #tpu.memory_space<vmem>>, vector<1x8xf32>
    %203 = arith.mulf %185, %199 : vector<1x8xf32>
    %204 = arith.subf %202, %203 : vector<1x8xf32>
    %205 = vector.broadcast %204 : vector<1x8xf32> to vector<2x8xf32>
    %206 = arith.addf %201, %205 : vector<2x8xf32>
    %cst_117 = arith.constant 0.000000e+00 : f32
    %207 = vector.broadcast %cst_117 : f32 to vector<2x8xf32>
    %208 = arith.maximumf %206, %207 : vector<2x8xf32>
    %c0_118 = arith.constant 0 : index
    %c0_119 = arith.constant 0 : index
    %209 = vector.load %arg25[%c0_118, %c0_119] : memref<8x2xf32, #tpu.memory_space<vmem>>, vector<8x2xf32>
    %cst_120 = arith.constant dense<0.000000e+00> : vector<2x2xf32>
    %210 = tpu.matmul %208, %209, %cst_120 {dimension_numbers = #tpu.dot_dimension_numbers<[1], [0], [0], [1], [0, 0, 1, 1], [], []>} : vector<2x8xf32>, vector<8x2xf32>, vector<2x2xf32> -> vector<2x2xf32>
    %cst_121 = arith.constant dense<0.000000e+00> : vector<2xf32>
    %211 = vector.multi_reduction <add>, %210, %cst_121 [0] : vector<2x2xf32> to vector<2xf32>
    %212 = vector.shape_cast %211 : vector<2xf32> to vector<1x2xf32>
    %cst_122 = arith.constant 2.000000e+00 : f32
    %213 = vector.broadcast %cst_122 : f32 to vector<1x2xf32>
    %214 = arith.divf %212, %213 : vector<1x2xf32>
    %215 = arith.mulf %210, %210 : vector<2x2xf32>
    %cst_123 = arith.constant dense<0.000000e+00> : vector<2xf32>
    %216 = vector.multi_reduction <add>, %215, %cst_123 [0] : vector<2x2xf32> to vector<2xf32>
    %217 = vector.shape_cast %216 : vector<2xf32> to vector<1x2xf32>
    %cst_124 = arith.constant 2.000000e+00 : f32
    %218 = vector.broadcast %cst_124 : f32 to vector<1x2xf32>
    %219 = arith.divf %217, %218 : vector<1x2xf32>
    %220 = arith.mulf %214, %214 : vector<1x2xf32>
    %221 = arith.subf %219, %220 : vector<1x2xf32>
    %cst_125 = arith.constant 0.000000e+00 : f32
    %222 = vector.broadcast %cst_125 : f32 to vector<1x2xf32>
    %223 = arith.maximumf %221, %222 : vector<1x2xf32>
    %c0_126 = arith.constant 0 : index
    %c0_127 = arith.constant 0 : index
    %224 = vector.load %arg26[%c0_126, %c0_127] : memref<1x2xf32, #tpu.memory_space<vmem>>, vector<1x2xf32>
    %cst_128 = arith.constant 9.99999974E-6 : f32
    %225 = vector.broadcast %cst_128 : f32 to vector<1x2xf32>
    %226 = arith.addf %223, %225 : vector<1x2xf32>
    %227 = math.rsqrt %226 : vector<1x2xf32>
    %228 = arith.mulf %224, %227 : vector<1x2xf32>
    %229 = vector.broadcast %228 : vector<1x2xf32> to vector<2x2xf32>
    %230 = arith.mulf %210, %229 : vector<2x2xf32>
    %c0_129 = arith.constant 0 : index
    %c0_130 = arith.constant 0 : index
    %231 = vector.load %arg27[%c0_129, %c0_130] : memref<1x2xf32, #tpu.memory_space<vmem>>, vector<1x2xf32>
    %232 = arith.mulf %214, %228 : vector<1x2xf32>
    %233 = arith.subf %231, %232 : vector<1x2xf32>
    %234 = vector.broadcast %233 : vector<1x2xf32> to vector<2x2xf32>
    %235 = arith.addf %230, %234 : vector<2x2xf32>
    %cst_131 = arith.constant dense<0xFF800000> : vector<2xf32>
    %236 = vector.multi_reduction <maximumf>, %235, %cst_131 [1] : vector<2x2xf32> to vector<2xf32>
    %237 = vector.shape_cast %236 : vector<2xf32> to vector<2x1xf32>
    %238 = vector.broadcast %237 : vector<2x1xf32> to vector<2x2xf32>
    %239 = arith.subf %235, %238 : vector<2x2xf32>
    %240 = math.exp %239 : vector<2x2xf32>
    %cst_132 = arith.constant dense<0.000000e+00> : vector<2xf32>
    %241 = vector.multi_reduction <add>, %240, %cst_132 [1] : vector<2x2xf32> to vector<2xf32>
    %242 = vector.shape_cast %241 : vector<2xf32> to vector<2x1xf32>
    %243 = vector.broadcast %242 : vector<2x1xf32> to vector<2x2xf32>
    %244 = arith.divf %240, %243 : vector<2x2xf32>
    %c0_133 = arith.constant 0 : index
    %c0_134 = arith.constant 0 : index
    %245 = vector.load %arg28[%c0_133, %c0_134] : memref<2x2xf32, #tpu.memory_space<vmem>>, vector<2x2xf32>
    tpu.vector_store %arg28[%c0_133, %c0_134], %244 {strides = array<i32>} : memref<2x2xf32, #tpu.memory_space<vmem>>, vector<2x2xf32>,
    return
  }
}

</mosaic_0001>

<bundles_post_ra>
// kernel: forward.1
= control target key start
LH: loop header
LB: loop body
LE: loop exit
PB: predicated region body
PF: predicated region fallthrough
CT: control target
= control target key end

     0   :  { %s6124_s0 = inlined_call_operand.vmem [shape: f32[32,96], index: 0, kind: input, shape index: {}]   ;;  %s6125_s1 = inlined_call_operand.vmem [shape: f32[3,96,240], index: 1, kind: input, shape index: {}]   ;;  %s6126_s2 = inlined_call_operand.vmem [shape: f32[1,240], index: 2, kind: input, shape index: {}]   ;;  %s6127_s3 = inlined_call_operand.vmem [shape: f32[3,240,224], index: 3, kind: input, shape index: {}]   ;;  %s6128_s4 = inlined_call_operand.vmem [shape: f32[224,8], index: 4, kind: input, shape index: {}]   ;;  %s6129_s5 = inlined_call_operand.vmem [shape: f32[8,224], index: 5, kind: input, shape index: {}]   ;;  %s6130_s6 = inlined_call_operand.vmem [shape: f32[1,8], index: 6, kind: input, shape index: {}]   ;;  %s6131_s7 = inlined_call_operand.vmem [shape: f32[1,8], index: 7, kind: input, shape index: {}]   ;;  %s6132_s8 = inlined_call_operand.vmem [shape: f32[28,1], index: 8, kind: input, shape index: {}]   ;;  %s6133_s9 = inlined_call_operand.vmem [shape: f32[216,112], index: 9, kind: input, shape index: {}]   ;;  %s6134_s10 = inlined_call_operand.vmem [shape: f32[12,27], index: 10, kind: input, shape index: {}]   ;;  %s6135_s11 = inlined_call_operand.vmem [shape: f32[3,112,192], index: 11, kind: input, shape index: {}]   ;;  %s6136_s12 = inlined_call_operand.vmem [shape: f32[192,16], index: 12, kind: input, shape index: {}]   ;;  %s6137_s13 = inlined_call_operand.vmem [shape: f32[16,192], index: 13, kind: input, shape index: {}]   ;;  %s6138_s14 = inlined_call_operand.vmem [shape: f32[1,16], index: 14, kind: input, shape index: {}]   ;;  %s6139_s15 = inlined_call_operand.vmem [shape: f32[1,16], index: 15, kind: input, shape index: {}]   ;;  %s6140_s16 = inlined_call_operand.vmem [shape: f32[10,1], index: 16, kind: input, shape index: {}]   ;;  %s6141_s17 = inlined_call_operand.vmem [shape: f32[176,96], index: 17, kind: input, shape index: {}]   ;;  %s6142_s18 = inlined_call_operand.vmem [shape: f32[4,9], index: 18, kind: input, shape index: {}]   ;;  %s6143_s19 = inlined_call_operand.vmem [shape: f32[2,96,80], index: 19, kind: input, shape index: {}]   ;;  %s6144_s20 = inlined_call_operand.vmem [shape: f32[1,80], index: 20, kind: input, shape index: {}]   ;;  %s6145_s21 = inlined_call_operand.vmem [shape: f32[1,80], index: 21, kind: input, shape index: {}]   ;;  %s6146_s22 = inlined_call_operand.vmem [shape: f32[80,8], index: 22, kind: input, shape index: {}]   ;;  %s6147_s23 = inlined_call_operand.vmem [shape: f32[1,8], index: 23, kind: input, shape index: {}]   ;;  %s6148_s24 = inlined_call_operand.vmem [shape: f32[1,8], index: 24, kind: input, shape index: {}]   ;;  %s6149_s25 = inlined_call_operand.vmem [shape: f32[8,2], index: 25, kind: input, shape index: {}]   ;;  %s6150_s26 = inlined_call_operand.vmem [shape: f32[1,2], index: 26, kind: input, shape index: {}]   ;;  %s6151_s27 = inlined_call_operand.vmem [shape: f32[1,2], index: 27, kind: input, shape index: {}]   ;;  %s6152_s28 = inlined_call_operand.hbm [shape: f32[2,2], index: 28, kind: output, shape index: {}]  }
   0x1   :  { %6163 = sst [smem:[#allocation5_spill]] %s6124_s0 }
   0x2   :  { %6164 = sst [smem:[#allocation6_spill]] %s6125_s1 }
   0x3   :  { %6165 = sst [smem:[#allocation7_spill]] %s6126_s2 }
   0x4   :  { %6166 = sst [smem:[#allocation8_spill]] %s6127_s3 }
   0x5   :  { %6167 = sst [smem:[#allocation9_spill]] %s6128_s4 }
   0x6   :  { %6168 = sst [smem:[#allocation10_spill]] %s6129_s5 }
   0x7   :  { %6169 = sst [smem:[#allocation11_spill]] %s6130_s6 }
   0x8   :  { %6170 = sst [smem:[#allocation12_spill]] %s6131_s7 }
   0x9   :  { %6171 = sst [smem:[#allocation13_spill]] %s6132_s8 }
   0xa   :  { %6172 = sst [smem:[#allocation14_spill]] %s6133_s9 }
   0xb   :  { %6173 = sst [smem:[#allocation15_spill]] %s6134_s10 }
   0xc   :  { %6174 = sst [smem:[#allocation16_spill]] %s6135_s11 }
   0xd   :  { %6175 = sst [smem:[#allocation17_spill]] %s6136_s12 }
   0xe   :  { %s6176_s9 = sld [smem:[#allocation6_spill]]  ;;  %v4084_v7 = vmov 0.0   ;;  %s6177_s29 = sld [smem:[#allocation5_spill]]  ;;  %vm147_vm0 = vcmask 1046528   ;;  %vm155_vm1 = vcmask 785408  }
   0xf   :  { %228 = vmatprep.mubr.f32.mxu0 %v4084_v7  ;;  %s6178_s12 = sld [smem:[#allocation8_spill]] }
  0x14   :  { %v3006_v0 = vld [vmem:[%s6176_s9 + $0xc8] sm:$0xff]  ;;  %v3008_v1 = vld [vmem:[%s6176_s9 + $0xd8] sm:$0xff]  ;;  %v3005_v2 = vld [vmem:[%s6176_s9 + $0xc0] sm:$0xff] }
  0x15   :  { %v3438_v3 = vpack.c.bf16 %v3008_v1, %v3006_v0  ;;  %v3007_v4 = vld [vmem:[%s6176_s9 + $0xd0] sm:$0xff]  ;;  %v3010_v5 = vld [vmem:[%s6176_s9 + $0xe8] sm:$0xff]  ;;  %v3012_v6 = vld [vmem:[%s6176_s9 + $0xf8] sm:$0xff] }
  0x16   :  { %v3440_v8 = vpack.c.bf16 %v3007_v4, %v3005_v2  ;;  %v3442_v9 = vpack.c.bf16 %v3012_v6, %v3010_v5  ;;  %v3009_v10 = vld [vmem:[%s6176_s9 + $0xe0] sm:$0xff]  ;;  %v3011_v11 = vld [vmem:[%s6176_s9 + $0xf0] sm:$0xff]  ;;  %v3014_v12 = vld [vmem:[%s6176_s9 + $0x108] sm:$0xff] }
  0x17   :  { %3439 = vmatprep.subr.bf16.mxu0 %v3438_v3  ;;  %v3016_v13 = vld [vmem:[%s6176_s9 + $0x118] sm:$0xff]  ;;  %v3444_v14 = vpack.c.bf16 %v3011_v11, %v3009_v10  ;;  %v3013_v16 = vld [vmem:[%s6176_s9 + $0x100] sm:$0xff]  ;;  %v3015_v17 = vld [vmem:[%s6176_s9 + $0x110] sm:$0xff] }
  0x18   :  { %3441 = vmatpush1.bf16.msra.mxu0 %v3440_v8  ;;  %v3446_v15 = vpack.c.bf16 %v3016_v13, %v3014_v12  ;;  %v3018_v18 = vld [vmem:[%s6176_s9 + $0x128] sm:$0xff]  ;;  %v3020_v19 = vld [vmem:[%s6176_s9 + $0x138] sm:$0xff]  ;;  %v3448_v20 = vpack.c.bf16 %v3015_v17, %v3013_v16  ;;  %v3017_v22 = vld [vmem:[%s6176_s9 + $0x120] sm:$0xff] }
  0x19   :  { %3443 = vmatprep.subr.bf16.mxu0 %v3442_v9  ;;  %v3450_v21 = vpack.c.bf16 %v3020_v19, %v3018_v18  ;;  %v3019_v23 = vld [vmem:[%s6176_s9 + $0x130] sm:$0xff]  ;;  %v3022_v24 = vld [vmem:[%s6176_s9 + $0x148] sm:$0xff]  ;;  %v3024_v25 = vld [vmem:[%s6176_s9 + $0x158] sm:$0xff] }
  0x1a   :  { %v3452_v26 = vpack.c.bf16 %v3019_v23, %v3017_v22  ;;  %v3454_v27 = vpack.c.bf16 %v3024_v25, %v3022_v24  ;;  %v3021_v28 = vld [vmem:[%s6176_s9 + $0x140] sm:$0xff]  ;;  %v3023_v29 = vld [vmem:[%s6176_s9 + $0x150] sm:$0xff]  ;;  %v3026_v30 = vld [vmem:[%s6176_s9 + $0x168] sm:$0xff] }
  0x1b   :  { %v3028_v31 = vld [vmem:[%s6176_s9 + $0x178] sm:$0xff]  ;;  %v3456_v32 = vpack.c.bf16 %v3023_v29, %v3021_v28  ;;  %v3025_v33 = vld [vmem:[%s6176_s9 + $0x160] sm:$0xff]  ;;  %v3027_v35 = vld [vmem:[%s6176_s9 + $0x170] sm:$0xff] }
  0x1c   :  { %3445 = vmatpush1.bf16.msra.mxu0 %v3444_v14  ;;  %v3458_v34 = vpack.c.bf16 %v3028_v31, %v3026_v30  ;;  %v4314_v36 = vld [vmem:[%s6177_s29] sm:$0xff]  ;;  %v4319_v37 = vld [vmem:[%s6177_s29 + $0x8] sm:$0xff]  ;;  %v97_v39 = vld [vmem:[%s6176_s9 + $0x18] sm:$0xff]  ;;  %v3460_v40 = vpack.c.bf16 %v3027_v35, %v3025_v33 }
  0x1d   :  { %3447 = vmatprep.subr.bf16.mxu0 %v3446_v15  ;;  %v95_v38 = vld [vmem:[%s6176_s9 + $0x8] sm:$0xff]  ;;  %v148_v41 = vrot.slane %v4314_v36, 1  ;;  %v149_v42 = vrot.slane %v4319_v37, 1  ;;  %v94_v44 = vld [vmem:[%s6176_s9] sm:$0xff]  ;;  %v96_v45 = vld [vmem:[%s6176_s9 + $0x10] sm:$0xff] }
  0x1e   :  { %v3462_v43 = vpack.c.bf16 %v97_v39, %v95_v38  ;;  %v4338_v46 = vld [vmem:[%s6177_s29 + $0x10] sm:$0xff]  ;;  %v99_v47 = vld [vmem:[%s6176_s9 + $0x28] sm:$0xff]  ;;  %v101_v48 = vld [vmem:[%s6176_s9 + $0x38] sm:$0xff]  ;;  %v3464_v51 = vpack.c.bf16 %v96_v45, %v94_v44 }
  0x1f   :  { %v98_v49 = vld [vmem:[%s6176_s9 + $0x20] sm:$0xff]  ;;  %v150_v50 = vsel %vm147_vm0, %v148_v41, %v149_v42  ;;  %v100_v52 = vld [vmem:[%s6176_s9 + $0x30] sm:$0xff]  ;;  %v103_v53 = vld [vmem:[%s6176_s9 + $0x48] sm:$0xff]  ;;  %v151_v55 = vrot.slane %v4338_v46, 1  ;;  %v3466_v56 = vpack.c.bf16 %v101_v48, %v99_v47 }
  0x20   :  { %3449 = vmatpush1.bf16.msra.mxu0 %v3448_v20  ;;  %v105_v54 = vld [vmem:[%s6176_s9 + $0x58] sm:$0xff]  ;;  %v3066_v58 = vld [vmem:[%s6178_s12 + $0x1e8] sm:$0xff]  ;;  %v3065_v61 = vld [vmem:[%s6178_s12 + $0x1e0] sm:$0xff]  ;;  %v3468_v4 = vpack.c.bf16 %v100_v52, %v98_v49 }
  0x21   :  { %3451 = vmatprep.subr.bf16.mxu0 %v3450_v21  ;;  %v4363_v57 = vld [vmem:[%s6177_s29 + $0x18] sm:$0xff]  ;;  %v3067_v62 = vld [vmem:[%s6178_s12 + $0x1f0] sm:$0xff]  ;;  %v3070_v63 = vld [vmem:[%s6178_s12 + $0x208] sm:$0xff]  ;;  %v152_v5 = vsel %vm147_vm0, %v149_v42, %v151_v55  ;;  %v3470_v11 = vpack.c.bf16 %v105_v54, %v103_v53 }
  0x22   :  { %v3068_v59 = vld [vmem:[%s6178_s12 + $0x1f8] sm:$0xff]  ;;  %v3512_v0 = vpack.c.bf16 %v3067_v62, %v3065_v61  ;;  %v3069_v2 = vld [vmem:[%s6178_s12 + $0x200] sm:$0xff]  ;;  %v3071_v3 = vld [vmem:[%s6178_s12 + $0x210] sm:$0xff]  ;;  %v153_v6 = vrot.slane %v4363_v57, 1 }
  0x23   :  { %v3510_v60 = vpack.c.bf16 %v3068_v59, %v3066_v58  ;;  %v3072_v1 = vld [vmem:[%s6178_s12 + $0x218] sm:$0xff]  ;;  %v3074_v9 = vld [vmem:[%s6178_s12 + $0x228] sm:$0xff]  ;;  %v102_v12 = vld [vmem:[%s6176_s9 + $0x40] sm:$0xff]  ;;  %v3516_v16 = vpack.c.bf16 %v3071_v3, %v3069_v2 }
  0x24   :  { %3453 = vmatpush1.bf16.msra.mxu0 %v3452_v26  ;;  %v3514_v8 = vpack.c.bf16 %v3072_v1, %v3070_v63  ;;  %v3076_v10 = vld [vmem:[%s6178_s12 + $0x238] sm:$0xff]  ;;  %v104_v13 = vld [vmem:[%s6176_s9 + $0x50] sm:$0xff]  ;;  %v107_v14 = vld [vmem:[%s6176_s9 + $0x68] sm:$0xff]  ;;  %v154_v21 = vsel %vm147_vm0, %v151_v55, %v153_v6 }
  0x25   :  { %3455 = vmatprep.subr.bf16.mxu0 %v3454_v27  ;;  %3511 = vmatprep.subr.bf16.mxu1 %v3510_v60  ;;  %v109_v15 = vld [vmem:[%s6176_s9 + $0x78] sm:$0xff]  ;;  %v3518_v17 = vpack.c.bf16 %v3076_v10, %v3074_v9  ;;  %v3073_v18 = vld [vmem:[%s6178_s12 + $0x220] sm:$0xff]  ;;  %v3075_v19 = vld [vmem:[%s6178_s12 + $0x230] sm:$0xff]  ;;  %v3472_v20 = vpack.c.bf16 %v104_v13, %v102_v12 }
  0x26   :  { %3513 = vmatpush1.bf16.msra.mxu1 %v3512_v0  ;;  %v3078_v22 = vld [vmem:[%s6178_s12 + $0x248] sm:$0xff]  ;;  %v3080_v23 = vld [vmem:[%s6178_s12 + $0x258] sm:$0xff]  ;;  %v3474_v24 = vpack.c.bf16 %v109_v15, %v107_v14  ;;  %v106_v25 = vld [vmem:[%s6176_s9 + $0x60] sm:$0xff]  ;;  %v3520_v29 = vpack.c.bf16 %v3075_v19, %v3073_v18 }
  0x27   :  { %3515 = vmatprep.subr.bf16.mxu1 %v3514_v8  ;;  %v108_v26 = vld [vmem:[%s6176_s9 + $0x70] sm:$0xff]  ;;  %v111_v27 = vld [vmem:[%s6176_s9 + $0x88] sm:$0xff]  ;;  %v113_v28 = vld [vmem:[%s6176_s9 + $0x98] sm:$0xff]  ;;  %v3522_v30 = vpack.c.bf16 %v3080_v23, %v3078_v22 }
  0x28   :  { %3457 = vmatpush1.bf16.msra.mxu0 %v3456_v32  ;;  %v3077_v31 = vld [vmem:[%s6178_s12 + $0x240] sm:$0xff]  ;;  %v3079_v32 = vld [vmem:[%s6178_s12 + $0x250] sm:$0xff]  ;;  %v3476_v33 = vpack.c.bf16 %v108_v26, %v106_v25  ;;  %v3084_v35 = vld [vmem:[%s6178_s12 + $0x278] sm:$0xff]  ;;  %v3478_v38 = vpack.c.bf16 %v113_v28, %v111_v27 }
  0x29   :  { %3459 = vmatprep.subr.bf16.mxu0 %v3458_v34  ;;  %v3082_v34 = vld [vmem:[%s6178_s12 + $0x268] sm:$0xff]  ;;  %v110_v39 = vld [vmem:[%s6176_s9 + $0x80] sm:$0xff]  ;;  %v117_v42 = vld [vmem:[%s6176_s9 + $0xb8] sm:$0xff] }
  0x2a   :  { %3517 = vmatpush1.bf16.msra.mxu1 %v3516_v16  ;;  %v115_v41 = vld [vmem:[%s6176_s9 + $0xa8] sm:$0xff]  ;;  %v3526_v44 = vpack.c.bf16 %v3084_v35, %v3082_v34  ;;  %v3081_v45 = vld [vmem:[%s6178_s12 + $0x260] sm:$0xff]  ;;  %v3083_v47 = vld [vmem:[%s6178_s12 + $0x270] sm:$0xff] }
  0x2b   :  { %3519 = vmatprep.subr.bf16.mxu1 %v3518_v17  ;;  %v3086_v49 = vld [vmem:[%s6178_s12 + $0x288] sm:$0xff]  ;;  %v114_v52 = vld [vmem:[%s6176_s9 + $0xa0] sm:$0xff]  ;;  %v116_v53 = vld [vmem:[%s6176_s9 + $0xb0] sm:$0xff] }
  0x2c   :  { %3461 = vmatpush1.bf16.msra.mxu0 %v3460_v40  ;;  %v112_v40 = vld [vmem:[%s6176_s9 + $0x90] sm:$0xff] }
  0x2d   :  { %3463 = vmatprep.subr.bf16.mxu0 %v3462_v43  ;;  %v3524_v43 = vpack.c.bf16 %v3079_v32, %v3077_v31  ;;  %v3480_v48 = vpack.c.bf16 %v112_v40, %v110_v39 }
  0x2e   :  { %3521 = vmatpush1.bf16.msra.mxu1 %v3520_v29 }
  0x2f   :  { %3029 = vmatmul.mubr.msk.f32.vlgmr.msra.gmra.mrb[0].mxu0 %vm155_vm1, %v150_v50  ;;  %3523 = vmatprep.subr.bf16.mxu1 %v3522_v30  ;;  %v3088_v50 = vld [vmem:[%s6178_s12 + $0x298] sm:$0xff] }
  0x30   :  { %3465 = vmatpush1.bf16.msra.mxu0 %v3464_v51  ;;  %234 = vmatprep.mubr.f32.mxu0 %v4084_v7  ;;  %v3482_v51 = vpack.c.bf16 %v117_v42, %v115_v41 }
  0x31   :  { %3467 = vmatprep.subr.bf16.mxu0 %v3466_v56 }
  0x33   :  { %3030 = vmatmul.mubr.msk.f32.gmra.mrb[2].mxu0 %vm155_vm1, %v152_v5 }
  0x34   :  { %3469 = vmatpush1.bf16.msra.mxu0 %v3468_v4  ;;  %240 = vmatprep.mubr.f32.mxu0 %v4084_v7 }
  0x35   :  { %3471 = vmatprep.subr.bf16.mxu0 %v3470_v11 }
  0x37   :  { %3031 = vmatmul.mubr.msk.f32.gmra.mrb[4].mxu0 %vm155_vm1, %v154_v21 }
  0x38   :  { %3473 = vmatpush1.bf16.msra.mxu0 %v3472_v20  ;;  %246 = vmatprep.mubr.f32.mxu0 %v4084_v7 }
  0x39   :  { %3475 = vmatprep.subr.bf16.mxu0 %v3474_v24 }
  0x3b   :  { %3032 = vmatmul.mubr.msk.f32.gmra.mrb[6].mxu0 %vm155_vm1, %v153_v6 }
  0x3c   :  { %3477 = vmatpush1.bf16.msra.mxu0 %v3476_v33  ;;  %325 = vmatprep.mubr.f32.mxu0 %v4084_v7 }
  0x3d   :  { %3479 = vmatprep.subr.bf16.mxu0 %v3478_v38 }
  0x3e   :  { %33 = vsyncpa [#allocation3], 0  ;;  %v3038_v54 = vld [vmem:[%s6176_s9 + $0x188] sm:$0xff]  ;;  %v3040_v55 = vld [vmem:[%s6176_s9 + $0x198] sm:$0xff]  ;;  %3525 = vmatpush1.bf16.msra.mxu1 %v3524_v43  ;;  %v3528_v56 = vpack.c.bf16 %v3083_v47, %v3081_v45  ;;  %v3530_v58 = vpack.c.bf16 %v3088_v50, %v3086_v49  ;;  %v3484_v61 = vpack.c.bf16 %v116_v53, %v114_v52  ;;  %vm375_vm2 = vcmask 1045504   ;;  %s6179_s8 = sld [smem:[#allocation7_spill]] }
  0x3f   :  { %3527 = vmatprep.subr.bf16.mxu1 %v3526_v44  ;;  %v3085_v59 = vld [vmem:[%s6178_s12 + $0x280] sm:$0xff]  ;;  %v3087_v60 = vld [vmem:[%s6178_s12 + $0x290] sm:$0xff]  ;;  %v3090_v62 = vld [vmem:[%s6178_s12 + $0x2a8] sm:$0xff]  ;;  %v3486_v0 = vpack.c.bf16 %v3040_v55, %v3038_v54  ;;  %vm663_vm3 = vcmask 916480   ;;  %s6180_s4 = sld [smem:[#allocation13_spill]]  ;;  %s6181_s5 = sld [smem:[#allocation9_spill]] }
  0x40   :  { %3481 = vmatpush1.bf16.msra.mxu0 %v3480_v48  ;;  %v3092_v63 = vld [vmem:[%s6178_s12 + $0x2b8] sm:$0xff]  ;;  %v3037_v1 = vld [vmem:[%s6176_s9 + $0x180] sm:$0xff]  ;;  %v3039_v2 = vld [vmem:[%s6176_s9 + $0x190] sm:$0xff]  ;;  %v3532_v5 = vpack.c.bf16 %v3087_v60, %v3085_v59  ;;  %vm1076_vm4 = vcmask 1043456   ;;  %vm1090_vm5 = vcmask 781312   ;;  %vm1130_vm6 = vcmask 1040384  }
  0x41   :  { %3483 = vmatprep.subr.bf16.mxu0 %v3482_v51  ;;  %v3042_v3 = vld [vmem:[%s6176_s9 + $0x1a8] sm:$0xff]  ;;  %v3044_v4 = vld [vmem:[%s6176_s9 + $0x1b8] sm:$0xff]  ;;  %v3534_v6 = vpack.c.bf16 %v3092_v63, %v3090_v62  ;;  %v3089_v8 = vld [vmem:[%s6178_s12 + $0x2a0] sm:$0xff]  ;;  %v3488_v10 = vpack.c.bf16 %v3039_v2, %v3037_v1  ;;  %s6184_s0 = sld [smem:[#allocation12_spill]]  ;;  %vm1274_vm7 = vcmask 64512   ;;  %s6185_s7 = sld [smem:[#allocation14_spill]] }
  0x42   :  { %3529 = vmatpush1.bf16.msra.mxu1 %v3528_v56  ;;  %v3091_v9 = vld [vmem:[%s6178_s12 + $0x2b0] sm:$0xff]  ;;  %v3094_v11 = vld [vmem:[%s6178_s12 + $0x2c8] sm:$0xff]  ;;  %v3096_v12 = vld [vmem:[%s6178_s12 + $0x2d8] sm:$0xff]  ;;  %v3490_v13 = vpack.c.bf16 %v3044_v4, %v3042_v3  ;;  %vm1413_vm8 = vcmask 982016   ;;  %vm1461_vm9 = vcmask 719872   ;;  %vm1580_vm10 = vcmask 220160  }
  0x43   :  { %3531 = vmatprep.subr.bf16.mxu1 %v3530_v58  ;;  %v3041_v14 = vld [vmem:[%s6176_s9 + $0x1a0] sm:$0xff]  ;;  %v3043_v15 = vld [vmem:[%s6176_s9 + $0x1b0] sm:$0xff]  ;;  %v3046_v16 = vld [vmem:[%s6176_s9 + $0x1c8] sm:$0xff]  ;;  %v3536_v18 = vpack.c.bf16 %v3091_v9, %v3089_v8  ;;  %v3538_v19 = vpack.c.bf16 %v3096_v12, %v3094_v11  ;;  %v376_v9 = vrot.slane %v4314_v36, 2  ;;  %vm1587_vm11 = vcmask 1042432  }
  0x44   :  { %3485 = vmatpush1.bf16.msra.mxu0 %v3484_v61  ;;  %v3048_v17 = vld [vmem:[%s6176_s9 + $0x1d8] sm:$0xff]  ;;  %v3093_v20 = vld [vmem:[%s6178_s12 + $0x2c0] sm:$0xff]  ;;  %v3095_v21 = vld [vmem:[%s6178_s12 + $0x2d0] sm:$0xff]  ;;  %v3492_v22 = vpack.c.bf16 %v3043_v15, %v3041_v14  ;;  %v379_v14 = vrot.slane %v4338_v46, 2  ;;  %vm4089_vm12 = vmmov 1   ;;  %vm2023_vm14 = vcmask 1041408  }
  0x45   :  { %3487 = vmatprep.subr.bf16.mxu0 %v3486_v0  ;;  %v3098_v23 = vld [vmem:[%s6178_s12 + $0x2e8] sm:$0xff]  ;;  %v3100_v24 = vld [vmem:[%s6178_s12 + $0x2f8] sm:$0xff]  ;;  %v3494_v25 = vpack.c.bf16 %v3048_v17, %v3046_v16  ;;  %v3045_v26 = vld [vmem:[%s6176_s9 + $0x1c0] sm:$0xff]  ;;  %v3540_v30 = vpack.c.bf16 %v3095_v21, %v3093_v20  ;;  %vm2034_vm15 = vcmask 517120  }
  0x46   :  { %3533 = vmatpush1.bf16.msra.mxu1 %v3532_v5  ;;  %v3047_v27 = vld [vmem:[%s6176_s9 + $0x1d0] sm:$0xff]  ;;  %v3050_v28 = vld [vmem:[%s6176_s9 + $0x1e8] sm:$0xff]  ;;  %v3052_v29 = vld [vmem:[%s6176_s9 + $0x1f8] sm:$0xff]  ;;  %v3542_v31 = vpack.c.bf16 %v3100_v24, %v3098_v23 }
  0x47   :  { %3033 = vmatmul.mubr.msk.f32.vlgmr.msra.gmra.mrb[0].mxu0 %vm155_vm1, %v4314_v36  ;;  %3535 = vmatprep.subr.bf16.mxu1 %v3534_v6  ;;  %v3097_v32 = vld [vmem:[%s6178_s12 + $0x2e0] sm:$0xff]  ;;  %v3099_v33 = vld [vmem:[%s6178_s12 + $0x2f0] sm:$0xff]  ;;  %v3496_v34 = vpack.c.bf16 %v3047_v27, %v3045_v26  ;;  %v3102_v35 = vld [vmem:[%s6178_s12 + $0x308] sm:$0xff]  ;;  %v3498_v39 = vpack.c.bf16 %v3052_v29, %v3050_v28 }
  0x48   :  { %3489 = vmatpush1.bf16.msra.mxu0 %v3488_v10  ;;  %331 = vmatprep.mubr.f32.mxu0 %v4084_v7  ;;  %v3104_v38 = vld [vmem:[%s6178_s12 + $0x318] sm:$0xff]  ;;  %v3049_v40 = vld [vmem:[%s6176_s9 + $0x1e0] sm:$0xff]  ;;  %v3051_v41 = vld [vmem:[%s6176_s9 + $0x1f0] sm:$0xff]  ;;  %v3544_v44 = vpack.c.bf16 %v3099_v33, %v3097_v32  ;;  %v377_v10 = vrot.slane %v4319_v37, 2 }
  0x49   :  { %3491 = vmatprep.subr.bf16.mxu0 %v3490_v13  ;;  %v3054_v42 = vld [vmem:[%s6176_s9 + $0x208] sm:$0xff]  ;;  %v3056_v43 = vld [vmem:[%s6176_s9 + $0x218] sm:$0xff]  ;;  %v3546_v45 = vpack.c.bf16 %v3104_v38, %v3102_v35  ;;  %v3101_v47 = vld [vmem:[%s6178_s12 + $0x300] sm:$0xff]  ;;  %v3500_v49 = vpack.c.bf16 %v3051_v41, %v3049_v40  ;;  %v490_v35 = vlaneseq }
  0x4a   :  { %3537 = vmatpush1.bf16.msra.mxu1 %v3536_v18  ;;  %v3103_v48 = vld [vmem:[%s6178_s12 + $0x310] sm:$0xff]  ;;  %v3106_v50 = vld [vmem:[%s6178_s12 + $0x328] sm:$0xff]  ;;  %v3108_v51 = vld [vmem:[%s6178_s12 + $0x338] sm:$0xff]  ;;  %v3502_v52 = vpack.c.bf16 %v3056_v43, %v3054_v42  ;;  %v378_v13 = vsel %vm375_vm2, %v376_v9, %v377_v10  ;;  %v380_v36 = vsel %vm375_vm2, %v377_v10, %v379_v14 }
  0x4b   :  { %3034 = vmatmul.mubr.msk.f32.gmra.mrb[2].mxu0 %vm155_vm1, %v4319_v37  ;;  %3539 = vmatprep.subr.bf16.mxu1 %v3538_v19  ;;  %v3053_v53 = vld [vmem:[%s6176_s9 + $0x200] sm:$0xff]  ;;  %v3055_v54 = vld [vmem:[%s6176_s9 + $0x210] sm:$0xff]  ;;  %v3058_v55 = vld [vmem:[%s6176_s9 + $0x228] sm:$0xff]  ;;  %v3548_v58 = vpack.c.bf16 %v3103_v48, %v3101_v47  ;;  %v3550_v59 = vpack.c.bf16 %v3108_v51, %v3106_v50  ;;  %v381_v37 = vrot.slane %v4363_v57, 2  ;;  %v4702_v38 = vshrl.u32 %v490_v35, 7 }
  0x4c   :  { %3493 = vmatpush1.bf16.msra.mxu0 %v3492_v22  ;;  %337 = vmatprep.mubr.f32.mxu0 %v4084_v7  ;;  %v3060_v56 = vld [vmem:[%s6176_s9 + $0x238] sm:$0xff]  ;;  %v3105_v60 = vld [vmem:[%s6178_s12 + $0x320] sm:$0xff]  ;;  %v3107_v61 = vld [vmem:[%s6178_s12 + $0x330] sm:$0xff]  ;;  %v3504_v62 = vpack.c.bf16 %v3055_v54, %v3053_v53 }
  0x4d   :  { %3495 = vmatprep.subr.bf16.mxu0 %v3494_v25  ;;  %v3110_v63 = vld [vmem:[%s6178_s12 + $0x348] sm:$0xff]  ;;  %v3112_v0 = vld [vmem:[%s6178_s12 + $0x358] sm:$0xff]  ;;  %v3506_v1 = vpack.c.bf16 %v3060_v56, %v3058_v55  ;;  %v3057_v2 = vld [vmem:[%s6176_s9 + $0x220] sm:$0xff]  ;;  %v3552_v4 = vpack.c.bf16 %v3107_v61, %v3105_v60  ;;  %v382_v15 = vsel %vm375_vm2, %v379_v14, %v381_v37  ;;  %v4711_v41 = vsub.s32 0, %v4702_v38 }
  0x4e   :  { %3541 = vmatpush1.bf16.msra.mxu1 %v3540_v30  ;;  %v3059_v3 = vld [vmem:[%s6176_s9 + $0x230] sm:$0xff]  ;;  %v3554_v5 = vpack.c.bf16 %v3112_v0, %v3110_v63  ;;  %v3109_v6 = vld [vmem:[%s6178_s12 + $0x340] sm:$0xff]  ;;  %v3118_v20 = vld [vmem:[%s6178_s12 + $0x388] sm:$0xff] }
  0x4f   :  { %3035 = vmatmul.mubr.msk.f32.gmra.mrb[4].mxu0 %vm155_vm1, %v4338_v46  ;;  %3543 = vmatprep.subr.bf16.mxu1 %v3542_v31  ;;  %v3111_v8 = vld [vmem:[%s6178_s12 + $0x350] sm:$0xff]  ;;  %v3508_v11 = vpack.c.bf16 %v3059_v3, %v3057_v2  ;;  %v3114_v46 = vld [vmem:[%s6178_s12 + $0x368] sm:$0xff]  ;;  %v3113_v17 = vld [vmem:[%s6178_s12 + $0x360] sm:$0xff] }
  0x50   :  { %3497 = vmatpush1.bf16.msra.mxu0 %v3496_v34  ;;  %343 = vmatprep.mubr.f32.mxu0 %v4084_v7  ;;  %v3556_v12 = vpack.c.bf16 %v3111_v8, %v3109_v6  ;;  %v3115_v18 = vld [vmem:[%s6178_s12 + $0x370] sm:$0xff]  ;;  %v3120_v21 = vld [vmem:[%s6178_s12 + $0x398] sm:$0xff]  ;;  %v3117_v23 = vld [vmem:[%s6178_s12 + $0x380] sm:$0xff] }
  0x51   :  { %3499 = vmatprep.subr.bf16.mxu0 %v3498_v39  ;;  %v3560_v19 = vpack.c.bf16 %v3115_v18, %v3113_v17  ;;  %v3562_v22 = vpack.c.bf16 %v3120_v21, %v3118_v20  ;;  %v3119_v24 = vld [vmem:[%s6178_s12 + $0x390] sm:$0xff]  ;;  %v3122_v26 = vld [vmem:[%s6178_s12 + $0x3a8] sm:$0xff]  ;;  %v3124_v27 = vld [vmem:[%s6178_s12 + $0x3b8] sm:$0xff]  ;;  %v4705_v39 = vsub.s32 1, %v4702_v38 }
  0x52   :  { %3545 = vmatpush1.bf16.msra.mxu1 %v3544_v44  ;;  %v3564_v25 = vpack.c.bf16 %v3119_v24, %v3117_v23  ;;  %v3566_v28 = vpack.c.bf16 %v3124_v27, %v3122_v26  ;;  %v3121_v29 = vld [vmem:[%s6178_s12 + $0x3a0] sm:$0xff]  ;;  %v3123_v30 = vld [vmem:[%s6178_s12 + $0x3b0] sm:$0xff]  ;;  %v517_v32 = vld [vmem:[%s6178_s12 + $0x8] sm:$0xff] }
  0x53   :  { %3036 = vmatmul.mubr.msk.f32.gmra.mrb[6].mxu0 %vm155_vm1, %v4363_v57  ;;  %3547 = vmatprep.subr.bf16.mxu1 %v3546_v45  ;;  %v3116_v57 = vld [vmem:[%s6178_s12 + $0x378] sm:$0xff]  ;;  %v3568_v31 = vpack.c.bf16 %v3123_v30, %v3121_v29  ;;  %v488_v40 = vld [vmem:[%s6179_s8] sm:$0x3]  ;;  %v518_v60 = vld [vmem:[%s6178_s12 + $0x10] sm:$0xff]  ;;  %s6182_s8 = sld [smem:[#allocation10_spill]] }
  0x54   :  { %3501 = vmatpush1.bf16.msra.mxu0 %v3500_v49  ;;  %455 = vmatprep.mubr.f32.mxu0 %v4084_v7  ;;  %v3558_v16 = vpack.c.bf16 %v3116_v57, %v3114_v46  ;;  %v519_v33 = vld [vmem:[%s6178_s12 + $0x18] sm:$0xff]  ;;  %v497_v42 = vrot.slane %v488_v40, %v4705_v39  ;;  %v493_v43 = vrot.slane %v488_v40, %v4711_v41  ;;  %v521_v0 = vld [vmem:[%s6178_s12 + $0x28] sm:$0xff]  ;;  %v522_v14 = vld [vmem:[%s6178_s12 + $0x30] sm:$0xff] }
  0x55   :  { %3503 = vmatprep.subr.bf16.mxu0 %v3502_v52  ;;  %v3570_v34 = vpack.c.bf16 %v519_v33, %v517_v32  ;;  %v525_v57 = vld [vmem:[%s6178_s12 + $0x48] sm:$0xff]  ;;  %v524_v24 = vld [vmem:[%s6178_s12 + $0x40] sm:$0xff]  ;;  %v531_v29 = vld [vmem:[%s6178_s12 + $0x78] sm:$0xff] }
  0x56   :  { %3549 = vmatpush1.bf16.msra.mxu1 %v3548_v58  ;;  %v528_v33 = vld [vmem:[%s6178_s12 + $0x60] sm:$0xff]  ;;  %v1044_v35 = vld [vmem:[%s6180_s4 + $0x10] sm:$0xff]  ;;  %vm3776_vm13 = vmpackc.low %vm1587_vm11, %vm4089_vm12 }
  0x57   :  { %3551 = vmatprep.subr.bf16.mxu1 %v3550_v59  ;;  %v516_v59 = vld [vmem:[%s6178_s12] sm:$0xff] }
  0x58   :  { %3505 = vmatpush1.bf16.msra.mxu0 %v3504_v62  ;;  %v3572_v8 = vpack.c.bf16 %v518_v60, %v516_v59  ;;  %v532_v59 = vld [vmem:[%s6178_s12 + $0x80] sm:$0xff]  ;;  %v534_v60 = vld [vmem:[%s6178_s12 + $0x90] sm:$0xff] }
  0x59   :  { %3507 = vmatprep.subr.bf16.mxu0 %v3506_v1  ;;  %v523_v1 = vld [vmem:[%s6178_s12 + $0x38] sm:$0xff] }
  0x5a   :  { %3553 = vmatpush1.bf16.msra.mxu1 %v3552_v4 }
  0x5b   :  { %3555 = vmatprep.subr.bf16.mxu1 %v3554_v5 }
  0x5c   :  { %3509 = vmatpush1.bf16.msra.mxu0 %v3508_v11 }
  0x5e   :  { %3557 = vmatpush1.bf16.msra.mxu1 %v3556_v12  ;;  %v3574_v12 = vpack.c.bf16 %v523_v1, %v521_v0  ;;  %v4086_v0 = vmov 0.0|0.0   ;;  %v1135_v1 = vld [vmem:[%s6181_s5 + $0x10] sm:$0xff] }
  0x5f   :  { %3061 = vmatmul.mubr.msk.f32.vlgmr.msra.gmra.mrb[0].mxu0 %vm155_vm1, %v378_v13  ;;  %3559 = vmatprep.subr.bf16.mxu1 %v3558_v16  ;;  %v520_v13 = vld [vmem:[%s6178_s12 + $0x20] sm:$0xff]  ;;  %v527_v16 = vld [vmem:[%s6178_s12 + $0x58] sm:$0xff] }
  0x60   :  { %461 = vmatprep.mubr.f32.mxu0 %v4084_v7  ;;  %v3576_v20 = vpack.c.bf16 %v522_v14, %v520_v13  ;;  %v3578_v23 = vpack.c.bf16 %v527_v16, %v525_v57  ;;  %3690 = vmatprep.subr.bf16.mxu0 %v4086_v0  ;;  %v1137_v13 = vld [vmem:[%s6181_s5 + $0x20] sm:$0xff]  ;;  %v1138_v14 = vld [vmem:[%s6181_s5 + $0x28] sm:$0xff] }
  0x61   :  { %v545_v57 = vld [vmem:[%s6178_s12 + $0xe8] sm:$0xff]  ;;  %v3697_v16 = vpack.c.bf16 %v1138_v14, %v1137_v13 }
  0x62   :  { %3561 = vmatpush1.bf16.msra.mxu1 %v3560_v19 }
  0x63   :  { %3062 = vmatmul.mubr.msk.f32.gmra.mrb[2].mxu0 %vm155_vm1, %v380_v36  ;;  %3563 = vmatprep.subr.bf16.mxu1 %v3562_v22 }
  0x64   :  { %467 = vmatprep.mubr.f32.mxu0 %v4084_v7 }
  0x66   :  { %3565 = vmatpush1.bf16.msra.mxu1 %v3564_v25  ;;  %v526_v25 = vld [vmem:[%s6178_s12 + $0x50] sm:$0xff] }
  0x67   :  { %3063 = vmatmul.mubr.msk.f32.gmra.mrb[4].mxu0 %vm155_vm1, %v382_v15  ;;  %3567 = vmatprep.subr.bf16.mxu1 %v3566_v28  ;;  %v529_v28 = vld [vmem:[%s6178_s12 + $0x68] sm:$0xff]  ;;  %v3580_v32 = vpack.c.bf16 %v526_v25, %v524_v24  ;;  %v544_v24 = vld [vmem:[%s6178_s12 + $0xe0] sm:$0xff]  ;;  %v546_v25 = vld [vmem:[%s6178_s12 + $0xf0] sm:$0xff] }
  0x68   :  { %473 = vmatprep.mubr.f32.mxu0 %v4084_v7 }
  0x6a   :  { %3569 = vmatpush1.bf16.msra.mxu1 %v3568_v31  ;;  %v1042_v31 = vld [vmem:[%s6180_s4] sm:$0xff] }
  0x6b   :  { %3064 = vmatmul.mubr.msk.f32.gmra.mrb[6].mxu0 %vm155_vm1, %v381_v37  ;;  %3571 = vmatprep.subr.bf16.mxu1 %v3570_v34  ;;  %v4085_v34 = vmov 0  }
  0x6c   :  { %4044 = vset.pattern.permute.xlu0 %v4085_v34  ;;  %4045 = vset.pattern.permute.xlu1 %v4085_v34  ;;  %v550_v34 = vld [vmem:[%s6178_s12 + $0x110] sm:$0xff] }
  0x6d   :  { %1048 = vperm.xlu0 %4044, %v1042_v31   ;;  %1058 = vperm.xlu1 %4045, %v1044_v35   ;;  %v3600_v31 = vpack.c.bf16 %v546_v25, %v544_v24  ;;  %v3133_v25 = vld [vmem:[%s6178_s12 + $0x3c0] sm:$0xff] }
 0x132   :  { %v457_v44 = vpop.f32.mrb[0].mxu0 }
 0x133   :  { %v459_v45 = vpop.f32.mrb[1].mxu0  ;;  %v500_v48 = vadd.f32 %v493_v43, %v457_v44  ;;  %v533_v44 = vld [vmem:[%s6178_s12 + $0x88] sm:$0xff] }
 0x134   :  { %v501_v47 = vadd.f32 %v497_v42, %v459_v45  ;;  %v535_v45 = vld [vmem:[%s6178_s12 + $0x98] sm:$0xff] }
 0x135   :  { %v4717_v54 = vmax.f32 %v500_v48, 0.0  ;;  %v1043_v48 = vld [vmem:[%s6180_s4 + $0x8] sm:$0xff] }
 0x136   :  { %v463_v49 = vpop.f32.mrb[2].mxu0  ;;  %v4715_v52 = vmax.f32 %v501_v47, 0.0  ;;  %1053 = vperm.xlu0 %4044, %v1043_v48   ;;  %v557_v48 = vld [vmem:[%s6178_s12 + $0x148] sm:$0xff] }
 0x137   :  { %v502_v50 = vadd.f32 %v493_v43, %v463_v49  ;;  %v465_v51 = vpop.f32.mrb[3].mxu0  ;;  %v645_v5 = vrot.slane %v4717_v54, 1  ;;  %v1133_v49 = vld [vmem:[%s6181_s5] sm:$0xff] }
 0x138   :  { %v503_v53 = vadd.f32 %v497_v42, %v465_v51  ;;  %v648_v3 = vrot.slane %v4715_v52, 1 }
 0x139   :  { %v4719_v55 = vmax.f32 %v502_v50, 0.0  ;;  %v1134_v50 = vld [vmem:[%s6181_s5 + $0x8] sm:$0xff] }
 0x13a   :  { %v4721_v56 = vmax.f32 %v503_v53, 0.0  ;;  %v469_v58 = vpop.f32.mrb[4].mxu0  ;;  %v1045_v53 = vld [vmem:[%s6180_s4 + $0x18] sm:$0xf]  ;;  %s6187_s4 = sld [smem:[#allocation16_spill]] }
 0x13b   :  { %v646_v61 = vrot.slane %v4719_v55, 1  ;;  %v504_v62 = vadd.f32 %v493_v43, %v469_v58  ;;  %v471_v63 = vpop.f32.mrb[5].mxu0  ;;  %v3586_v58 = vpack.c.bf16 %v535_v45, %v533_v44  ;;  %1063 = vperm.xlu1 %4045, %v1045_v53   ;;  %v552_v45 = vld [vmem:[%s6178_s12 + $0x120] sm:$0xff] }
 0x13c   :  { %v505_v2 = vadd.f32 %v497_v42, %v471_v63  ;;  %v649_v4 = vrot.slane %v4721_v56, 1  ;;  %v539_v63 = vld [vmem:[%s6178_s12 + $0xb8] sm:$0xff]  ;;  %v556_v53 = vld [vmem:[%s6178_s12 + $0x140] sm:$0xff] }
 0x13d   :  { %v4739_v6 = vmax.f32 %v504_v62, 0.0  ;;  %v647_v46 = vsel %vm147_vm0, %v645_v5, %v646_v61  ;;  %v3691_v62 = vpack.c.bf16 %v1134_v50, %v1133_v49  ;;  %v536_v5 = vld [vmem:[%s6178_s12 + $0xa0] sm:$0xff]  ;;  %v559_v49 = vld [vmem:[%s6178_s12 + $0x158] sm:$0xff] }
 0x13e   :  { %v4741_v9 = vmax.f32 %v505_v2, 0.0  ;;  %v475_v10 = vpop.f32.mrb[6].mxu0  ;;  %v650_v11 = vsel %vm147_vm0, %v648_v3, %v649_v4  ;;  %v1136_v2 = vld [vmem:[%s6181_s5 + $0x18] sm:$0xff]  ;;  %v3588_v3 = vpack.c.bf16 %v534_v60, %v532_v59  ;;  %v561_v59 = vld [vmem:[%s6178_s12 + $0x168] sm:$0xff] }
 0x13f   :  { %v651_v36 = vrot.slane %v4739_v6, 1  ;;  %v506_v37 = vadd.f32 %v493_v43, %v475_v10  ;;  %v477_v15 = vpop.f32.mrb[7].mxu0  ;;  %3125 = vmatprep.mubr.msk.f32.mxu1 %vm663_vm3, %v650_v11  ;;  %v530_v43 = vld [vmem:[%s6178_s12 + $0x70] sm:$0xff]  ;;  %v541_v10 = vld [vmem:[%s6178_s12 + $0xc8] sm:$0xff]  ;;  %3692 = vmatpush1.bf16.msra.mxu0 %v3691_v62  ;;  %v3694_v11 = vpack.c.bf16 %v1136_v2, %v1135_v1  ;;  %v563_v60 = vld [vmem:[%s6178_s12 + $0x178] sm:$0xff] }
 0x140   :  { %v653_v17 = vrot.slane %v4741_v9, 1  ;;  %v507_v18 = vadd.f32 %v497_v42, %v477_v15  ;;  %737 = vmatmul.mubr.f32.vlgmr.msra.gmra.mrb[0].mxu1 %v647_v46  ;;  %v3582_v42 = vpack.c.bf16 %v531_v29, %v529_v28  ;;  %v3584_v51 = vpack.c.bf16 %v530_v43, %v528_v33  ;;  %3693 = vmatprep.subr.bf16.mxu0 %v4086_v0  ;;  %v540_v15 = vld [vmem:[%s6178_s12 + $0xc0] sm:$0xff]  ;;  %v542_v46 = vld [vmem:[%s6178_s12 + $0xd0] sm:$0xff]  ;;  %v551_v28 = vld [vmem:[%s6178_s12 + $0x118] sm:$0xff] }
 0x141   :  { %v4760_v19 = vmax.f32 %v506_v37, 0.0  ;;  %3573 = vmatpush1.bf16.msra.mxu1 %v3572_v8  ;;  %v652_v27 = vsel %vm147_vm0, %v646_v61, %v651_v36  ;;  %v537_v61 = vld [vmem:[%s6178_s12 + $0xa8] sm:$0xff]  ;;  %v538_v8 = vld [vmem:[%s6178_s12 + $0xb0] sm:$0xff]  ;;  %v1141_v29 = vld [vmem:[%s6181_s5 + $0x40] sm:$0xff]  ;;  %v3614_v62 = vpack.c.bf16 %v563_v60, %v561_v59  ;;  %v922_v60 = vrot.slane %v4715_v52, 2 }
 0x142   :  { %v4762_v21 = vmax.f32 %v507_v18, 0.0  ;;  %v654_v22 = vsel %vm147_vm0, %v649_v4, %v653_v17  ;;  %3575 = vmatprep.subr.bf16.mxu1 %v3574_v12  ;;  %v3590_v4 = vpack.c.bf16 %v539_v63, %v537_v61  ;;  %v543_v12 = vld [vmem:[%s6178_s12 + $0xd8] sm:$0xff]  ;;  %v1139_v18 = vld [vmem:[%s6181_s5 + $0x30] sm:$0xff]  ;;  %v548_v33 = vld [vmem:[%s6178_s12 + $0x100] sm:$0xff] }
 0x143   :  { %v655_v26 = vrot.slane %v4760_v19, 1  ;;  %3126 = vmatprep.mubr.msk.f32.mxu1 %vm663_vm3, %v654_v22  ;;  %v3594_v37 = vpack.c.bf16 %v543_v12, %v541_v10  ;;  %3695 = vmatpush1.bf16.msra.mxu0 %v3694_v11  ;;  %v3596_v22 = vpack.c.bf16 %v542_v46, %v540_v15  ;;  %v3604_v43 = vpack.c.bf16 %v550_v34, %v548_v33  ;;  %v560_v63 = vld [vmem:[%s6178_s12 + $0x160] sm:$0xff]  ;;  %v562_v1 = vld [vmem:[%s6178_s12 + $0x170] sm:$0xff]  ;;  %v565_v2 = vld [vmem:[%s6178_s12 + $0x188] sm:$0xff] }
 0x144   :  { %v657_v30 = vrot.slane %v4762_v21, 1  ;;  %743 = vmatmul.mubr.f32.gmra.mrb[2].mxu1 %v652_v27  ;;  %3696 = vmatprep.subr.bf16.mxu0 %v4086_v0  ;;  %v566_v10 = vld [vmem:[%s6178_s12 + $0x190] sm:$0xff]  ;;  %v569_v11 = vld [vmem:[%s6178_s12 + $0x1a8] sm:$0xff]  ;;  %v571_v12 = vld [vmem:[%s6178_s12 + $0x1b8] sm:$0xff] }
 0x145   :  { %3577 = vmatpush1.bf16.msra.mxu1 %v3576_v20  ;;  %v656_v47 = vsel %vm147_vm0, %v651_v36, %v655_v26  ;;  %v3592_v36 = vpack.c.bf16 %v538_v8, %v536_v5  ;;  %v1140_v20 = vld [vmem:[%s6181_s5 + $0x38] sm:$0xff]  ;;  %v564_v8 = vld [vmem:[%s6178_s12 + $0x180] sm:$0xff]  ;;  %v3622_v14 = vpack.c.bf16 %v571_v12, %v569_v11  ;;  %v573_v15 = vld [vmem:[%s6178_s12 + $0x1c8] sm:$0xff] }
 0x146   :  { %v658_v40 = vsel %vm147_vm0, %v653_v17, %v657_v30  ;;  %3579 = vmatprep.subr.bf16.mxu1 %v3578_v23  ;;  %v547_v17 = vld [vmem:[%s6178_s12 + $0xf8] sm:$0xff]  ;;  %v3700_v27 = vpack.c.bf16 %v1140_v20, %v1139_v18  ;;  %v3620_v13 = vpack.c.bf16 %v566_v10, %v564_v8  ;;  %v574_v18 = vld [vmem:[%s6178_s12 + $0x1d0] sm:$0xff]  ;;  %v3134_v20 = vld [vmem:[%s6178_s12 + $0x3c8] sm:$0xff] }
 0x147   :  { %3127 = vmatprep.mubr.msk.f32.mxu1 %vm663_vm3, %v658_v40  ;;  %v3598_v23 = vpack.c.bf16 %v547_v17, %v545_v57  ;;  %3698 = vmatpush1.bf16.msra.mxu0 %v3697_v16  ;;  %v553_v40 = vld [vmem:[%s6178_s12 + $0x128] sm:$0xff]  ;;  %v575_v46 = vld [vmem:[%s6178_s12 + $0x1d8] sm:$0xff]  ;;  %v572_v17 = vld [vmem:[%s6178_s12 + $0x1c0] sm:$0xff] }
 0x148   :  { %749 = vmatmul.mubr.f32.gmra.mrb[4].mxu1 %v656_v47  ;;  %3699 = vmatprep.subr.bf16.mxu0 %v4086_v0  ;;  %v554_v47 = vld [vmem:[%s6178_s12 + $0x130] sm:$0xff]  ;;  %v3626_v16 = vpack.c.bf16 %v575_v46, %v573_v15  ;;  %v3142_v33 = vld [vmem:[%s6178_s12 + $0x408] sm:$0xff]  ;;  %v3144_v34 = vld [vmem:[%s6178_s12 + $0x418] sm:$0xff] }
 0x149   :  { %3581 = vmatpush1.bf16.msra.mxu1 %v3580_v32  ;;  %3128 = vmatprep.mubr.msk.f32.mxu1 %vm663_vm3, %v657_v30  ;;  %v1142_v30 = vld [vmem:[%s6181_s5 + $0x48] sm:$0xff]  ;;  %v3608_v50 = vpack.c.bf16 %v554_v47, %v552_v45  ;;  %v3148_v45 = vld [vmem:[%s6178_s12 + $0x438] sm:$0xff]  ;;  %v3155_v8 = vld [vmem:[%s6178_s12 + $0x470] sm:$0xff] }
 0x14a   :  { %3583 = vmatprep.subr.bf16.mxu1 %v3582_v42  ;;  %v3703_v35 = vpack.c.bf16 %v1142_v30, %v1141_v29  ;;  %v555_v42 = vld [vmem:[%s6178_s12 + $0x138] sm:$0xff]  ;;  %v3158_v10 = vld [vmem:[%s6178_s12 + $0x488] sm:$0xff] }
 0x14b   :  { %3701 = vmatpush1.bf16.msra.mxu0 %v3700_v27  ;;  %v3606_v44 = vpack.c.bf16 %v555_v42, %v553_v40  ;;  %v3138_v27 = vld [vmem:[%s6178_s12 + $0x3e8] sm:$0xff]  ;;  %v3638_v40 = vpack.c.bf16 %v3144_v34, %v3142_v33  ;;  %v3141_v42 = vld [vmem:[%s6178_s12 + $0x400] sm:$0xff]  ;;  %v3160_v11 = vld [vmem:[%s6178_s12 + $0x498] sm:$0xff] }
 0x14c   :  { %755 = vmatmul.mubr.f32.gmra.mrb[6].mxu1 %v655_v26  ;;  %v549_v26 = vld [vmem:[%s6178_s12 + $0x108] sm:$0xff]  ;;  %3702 = vmatprep.subr.bf16.mxu0 %v4086_v0  ;;  %v3164_v15 = vld [vmem:[%s6178_s12 + $0x4b8] sm:$0xff] }
 0x14d   :  { %3585 = vmatpush1.bf16.msra.mxu1 %v3584_v51  ;;  %3129 = vmatprep.mubr.msk.f32.mxu1 %vm663_vm3, %v4715_v52  ;;  %v3602_v32 = vpack.c.bf16 %v551_v28, %v549_v26  ;;  %v3610_v51 = vpack.c.bf16 %v559_v49, %v557_v48  ;;  %v3135_v26 = vld [vmem:[%s6178_s12 + $0x3d0] sm:$0xff]  ;;  %v3140_v28 = vld [vmem:[%s6178_s12 + $0x3f8] sm:$0xff]  ;;  %v3145_v49 = vld [vmem:[%s6178_s12 + $0x420] sm:$0xff] }
 0x14e   :  { %3587 = vmatprep.subr.bf16.mxu1 %v3586_v58  ;;  %v558_v58 = vld [vmem:[%s6178_s12 + $0x150] sm:$0xff]  ;;  %v3632_v29 = vpack.c.bf16 %v3135_v26, %v3133_v25  ;;  %v3634_v30 = vpack.c.bf16 %v3140_v28, %v3138_v27  ;;  %v3170_v26 = vld [vmem:[%s6178_s12 + $0x4e8] sm:$0xff]  ;;  %v3172_v27 = vld [vmem:[%s6178_s12 + $0x4f8] sm:$0xff] }
 0x14f   :  { %3704 = vmatpush1.bf16.msra.mxu0 %v3703_v35  ;;  %v3612_v61 = vpack.c.bf16 %v558_v58, %v556_v53  ;;  %v3152_v53 = vld [vmem:[%s6178_s12 + $0x458] sm:$0xff]  ;;  %v923_v58 = vrot.slane %v4721_v56, 2  ;;  %v3167_v25 = vld [vmem:[%s6178_s12 + $0x4d0] sm:$0xff] }
 0x150   :  { %3705 = vmatprep.subr.bf16.mxu0 %v4086_v0  ;;  %v3176_v33 = vld [vmem:[%s6178_s12 + $0x518] sm:$0xff] }
 0x151   :  { %3589 = vmatpush1.bf16.msra.mxu1 %v3588_v3  ;;  %v567_v3 = vld [vmem:[%s6178_s12 + $0x198] sm:$0xff]  ;;  %v924_v52 = vsel %vm375_vm2, %v922_v60, %v923_v58  ;;  %v3181_v60 = vld [vmem:[%s6178_s12 + $0x540] sm:$0xff] }
 0x152   :  { %3591 = vmatprep.subr.bf16.mxu1 %v3590_v4  ;;  %v3616_v4 = vpack.c.bf16 %v562_v1, %v560_v63  ;;  %v3618_v5 = vpack.c.bf16 %v567_v3, %v565_v2  ;;  %v3151_v63 = vld [vmem:[%s6178_s12 + $0x450] sm:$0xff]  ;;  %v3154_v1 = vld [vmem:[%s6178_s12 + $0x468] sm:$0xff]  ;;  %v3156_v2 = vld [vmem:[%s6178_s12 + $0x478] sm:$0xff] }
 0x155   :  { %3593 = vmatpush1.bf16.msra.mxu1 %v3592_v36  ;;  %v568_v36 = vld [vmem:[%s6178_s12 + $0x1a0] sm:$0xff] }
 0x156   :  { %3595 = vmatprep.subr.bf16.mxu1 %v3594_v37  ;;  %v570_v37 = vld [vmem:[%s6178_s12 + $0x1b0] sm:$0xff] }
 0x157   :  { %v3624_v57 = vpack.c.bf16 %v570_v37, %v568_v36  ;;  %v3159_v36 = vld [vmem:[%s6178_s12 + $0x490] sm:$0xff]  ;;  %v3162_v37 = vld [vmem:[%s6178_s12 + $0x4a8] sm:$0xff] }
 0x159   :  { %3597 = vmatpush1.bf16.msra.mxu1 %v3596_v22  ;;  %v3136_v22 = vld [vmem:[%s6178_s12 + $0x3d8] sm:$0xff] }
 0x15a   :  { %3599 = vmatprep.subr.bf16.mxu1 %v3598_v23  ;;  %v3628_v23 = vpack.c.bf16 %v574_v18, %v572_v17  ;;  %v3630_v24 = vpack.c.bf16 %v3136_v22, %v3134_v20  ;;  %v3163_v17 = vld [vmem:[%s6178_s12 + $0x4b0] sm:$0xff]  ;;  %v3166_v18 = vld [vmem:[%s6178_s12 + $0x4c8] sm:$0xff]  ;;  %v3168_v20 = vld [vmem:[%s6178_s12 + $0x4d8] sm:$0xff] }
 0x15d   :  { %3601 = vmatpush1.bf16.msra.mxu1 %v3600_v31  ;;  %v3137_v31 = vld [vmem:[%s6178_s12 + $0x3e0] sm:$0xff] }
 0x15e   :  { %3603 = vmatprep.subr.bf16.mxu1 %v3602_v32  ;;  %v3139_v32 = vld [vmem:[%s6178_s12 + $0x3f0] sm:$0xff] }
 0x15f   :  { %v3636_v35 = vpack.c.bf16 %v3139_v32, %v3137_v31  ;;  %v3171_v31 = vld [vmem:[%s6178_s12 + $0x4f0] sm:$0xff]  ;;  %v3174_v32 = vld [vmem:[%s6178_s12 + $0x508] sm:$0xff] }
 0x161   :  { %3605 = vmatpush1.bf16.msra.mxu1 %v3604_v43  ;;  %v3143_v43 = vld [vmem:[%s6178_s12 + $0x410] sm:$0xff] }
 0x162   :  { %3607 = vmatprep.subr.bf16.mxu1 %v3606_v44  ;;  %v3146_v44 = vld [vmem:[%s6178_s12 + $0x428] sm:$0xff]  ;;  %v3640_v47 = vpack.c.bf16 %v3143_v43, %v3141_v42  ;;  %v3175_v42 = vld [vmem:[%s6178_s12 + $0x510] sm:$0xff] }
 0x163   :  { %v3642_v48 = vpack.c.bf16 %v3148_v45, %v3146_v44  ;;  %v3178_v43 = vld [vmem:[%s6178_s12 + $0x528] sm:$0xff]  ;;  %v3180_v44 = vld [vmem:[%s6178_s12 + $0x538] sm:$0xff] }
 0x165   :  { %3609 = vmatpush1.bf16.msra.mxu1 %v3608_v50  ;;  %v3147_v50 = vld [vmem:[%s6178_s12 + $0x430] sm:$0xff] }
 0x166   :  { %3611 = vmatprep.subr.bf16.mxu1 %v3610_v51  ;;  %v3150_v51 = vld [vmem:[%s6178_s12 + $0x448] sm:$0xff]  ;;  %v3644_v59 = vpack.c.bf16 %v3147_v50, %v3145_v49  ;;  %v3179_v49 = vld [vmem:[%s6178_s12 + $0x530] sm:$0xff] }
 0x167   :  { %v3182_v50 = vld [vmem:[%s6178_s12 + $0x548] sm:$0xff] }
 0x169   :  { %3613 = vmatpush1.bf16.msra.mxu1 %v3612_v61  ;;  %v3646_v61 = vpack.c.bf16 %v3152_v53, %v3150_v51  ;;  %v3184_v51 = vld [vmem:[%s6178_s12 + $0x558] sm:$0xff] }
 0x16a   :  { %3615 = vmatprep.subr.bf16.mxu1 %v3614_v62  ;;  %v3149_v62 = vld [vmem:[%s6178_s12 + $0x440] sm:$0xff] }
 0x16b   :  { %v3648_v3 = vpack.c.bf16 %v3151_v63, %v3149_v62  ;;  %v3186_v62 = vld [vmem:[%s6178_s12 + $0x568] sm:$0xff]  ;;  %v3188_v63 = vld [vmem:[%s6178_s12 + $0x578] sm:$0xff] }
 0x16d   :  { %3617 = vmatpush1.bf16.msra.mxu1 %v3616_v4  ;;  %v3650_v4 = vpack.c.bf16 %v3156_v2, %v3154_v1  ;;  %v3682_v2 = vpack.c.bf16 %v3188_v63, %v3186_v62 }
 0x16e   :  { %3619 = vmatprep.subr.bf16.mxu1 %v3618_v5  ;;  %v3153_v5 = vld [vmem:[%s6178_s12 + $0x460] sm:$0xff] }
 0x16f   :  { %v3652_v12 = vpack.c.bf16 %v3155_v8, %v3153_v5  ;;  %v3192_v5 = vld [vmem:[%s6178_s12 + $0x598] sm:$0xff] }
 0x171   :  { %3621 = vmatpush1.bf16.msra.mxu1 %v3620_v13  ;;  %v3654_v13 = vpack.c.bf16 %v3160_v11, %v3158_v10  ;;  %v3189_v11 = vld [vmem:[%s6178_s12 + $0x580] sm:$0xff] }
 0x172   :  { %3623 = vmatprep.subr.bf16.mxu1 %v3622_v14  ;;  %v3157_v14 = vld [vmem:[%s6178_s12 + $0x480] sm:$0xff] }
 0x173   :  { %v3656_v46 = vpack.c.bf16 %v3159_v36, %v3157_v14  ;;  %v920_v14 = vrot.slane %v4719_v55, 2  ;;  %v927_v36 = vrot.slane %v4741_v9, 2 }
 0x175   :  { %3625 = vmatpush1.bf16.msra.mxu1 %v3624_v57  ;;  %v3658_v57 = vpack.c.bf16 %v3164_v15, %v3162_v37  ;;  %v919_v37 = vrot.slane %v4717_v54, 2  ;;  %v925_v15 = vrot.slane %v4739_v6, 2 }
 0x176   :  { %3627 = vmatprep.subr.bf16.mxu1 %v3626_v16  ;;  %v3161_v16 = vld [vmem:[%s6178_s12 + $0x4a0] sm:$0xff] }
 0x177   :  { %v3660_v22 = vpack.c.bf16 %v3163_v17, %v3161_v16  ;;  %v928_v16 = vsel %vm375_vm2, %v923_v58, %v927_v36  ;;  %v1145_v58 = vld [vmem:[%s6181_s5 + $0x60] sm:$0xff]  ;;  %v1146_v17 = vld [vmem:[%s6181_s5 + $0x68] sm:$0xff] }
 0x179   :  { %3629 = vmatpush1.bf16.msra.mxu1 %v3628_v23  ;;  %v3662_v23 = vpack.c.bf16 %v3168_v20, %v3166_v18  ;;  %v3709_v18 = vpack.c.bf16 %v1146_v17, %v1145_v58  ;;  %v1147_v20 = vld [vmem:[%s6181_s5 + $0x70] sm:$0xff] }
 0x17a   :  { %3631 = vmatprep.subr.bf16.mxu1 %v3630_v24  ;;  %v3165_v24 = vld [vmem:[%s6178_s12 + $0x4c0] sm:$0xff] }
 0x17b   :  { %v3664_v28 = vpack.c.bf16 %v3167_v25, %v3165_v24  ;;  %v1149_v24 = vld [vmem:[%s6181_s5 + $0x80] sm:$0xff]  ;;  %v1150_v25 = vld [vmem:[%s6181_s5 + $0x88] sm:$0xff] }
 0x17c   :  { %834 = vmatmul.mubr.f32.vlgmr.msra.gmra.mrb[0].mxu1 %v4717_v54 }
 0x17d   :  { %3130 = vmatprep.mubr.msk.f32.mxu1 %vm663_vm3, %v4721_v56  ;;  %3633 = vmatpush1.bf16.msra.mxu1 %v3632_v29  ;;  %v3666_v29 = vpack.c.bf16 %v3172_v27, %v3170_v26  ;;  %v1143_v56 = vld [vmem:[%s6181_s5 + $0x50] sm:$0xff]  ;;  %v3715_v26 = vpack.c.bf16 %v1150_v25, %v1149_v24 }
 0x17e   :  { %3635 = vmatprep.subr.bf16.mxu1 %v3634_v30  ;;  %v3169_v30 = vld [vmem:[%s6178_s12 + $0x4e0] sm:$0xff]  ;;  %v1151_v27 = vld [vmem:[%s6181_s5 + $0x90] sm:$0xff] }
 0x17f   :  { %v3668_v34 = vpack.c.bf16 %v3171_v31, %v3169_v30  ;;  %v1153_v30 = vld [vmem:[%s6181_s5 + $0xa0] sm:$0xff]  ;;  %v1154_v31 = vld [vmem:[%s6181_s5 + $0xa8] sm:$0xff] }
 0x180   :  { %840 = vmatmul.mubr.f32.gmra.mrb[2].mxu1 %v4719_v55  ;;  %v929_v55 = vrot.slane %v4760_v19, 2 }
 0x181   :  { %3131 = vmatprep.mubr.msk.f32.mxu1 %vm663_vm3, %v4741_v9  ;;  %3637 = vmatpush1.bf16.msra.mxu1 %v3636_v35  ;;  %v3670_v35 = vpack.c.bf16 %v3176_v33, %v3174_v32  ;;  %v926_v9 = vsel %vm375_vm2, %v920_v14, %v925_v15  ;;  %v3721_v32 = vpack.c.bf16 %v1154_v31, %v1153_v30  ;;  %v1155_v33 = vld [vmem:[%s6181_s5 + $0xb0] sm:$0xff] }
 0x182   :  { %3639 = vmatprep.subr.bf16.mxu1 %v3638_v40  ;;  %v3173_v40 = vld [vmem:[%s6178_s12 + $0x500] sm:$0xff] }
 0x183   :  { %v3672_v45 = vpack.c.bf16 %v3175_v42, %v3173_v40  ;;  %v1157_v40 = vld [vmem:[%s6181_s5 + $0xc0] sm:$0xff]  ;;  %v1158_v42 = vld [vmem:[%s6181_s5 + $0xc8] sm:$0xff] }
 0x184   :  { %846 = vmatmul.mubr.f32.gmra.mrb[4].mxu1 %v4739_v6  ;;  %v930_v6 = vsel %vm375_vm2, %v925_v15, %v929_v55 }
 0x185   :  { %3132 = vmatprep.mubr.msk.f32.mxu1 %vm663_vm3, %v4762_v21  ;;  %3641 = vmatpush1.bf16.msra.mxu1 %v3640_v47  ;;  %v3674_v47 = vpack.c.bf16 %v3180_v44, %v3178_v43  ;;  %v3727_v43 = vpack.c.bf16 %v1158_v42, %v1157_v40  ;;  %v1159_v44 = vld [vmem:[%s6181_s5 + $0xd0] sm:$0xff] }
 0x186   :  { %3643 = vmatprep.subr.bf16.mxu1 %v3642_v48  ;;  %v3177_v48 = vld [vmem:[%s6178_s12 + $0x520] sm:$0xff] }
 0x187   :  { %v3676_v53 = vpack.c.bf16 %v3179_v49, %v3177_v48  ;;  %v1049_v48 = vpop.permute.xlu0 %1048 }
 0x188   :  { %852 = vmatmul.mubr.f32.gmra.mrb[6].mxu1 %v4760_v19  ;;  %v1144_v19 = vld [vmem:[%s6181_s5 + $0x58] sm:$0xff] }
 0x189   :  { %3645 = vmatpush1.bf16.msra.mxu1 %v3644_v59  ;;  %3193 = vmatprep.mubr.msk.f32.mxu1 %vm663_vm3, %v924_v52  ;;  %v3678_v59 = vpack.c.bf16 %v3184_v51, %v3182_v50  ;;  %v3185_v52 = vld [vmem:[%s6178_s12 + $0x560] sm:$0xff] }
 0x18a   :  { %3647 = vmatprep.subr.bf16.mxu1 %v3646_v61  ;;  %v3183_v61 = vld [vmem:[%s6178_s12 + $0x550] sm:$0xff] }
 0x18b   :  { %v3680_v1 = vpack.c.bf16 %v3183_v61, %v3181_v60 }
 0x18d   :  { %3649 = vmatpush1.bf16.msra.mxu1 %v3648_v3  ;;  %v3187_v3 = vld [vmem:[%s6178_s12 + $0x570] sm:$0xff] }
 0x18e   :  { %3651 = vmatprep.subr.bf16.mxu1 %v3650_v4  ;;  %v3190_v4 = vld [vmem:[%s6178_s12 + $0x588] sm:$0xff]  ;;  %v3684_v8 = vpack.c.bf16 %v3187_v3, %v3185_v52 }
 0x18f   :  { %v3686_v10 = vpack.c.bf16 %v3192_v5, %v3190_v4 }
 0x191   :  { %3653 = vmatpush1.bf16.msra.mxu1 %v3652_v12  ;;  %v3191_v12 = vld [vmem:[%s6178_s12 + $0x590] sm:$0xff]  ;;  %s6183_s12 = sld [smem:[#allocation11_spill]] }
 0x192   :  { %3655 = vmatprep.subr.bf16.mxu1 %v3654_v13  ;;  %v3688_v13 = vpack.c.bf16 %v3191_v12, %v3189_v11 }
 0x195   :  { %3657 = vmatpush1.bf16.msra.mxu1 %v3656_v46  ;;  %v921_v46 = vsel %vm375_vm2, %v919_v37, %v920_v14 }
 0x196   :  { %3659 = vmatprep.subr.bf16.mxu1 %v3658_v57  ;;  %v931_v57 = vrot.slane %v4762_v21, 2  ;;  %v3706_v21 = vpack.c.bf16 %v1144_v19, %v1143_v56 }
 0x198   :  { %v932_v54 = vsel %vm375_vm2, %v927_v36, %v931_v57  ;;  %3707 = vmatpush1.bf16.msra.mxu0 %v3706_v21 }
 0x199   :  { %3661 = vmatpush1.bf16.msra.mxu1 %v3660_v22  ;;  %3708 = vmatprep.subr.bf16.mxu0 %v4086_v0  ;;  %v1148_v22 = vld [vmem:[%s6181_s5 + $0x78] sm:$0xff] }
 0x19a   :  { %3663 = vmatprep.subr.bf16.mxu1 %v3662_v23  ;;  %v3712_v23 = vpack.c.bf16 %v1148_v22, %v1147_v20 }
 0x19c   :  { %3710 = vmatpush1.bf16.msra.mxu0 %v3709_v18 }
 0x19d   :  { %3665 = vmatpush1.bf16.msra.mxu1 %v3664_v28  ;;  %3711 = vmatprep.subr.bf16.mxu0 %v4086_v0  ;;  %v1152_v28 = vld [vmem:[%s6181_s5 + $0x98] sm:$0xff] }
 0x19e   :  { %3667 = vmatprep.subr.bf16.mxu1 %v3666_v29  ;;  %v3718_v29 = vpack.c.bf16 %v1152_v28, %v1151_v27 }
 0x1a0   :  { %3713 = vmatpush1.bf16.msra.mxu0 %v3712_v23 }
 0x1a1   :  { %3669 = vmatpush1.bf16.msra.mxu1 %v3668_v34  ;;  %3714 = vmatprep.subr.bf16.mxu0 %v4086_v0  ;;  %v1156_v34 = vld [vmem:[%s6181_s5 + $0xb8] sm:$0xff] }
 0x1a2   :  { %3671 = vmatprep.subr.bf16.mxu1 %v3670_v35  ;;  %v3724_v35 = vpack.c.bf16 %v1156_v34, %v1155_v33 }
 0x1a4   :  { %3716 = vmatpush1.bf16.msra.mxu0 %v3715_v26 }
 0x1a5   :  { %3673 = vmatpush1.bf16.msra.mxu1 %v3672_v45  ;;  %3717 = vmatprep.subr.bf16.mxu0 %v4086_v0  ;;  %v1160_v45 = vld [vmem:[%s6181_s5 + $0xd8] sm:$0xff]  ;;  %s6186_s5 = sld [smem:[#allocation15_spill]] }
 0x1a6   :  { %3675 = vmatprep.subr.bf16.mxu1 %v3674_v47  ;;  %v3730_v47 = vpack.c.bf16 %v1160_v45, %v1159_v44 }
 0x1a8   :  { %3719 = vmatpush1.bf16.msra.mxu0 %v3718_v29 }
 0x1a9   :  { %3677 = vmatpush1.bf16.msra.mxu1 %v3676_v53  ;;  %3720 = vmatprep.subr.bf16.mxu0 %v4086_v0 }
 0x1aa   :  { %3679 = vmatprep.subr.bf16.mxu1 %v3678_v59 }
 0x1ac   :  { %3722 = vmatpush1.bf16.msra.mxu0 %v3721_v32 }
 0x1ad   :  { %3681 = vmatpush1.bf16.msra.mxu1 %v3680_v1  ;;  %3723 = vmatprep.subr.bf16.mxu0 %v4086_v0  ;;  %v1059_v1 = vpop.permute.xlu1 %1058 }
 0x1ae   :  { %3683 = vmatprep.subr.bf16.mxu1 %v3682_v2 }
 0x1b0   :  { %3725 = vmatpush1.bf16.msra.mxu0 %v3724_v35 }
 0x1b1   :  { %3685 = vmatpush1.bf16.msra.mxu1 %v3684_v8  ;;  %3726 = vmatprep.subr.bf16.mxu0 %v4086_v0 }
 0x1b2   :  { %3687 = vmatprep.subr.bf16.mxu1 %v3686_v10 }
 0x1b4   :  { %3728 = vmatpush1.bf16.msra.mxu0 %v3727_v43 }
 0x1b5   :  { %3689 = vmatpush1.bf16.msra.mxu1 %v3688_v13  ;;  %3729 = vmatprep.subr.bf16.mxu0 %v4086_v0  ;;  %v1054_v53 = vpop.permute.xlu0 %1053 }
 0x1b8   :  { %1010 = vmatmul.mubr.f32.vlgmr.msra.gmra.mrb[0].mxu1 %v921_v46  ;;  %3731 = vmatpush1.bf16.msra.mxu0 %v3730_v47 }
 0x1b9   :  { %3194 = vmatprep.mubr.msk.f32.mxu1 %vm663_vm3, %v928_v16  ;;  %3732 = vmatprep.subr.bf16.mxu0 %v4086_v0 }
 0x1bc   :  { %1016 = vmatmul.mubr.f32.gmra.mrb[2].mxu1 %v926_v9  ;;  %v1064_v9 = vpop.permute.xlu1 %1063 }
 0x1bd   :  { %3195 = vmatprep.mubr.msk.f32.mxu1 %vm663_vm3, %v932_v54 }
 0x1c0   :  { %1022 = vmatmul.mubr.f32.gmra.mrb[4].mxu1 %v930_v6 }
 0x1c1   :  { %3196 = vmatprep.mubr.msk.f32.mxu1 %vm663_vm3, %v931_v57 }
 0x1c4   :  { %1028 = vmatmul.mubr.f32.gmra.mrb[6].mxu1 %v929_v55 }
 0x1c5   :  { %1342 = vmatprep.mubr.f32.mxu1 %v4084_v7 }
 0x28b   :  { %v5249_v49 = vpop.f32.mrb[0].mxu1 }
 0x28c   :  { %v5251_v50 = vpop.f32.mrb[1].mxu1  ;;  %v1066_v59 = vmul.f32 %v1049_v48, %v5249_v49 }
 0x28d   :  { %v1067_v51 = vmul.f32 %v1049_v48, %v5251_v50 }
 0x28e   :  { %v1099_v52 = vmul.f32 %v1066_v59, %v5249_v49 }
 0x28f   :  { %v5255_v60 = vpop.f32.mrb[2].mxu1  ;;  %v1100_v63 = vmul.f32 %v1067_v51, %v5251_v50  ;;  %v1085_v5 = vsel %vm155_vm1, %v1067_v51, 0.0 }
 0x290   :  { %v1068_v61 = vmul.f32 %v1054_v53, %v5255_v60  ;;  %v5258_v62 = vpop.f32.mrb[3].mxu1 }
 0x291   :  { %v1069_v2 = vmul.f32 %v1054_v53, %v5258_v62  ;;  %v1117_v37 = vsel %vm155_vm1, %v1100_v63, 0.0 }
 0x292   :  { %v1074_v3 = vadd.f32 %v1068_v61, %v1066_v59  ;;  %v1101_v4 = vmul.f32 %v1068_v61, %v5255_v60 }
 0x293   :  { %v1086_v8 = vsel %vm155_vm1, %v1069_v2, 0.0  ;;  %v1102_v10 = vmul.f32 %v1069_v2, %v5258_v62  ;;  %v5267_v11 = vpop.f32.mrb[4].mxu1 }
 0x294   :  { %v1107_v12 = vadd.f32 %v1101_v4, %v1099_v52  ;;  %v1087_v13 = vadd.f32 %v1086_v8, %v1085_v5  ;;  %v1070_v14 = vmul.f32 %v1059_v1, %v5267_v11  ;;  %v5270_v36 = vpop.f32.mrb[5].mxu1 }
 0x295   :  { %v1118_v15 = vsel %vm155_vm1, %v1102_v10, 0.0  ;;  %v1071_v46 = vmul.f32 %v1059_v1, %v5270_v36 }
 0x296   :  { %v1119_v57 = vadd.f32 %v1118_v15, %v1117_v37  ;;  %v1075_v16 = vadd.f32 %v1074_v3, %v1070_v14  ;;  %v1103_v55 = vmul.f32 %v1070_v14, %v5267_v11  ;;  %v1273_v37 = vld [vmem:[%s6182_s8 + $0x8] sm:$0xff]  ;;  %v1272_v15 = vld [vmem:[%s6182_s8] sm:$0xff] }
 0x297   :  { %v1088_v54 = vsel %vm155_vm1, %v1071_v46, 0.0  ;;  %v1104_v6 = vmul.f32 %v1071_v46, %v5270_v36  ;;  %v5278_v56 = vpop.f32.mrb[6].mxu1  ;;  %1278 = vmatprep.subr.mxu1 %v1273_v37  ;;  %v1452_v37 = vld [vmem:[%s6185_s7 + $0x90] sm:$0xff] }
 0x298   :  { %v1108_v19 = vadd.f32 %v1107_v12, %v1103_v55  ;;  %v1089_v21 = vadd.f32 %v1088_v54, %v1087_v13  ;;  %v1072_v58 = vmul.f32 %v1064_v9, %v5278_v56  ;;  %v5281_v17 = vpop.f32.mrb[7].mxu1  ;;  %1279 = vmatpush1.msra.mxu1 %v1272_v15  ;;  %v1453_v15 = vld [vmem:[%s6185_s7 + $0x98] sm:$0xff] }
 0x299   :  { %v1120_v18 = vsel %vm155_vm1, %v1104_v6, 0.0  ;;  %v1073_v20 = vmul.f32 %v1064_v9, %v5281_v17 }
 0x29a   :  { %v1121_v22 = vadd.f32 %v1120_v18, %v1119_v57  ;;  %v1077_v23 = vsel %vm1076_vm4, %v1072_v58, 0.0  ;;  %v1105_v24 = vmul.f32 %v1072_v58, %v5278_v56 }
 0x29b   :  { %v1078_v25 = vadd.f32 %v1077_v23, %v1075_v16  ;;  %v1091_v26 = vsel %vm1090_vm5, %v1073_v20, 0.0  ;;  %v1106_v27 = vmul.f32 %v1073_v20, %v5281_v17 }
 0x29c   :  { %v1109_v28 = vsel %vm1076_vm4, %v1105_v24, 0.0  ;;  %v1092_v29 = vadd.f32 %v1091_v26, %v1089_v21  ;;  %v4087_v21 = vmov 1966171168   ;;  %vm2205_vm4 = vcmask 130048  }
 0x29d   :  { %v1079_v30 = vrot.slane %v1078_v25, 4  ;;  %v1110_v31 = vadd.f32 %v1109_v28, %v1108_v19  ;;  %v1122_v32 = vsel %vm1090_vm5, %v1106_v27, 0.0  ;;  %v1246_v58 = vunpack.c.l.s4 %v4087_v21  ;;  %v1262_v28 = vld [vmem:[%s6184_s0] sm:$0x1]  ;;  %v1459_v21 = vld [vmem:[%s6185_s7 + $0xc8] sm:$0xff] }
 0x29e   :  { %v1093_v33 = vrot.slane %v1092_v29, 4  ;;  %v1123_v34 = vadd.f32 %v1122_v32, %v1121_v22  ;;  %v1434_v32 = vld [vmem:[%s6185_s7] sm:$0xff]  ;;  %vm2352_vm5 = vcmask 392192  }
 0x29f   :  { %v1080_v35 = vadd.f32 %v1079_v30, %v1078_v25  ;;  %v1111_v40 = vrot.slane %v1110_v31, 4  ;;  %v1247_v18 = vunpack.c.0.s8 %v1246_v58  ;;  %v1241_v25 = vld [vmem:[%s6183_s12] sm:$0x1] }
 0x2a0   :  { %v1094_v42 = vadd.f32 %v1093_v33, %v1092_v29  ;;  %v1124_v43 = vrot.slane %v1123_v34, 4  ;;  %v1435_v33 = vld [vmem:[%s6185_s7 + $0x8] sm:$0xff] }
 0x2a1   :  { %v1081_v44 = vrot.slane %v1080_v35, 2  ;;  %v1112_v45 = vadd.f32 %v1111_v40, %v1110_v31  ;;  %v5297_v20 = vsub.s32 %v1247_v18, %v4702_v38  ;;  %v1437_v40 = vld [vmem:[%s6185_s7 + $0x18] sm:$0xff]  ;;  %v1460_v18 = vld [vmem:[%s6185_s7 + $0xd0] sm:$0xff] }
 0x2a2   :  { %v1095_v47 = vrot.slane %v1094_v42, 2  ;;  %v1125_v48 = vadd.f32 %v1124_v43, %v1123_v34  ;;  %v1436_v34 = vld [vmem:[%s6185_s7 + $0x10] sm:$0xff]  ;;  %v1438_v43 = vld [vmem:[%s6185_s7 + $0x20] sm:$0xff] }
 0x2a3   :  { %v1082_v51 = vadd.f32 %v1081_v44, %v1080_v35  ;;  %v1113_v53 = vrot.slane %v1112_v45, 2  ;;  %v3733_v35 = vpack.c.bf16 %v1435_v33, %v1434_v32  ;;  %v1439_v44 = vld [vmem:[%s6185_s7 + $0x28] sm:$0xff] }
 0x2a4   :  { %v1126_v59 = vrot.slane %v1125_v48, 2  ;;  %v1096_v61 = vadd.f32 %v1095_v47, %v1094_v42  ;;  %v3736_v42 = vpack.c.bf16 %v1437_v40, %v1436_v34  ;;  %v1440_v47 = vld [vmem:[%s6185_s7 + $0x30] sm:$0xff] }
 0x2a5   :  { %v1114_v63 = vadd.f32 %v1113_v53, %v1112_v45  ;;  %v1083_v1 = vrot.slane %v1082_v51, 1  ;;  %v3739_v45 = vpack.c.bf16 %v1439_v44, %v1438_v43  ;;  %v1442_v53 = vld [vmem:[%s6185_s7 + $0x40] sm:$0xff] }
 0x2a6   :  { %v1097_v2 = vrot.slane %v1096_v61, 1  ;;  %v1127_v52 = vadd.f32 %v1126_v59, %v1125_v48  ;;  %v1441_v48 = vld [vmem:[%s6185_s7 + $0x38] sm:$0xff]  ;;  %v1443_v59 = vld [vmem:[%s6185_s7 + $0x48] sm:$0xff] }
 0x2a7   :  { %v1115_v3 = vrot.slane %v1114_v63, 1  ;;  %v1084_v5 = vadd.f32 %v1083_v1, %v1082_v51  ;;  %v3742_v51 = vpack.c.bf16 %v1441_v48, %v1440_v47  ;;  %v1445_v1 = vld [vmem:[%s6185_s7 + $0x58] sm:$0xff] }
 0x2a8   :  { %v1128_v4 = vrot.slane %v1127_v52, 1  ;;  %v1098_v10 = vadd.f32 %v1097_v2, %v1096_v61  ;;  %v3745_v61 = vpack.c.bf16 %v1443_v59, %v1442_v53  ;;  %v2008_v53 = vld [vmem:[%s6140_s16 + $0x8] sm:$0x3] }
 0x2a9   :  { %v1116_v8 = vadd.f32 %v1115_v3, %v1114_v63  ;;  %v1444_v63 = vld [vmem:[%s6185_s7 + $0x50] sm:$0xff]  ;;  %v1447_v3 = vld [vmem:[%s6185_s7 + $0x68] sm:$0xff] }
 0x2aa   :  { %v1129_v12 = vadd.f32 %v1128_v4, %v1127_v52  ;;  %v3748_v2 = vpack.c.bf16 %v1445_v1, %v1444_v63  ;;  %v1446_v52 = vld [vmem:[%s6185_s7 + $0x60] sm:$0xff] }
 0x2ab   :  { %v1131_v13 = vsel %vm1130_vm6, %v1084_v5, %v1116_v8  ;;  %v3751_v4 = vpack.c.bf16 %v1447_v3, %v1446_v52  ;;  %v1448_v5 = vld [vmem:[%s6185_s7 + $0x70] sm:$0xff]  ;;  %v1449_v8 = vld [vmem:[%s6185_s7 + $0x78] sm:$0xff] }
 0x2ac   :  { %v1132_v14 = vsel %vm1130_vm6, %v1098_v10, %v1129_v12  ;;  %v3754_v10 = vpack.c.bf16 %v1449_v8, %v1448_v5  ;;  %v1450_v12 = vld [vmem:[%s6185_s7 + $0x80] sm:$0xff] }
 0x2ad   :  { %3197 = vmatprep.mubr.msk.f32.mxu0 %vm155_vm1, %v1132_v14 }
 0x2ae   :  { %1229 = vmatmul.mubr.f32.vlgmr.msra.gmra.mrb[8].mxu0 %v1131_v13  ;;  %v1451_v13 = vld [vmem:[%s6185_s7 + $0x88] sm:$0xff] }
 0x2af   :  { %3734 = vmatpush1.bf16.msra.mxu0 %v3733_v35  ;;  %v3757_v14 = vpack.c.bf16 %v1451_v13, %v1450_v12 }
 0x2b0   :  { %3735 = vmatprep.subr.bf16.mxu0 %v4086_v0 }
 0x2b3   :  { %3737 = vmatpush1.bf16.msra.mxu0 %v3736_v42 }
 0x2b4   :  { %3738 = vmatprep.subr.bf16.mxu0 %v4086_v0 }
 0x2b7   :  { %3740 = vmatpush1.bf16.msra.mxu0 %v3739_v45 }
 0x2b8   :  { %3741 = vmatprep.subr.bf16.mxu0 %v4086_v0 }
 0x2bb   :  { %3743 = vmatpush1.bf16.msra.mxu0 %v3742_v51  ;;  %v2007_v51 = vld [vmem:[%s6140_s16] sm:$0xff] }
 0x2bc   :  { %3744 = vmatprep.subr.bf16.mxu0 %v4086_v0 }
 0x2bf   :  { %3746 = vmatpush1.bf16.msra.mxu0 %v3745_v61 }
 0x2c0   :  { %3747 = vmatprep.subr.bf16.mxu0 %v4086_v0 }
 0x2c3   :  { %3749 = vmatpush1.bf16.msra.mxu0 %v3748_v2 }
 0x2c4   :  { %3750 = vmatprep.subr.bf16.mxu0 %v4086_v0 }
 0x2c7   :  { %3752 = vmatpush1.bf16.msra.mxu0 %v3751_v4 }
 0x2c8   :  { %3753 = vmatprep.subr.bf16.mxu0 %v4086_v0 }
 0x2cb   :  { %3755 = vmatpush1.bf16.msra.mxu0 %v3754_v10 }
 0x2cc   :  { %3756 = vmatprep.subr.bf16.mxu0 %v4086_v0 }
 0x2cf   :  { %3758 = vmatpush1.bf16.msra.mxu0 %v3757_v14 }
 0x2d0   :  { %3759 = vmatprep.subr.bf16.mxu0 %v4086_v0 }
 0x381   :  { %v1230_v46 = vpop.f32.mrb[8].mxu0 }
 0x382   :  { %v1234_v57 = vmul.f32 0.0014880953, %v1230_v46  ;;  %v1232_v16 = vpop.f32.mrb[9].mxu0  ;;  %v3760_v46 = vpack.c.bf16 %v1453_v15, %v1452_v37 }
 0x383   :  { %v1455_v16 = vld [vmem:[%s6185_s7 + $0xa8] sm:$0xff] }
 0x384   :  { %v1235_v55 = vmul.f32 %v1234_v57, %v1234_v57  ;;  %3761 = vmatpush1.bf16.msra.mxu0 %v3760_v46 }
 0x385   :  { %3762 = vmatprep.subr.bf16.mxu0 %v4086_v0 }
 0x386   :  { %v1237_v9 = vrot.slane %v1235_v55, 7 }
 0x388   :  { %v1239_v54 = vsub.f32 %v1234_v57, %v1237_v9  ;;  %v1456_v9 = vld [vmem:[%s6185_s7 + $0xb0] sm:$0xff] }
 0x38a   :  { %v1240_v6 = vmax.f32 %v1239_v54, 0.0  ;;  %v1457_v54 = vld [vmem:[%s6185_s7 + $0xb8] sm:$0xff] }
 0x38c   :  { %v1242_v19 = vadd.f32 1e-05, %v1240_v6  ;;  %v3766_v6 = vpack.c.bf16 %v1457_v54, %v1456_v9  ;;  %v1559_v9 = vld [vmem:[%s6186_s5] sm:$0xff]  ;;  %v3207_v54 = vld [vmem:[%s6187_s4 + $0xe8] sm:$0xff] }
 0x38e   :  { %4046 = vrsqrt.f32 %v1242_v19  ;;  %v1458_v19 = vld [vmem:[%s6185_s7 + $0xc0] sm:$0xff] }
 0x38f   :  { %v3769_v58 = vpack.c.bf16 %v1459_v21, %v1458_v19  ;;  %v3206_v19 = vld [vmem:[%s6187_s4 + $0xe0] sm:$0xff] }
 0x398   :  { %v4047_v22 = vpop.eup %4046 }
 0x399   :  { %v1251_v23 = vrot.slane %v4047_v22, %v5297_v20 }
 0x39b   :  { %v1252_v24 = vcombine.high %v1251_v23, %v1251_v23 }
 0x39d   :  { %v1259_v26 = vrot.slane %v1252_v24, %v5297_v20 }
 0x39f   :  { %v1261_v27 = vmul.f32 %v1259_v26, %v1241_v25 }
 0x3a1   :  { %v1263_v29 = vmul.f32 %v1261_v27, %v1234_v57  ;;  %v1454_v57 = vld [vmem:[%s6185_s7 + $0xa0] sm:$0xff]  ;;  %s4088_s7 = smov 120  }
 0x3a2   :  { %v3763_v55 = vpack.c.bf16 %v1455_v16, %v1454_v57 }
 0x3a3   :  { %v1264_v30 = vsub.f32 %v1262_v28, %v1263_v29 }
 0x3a4   :  { %3764 = vmatpush1.bf16.msra.mxu0 %v3763_v55 }
 0x3a5   :  { %v1269_v38 = vrot.slane %v1264_v30, %v4711_v41  ;;  %3765 = vmatprep.subr.bf16.mxu0 %v4086_v0 }
 0x3a7   :  { %v1271_v31 = vsel %vm1130_vm6, %v1261_v27, %v1269_v38 }
 0x3a8   :  { %3198 = vmatmul.mubr.msk.f32.vlgmr.msra.gmra.mrb[8].mxu1 %vm1274_vm7, %v1271_v31  ;;  %3767 = vmatpush1.bf16.msra.mxu0 %v3766_v6  ;;  %v3209_v6 = vld [vmem:[%s6187_s4 + $0xf8] sm:$0xff] }
 0x3a9   :  { %3768 = vmatprep.subr.bf16.mxu0 %v4086_v0  ;;  %3346 = vmatprep.mubr.msk.f32.mxu1 %vm1580_vm10, %v1559_v9  ;;  %v3781_v21 = vpack.c.bf16 %v3209_v6, %v3207_v54  ;;  %v3231_v9 = vld [vmem:[%s6187_s4 + $0x1a8] sm:$0xff]  ;;  %v3233_v54 = vld [vmem:[%s6187_s4 + $0x1b8] sm:$0xff] }
 0x3aa   :  { %v3805_v6 = vpack.c.bf16 %v3233_v54, %v3231_v9  ;;  %v1689_v9 = vld [vmem:[%s6187_s4 + $0xb8] sm:$0xff] }
 0x3ac   :  { %3770 = vmatpush1.bf16.msra.mxu0 %v3769_v58  ;;  %v3208_v58 = vld [vmem:[%s6187_s4 + $0xf0] sm:$0xff] }
 0x3ad   :  { %1526 = vmatprep.subr.mxu0 %v4084_v7 }
 0x3b0   :  { %1527 = vmatpush1.msra.mxu0 %v1460_v18  ;;  %v3211_v18 = vld [vmem:[%s6187_s4 + $0x108] sm:$0xff] }
 0x3b1   :  { %3782 = vmatprep.subr.bf16.mxu0 %v3781_v21  ;;  %v3232_v21 = vld [vmem:[%s6187_s4 + $0x1b0] sm:$0xff] }
 0x47b   :  { %v1344_v22 = vpop.f32.mrb[8].mxu1 }
 0x47c   :  { %v1352_v23 = vrot.slane %v1344_v22, %v4711_v41  ;;  %v1346_v24 = vpop.f32.mrb[9].mxu1  ;;  %v1368_v25 = vrot.slane %v1344_v22, %v4705_v39  ;;  %v3213_v22 = vld [vmem:[%s6187_s4 + $0x118] sm:$0xff] }
 0x47d   :  { %v1356_v26 = vrot.slane %v1346_v24, %v4711_v41  ;;  %v1372_v27 = vrot.slane %v1346_v24, %v4705_v39  ;;  %v3785_v24 = vpack.c.bf16 %v3213_v22, %v3211_v18  ;;  %v1667_v18 = vld [vmem:[%s6187_s4 + $0x8] sm:$0xff]  ;;  %v1669_v22 = vld [vmem:[%s6187_s4 + $0x18] sm:$0xff] }
 0x47e   :  { %v1357_v28 = vmul.f32 %v1352_v23, %v5249_v49  ;;  %v1359_v29 = vmul.f32 %v1352_v23, %v5255_v60  ;;  %v1361_v30 = vmul.f32 %v1352_v23, %v5267_v11  ;;  %v1363_v38 = vmul.f32 %v1352_v23, %v5278_v56 }
 0x47f   :  { %v1358_v31 = vmul.f32 %v1356_v26, %v5251_v50  ;;  %v1360_v32 = vmul.f32 %v1356_v26, %v5258_v62  ;;  %v1362_v33 = vmul.f32 %v1356_v26, %v5270_v36  ;;  %v1364_v34 = vmul.f32 %v1356_v26, %v5281_v17  ;;  %v3212_v26 = vld [vmem:[%s6187_s4 + $0x110] sm:$0xff] }
 0x480   :  { %v1373_v35 = vadd.f32 %v1368_v25, %v1357_v28  ;;  %v1375_v40 = vadd.f32 %v1368_v25, %v1359_v29  ;;  %v1377_v42 = vadd.f32 %v1368_v25, %v1361_v30  ;;  %v1379_v43 = vadd.f32 %v1368_v25, %v1363_v38  ;;  %v3210_v25 = vld [vmem:[%s6187_s4 + $0x100] sm:$0xff]  ;;  %v3217_v28 = vld [vmem:[%s6187_s4 + $0x138] sm:$0xff] }
 0x481   :  { %v1374_v44 = vadd.f32 %v1372_v27, %v1358_v31  ;;  %v1376_v49 = vadd.f32 %v1372_v27, %v1360_v32  ;;  %v1378_v45 = vadd.f32 %v1372_v27, %v1362_v33  ;;  %v1380_v60 = vadd.f32 %v1372_v27, %v1364_v34  ;;  %v3215_v27 = vld [vmem:[%s6187_s4 + $0x128] sm:$0xff]  ;;  %v3214_v38 = vld [vmem:[%s6187_s4 + $0x120] sm:$0xff]  ;;  %v3216_v31 = vld [vmem:[%s6187_s4 + $0x130] sm:$0xff] }
 0x482   :  { %v1381_v47 = vmax.f32 %v1373_v35, 0.0  ;;  %v1383_v50 = vmax.f32 %v1375_v40, 0.0  ;;  %v1385_v62 = vmax.f32 %v1377_v42, 0.0  ;;  %v1387_v17 = vmax.f32 %v1379_v43, 0.0  ;;  %v3219_v32 = vld [vmem:[%s6187_s4 + $0x148] sm:$0xff]  ;;  %v3221_v33 = vld [vmem:[%s6187_s4 + $0x158] sm:$0xff] }
 0x483   :  { %v1382_v11 = vmax.f32 %v1374_v44, 0.0  ;;  %v1384_v56 = vmax.f32 %v1376_v49, 0.0  ;;  %v1386_v36 = vmax.f32 %v1378_v45, 0.0  ;;  %v1388_v48 = vmax.f32 %v1380_v60, 0.0  ;;  %v3218_v40 = vld [vmem:[%s6187_s4 + $0x140] sm:$0xff]  ;;  %v3220_v42 = vld [vmem:[%s6187_s4 + $0x150] sm:$0xff] }
 0x484   :  { %1397 = vrot.lane.b32.xlu0 %v1381_v47, %s4088_s7  ;;  %v3783_v23 = vpack.c.bf16 %v3208_v58, %v3206_v19  ;;  %v3787_v29 = vpack.c.bf16 %v3212_v26, %v3210_v25  ;;  %v3789_v30 = vpack.c.bf16 %v3217_v28, %v3215_v27  ;;  %v3791_v34 = vpack.c.bf16 %v3216_v31, %v3214_v38  ;;  %v3223_v43 = vld [vmem:[%s6187_s4 + $0x168] sm:$0xff]  ;;  %v3225_v44 = vld [vmem:[%s6187_s4 + $0x178] sm:$0xff]  ;;  %v3222_v60 = vld [vmem:[%s6187_s4 + $0x160] sm:$0xff] }
 0x485   :  { %1399 = vrot.lane.b32.xlu1 %v1382_v11, %s4088_s7  ;;  %v3793_v35 = vpack.c.bf16 %v3221_v33, %v3219_v32  ;;  %v3795_v49 = vpack.c.bf16 %v3220_v42, %v3218_v40  ;;  %v3797_v45 = vpack.c.bf16 %v3225_v44, %v3223_v43  ;;  %v3230_v19 = vld [vmem:[%s6187_s4 + $0x1a0] sm:$0xff]  ;;  %v1668_v44 = vld [vmem:[%s6187_s4 + $0x10] sm:$0xff] }
 0x486   :  { %v3807_v58 = vpack.c.bf16 %v3232_v21, %v3230_v19  ;;  %v1666_v43 = vld [vmem:[%s6187_s4] sm:$0xff]  ;;  %v1688_v21 = vld [vmem:[%s6187_s4 + $0xb0] sm:$0xff] }
 0x487   :  { %v1686_v19 = vld [vmem:[%s6187_s4 + $0xa0] sm:$0xff] }
 0x488   :  { %1401 = vrot.lane.b32.xlu0 %v1383_v50, %s4088_s7 }
 0x489   :  { %1403 = vrot.lane.b32.xlu1 %v1384_v56, %s4088_s7 }
 0x48c   :  { %1405 = vrot.lane.b32.xlu0 %v1385_v62, %s4088_s7 }
 0x48d   :  { %1407 = vrot.lane.b32.xlu1 %v1386_v36, %s4088_s7 }
 0x490   :  { %1409 = vrot.lane.b32.xlu0 %v1387_v17, %s4088_s7 }
 0x491   :  { %1411 = vrot.lane.b32.xlu1 %v1388_v48, %s4088_s7  ;;  %s6188_s7 = sld [smem:[#allocation17_spill]] }
 0x494   :  { %2011 = vperm.xlu0 %4044, %v2007_v51  }
 0x495   :  { %2016 = vperm.xlu1 %4045, %v2008_v53  }
 0x497   :  { %v2067_v25 = vld [vmem:[%s6188_s7 + $0x8] sm:$0xff]  ;;  %v2068_v26 = vld [vmem:[%s6188_s7 + $0x10] sm:$0xff]  ;;  %v2069_v28 = vld [vmem:[%s6188_s7 + $0x18] sm:$0xff] }
 0x498   :  { %v2071_v38 = vld [vmem:[%s6188_s7 + $0x28] sm:$0xff]  ;;  %v2072_v32 = vld [vmem:[%s6188_s7 + $0x30] sm:$0xff]  ;;  %v2073_v33 = vld [vmem:[%s6188_s7 + $0x38] sm:$0xff] }
 0x499   :  { %v2075_v40 = vld [vmem:[%s6188_s7 + $0x48] sm:$0xff] }
 0x4f6   :  { %v1398_v59 = vpop.permute.xlu0 %1397 }
 0x4f7   :  { %v1400_v61 = vpop.permute.xlu1 %1399 }
 0x4f8   :  { %v1414_v63 = vsel %vm1413_vm8, %v1398_v59, %v1400_v61  ;;  %v1427_v1 = vmax.f32 %v1382_v11, %v1400_v61  ;;  %v3227_v11 = vld [vmem:[%s6187_s4 + $0x188] sm:$0xff] }
 0x4f9   :  { %v1426_v2 = vmax.f32 %v1381_v47, %v1414_v63  ;;  %v3224_v47 = vld [vmem:[%s6187_s4 + $0x170] sm:$0xff] }
 0x4fa   :  { %v1402_v52 = vpop.permute.xlu0 %1401  ;;  %3199 = vmatprep.mubr.msk.f32.mxu0 %vm1461_vm9, %v1427_v1 }
 0x4fb   :  { %1539 = vmatmul.mubr.f32.vlgmr.msra.gmra.mrb[10].mxu0 %v1426_v2  ;;  %v1404_v3 = vpop.permute.xlu1 %1403 }
 0x4fc   :  { %v1415_v4 = vsel %vm1413_vm8, %v1402_v52, %v1404_v3  ;;  %v1429_v5 = vmax.f32 %v1384_v56, %v1404_v3  ;;  %3784 = vmatpush1.bf16.msra.mxu0 %v3783_v23  ;;  %v3799_v56 = vpack.c.bf16 %v3224_v47, %v3222_v60  ;;  %v3809_v23 = vpack.c.bf16 %v1669_v22, %v1667_v18  ;;  %v1673_v60 = vld [vmem:[%s6187_s4 + $0x38] sm:$0xff] }
 0x4fd   :  { %v1428_v8 = vmax.f32 %v1383_v50, %v1415_v4  ;;  %3786 = vmatprep.subr.bf16.mxu0 %v3785_v24  ;;  %v3229_v50 = vld [vmem:[%s6187_s4 + $0x198] sm:$0xff]  ;;  %v2066_v24 = vld [vmem:[%s6188_s7] sm:$0xff]  ;;  %v3831_v22 = vpack.c.bf16 %v1688_v21, %v1686_v19 }
 0x4fe   :  { %v1406_v10 = vpop.permute.xlu0 %1405  ;;  %3200 = vmatprep.mubr.msk.f32.mxu0 %vm1461_vm9, %v1429_v5  ;;  %v3866_v27 = vpack.c.bf16 %v2067_v25, %v2066_v24  ;;  %v1693_v18 = vld [vmem:[%s6187_s4 + $0xd8] sm:$0xff]  ;;  %v1690_v24 = vld [vmem:[%s6187_s4 + $0xc0] sm:$0xff]  ;;  %v1692_v25 = vld [vmem:[%s6187_s4 + $0xd0] sm:$0xff] }
 0x4ff   :  { %1544 = vmatmul.mubr.f32.gmra.mrb[12].mxu0 %v1428_v8  ;;  %v1408_v12 = vpop.permute.xlu1 %1407  ;;  %v2082_v21 = vld [vmem:[%s6188_s7 + $0x80] sm:$0xff] }
 0x500   :  { %v1416_v13 = vsel %vm1413_vm8, %v1406_v10, %v1408_v12  ;;  %v1431_v14 = vmax.f32 %v1386_v36, %v1408_v12  ;;  %3788 = vmatpush1.bf16.msra.mxu0 %v3787_v29  ;;  %v3226_v36 = vld [vmem:[%s6187_s4 + $0x180] sm:$0xff]  ;;  %v3869_v29 = vpack.c.bf16 %v2069_v28, %v2068_v26  ;;  %v3239_v26 = vld [vmem:[%s6187_s4 + $0x1c8] sm:$0xff]  ;;  %v3835_v28 = vpack.c.bf16 %v1692_v25, %v1690_v24 }
 0x501   :  { %v1430_v37 = vmax.f32 %v1385_v62, %v1416_v13  ;;  %3790 = vmatprep.subr.bf16.mxu0 %v3789_v30  ;;  %v3801_v62 = vpack.c.bf16 %v3229_v50, %v3227_v11  ;;  %v2070_v30 = vld [vmem:[%s6188_s7 + $0x20] sm:$0xff] }
 0x502   :  { %v1410_v15 = vpop.permute.xlu0 %1409  ;;  %3201 = vmatprep.mubr.msk.f32.mxu0 %vm1461_vm9, %v1431_v14  ;;  %v3872_v31 = vpack.c.bf16 %v2071_v38, %v2070_v30  ;;  %v3238_v30 = vld [vmem:[%s6187_s4 + $0x1c0] sm:$0xff]  ;;  %v3240_v38 = vld [vmem:[%s6187_s4 + $0x1d0] sm:$0xff] }
 0x503   :  { %1549 = vmatmul.mubr.f32.gmra.mrb[14].mxu0 %v1430_v37  ;;  %v1412_v46 = vpop.permute.xlu1 %1411  ;;  %v2086_v25 = vld [vmem:[%s6188_s7 + $0xa0] sm:$0xff] }
 0x504   :  { %v1417_v57 = vsel %vm1413_vm8, %v1410_v15, %v1412_v46  ;;  %v1433_v16 = vmax.f32 %v1388_v48, %v1412_v46  ;;  %3792 = vmatpush1.bf16.msra.mxu0 %v3791_v34  ;;  %v3875_v34 = vpack.c.bf16 %v2073_v33, %v2072_v32  ;;  %v3245_v32 = vld [vmem:[%s6187_s4 + $0x1f8] sm:$0xff]  ;;  %v3839_v33 = vpack.c.bf16 %v3240_v38, %v3238_v30 }
 0x505   :  { %v1432_v55 = vmax.f32 %v1387_v17, %v1417_v57  ;;  %3794 = vmatprep.subr.bf16.mxu0 %v3793_v35  ;;  %v3228_v17 = vld [vmem:[%s6187_s4 + $0x190] sm:$0xff]  ;;  %v2074_v35 = vld [vmem:[%s6188_s7 + $0x40] sm:$0xff]  ;;  %vm4091_vm8 = vmmov 0  }
 0x506   :  { %3202 = vmatprep.mubr.msk.f32.mxu0 %vm1461_vm9, %v1433_v16  ;;  %v3803_v48 = vpack.c.bf16 %v3228_v17, %v3226_v36  ;;  %v3878_v42 = vpack.c.bf16 %v2075_v40, %v2074_v35  ;;  %v3811_v36 = vpack.c.bf16 %v1668_v44, %v1666_v43  ;;  %v3242_v35 = vld [vmem:[%s6187_s4 + $0x1e0] sm:$0xff]  ;;  %v3244_v40 = vld [vmem:[%s6187_s4 + $0x1f0] sm:$0xff]  ;;  %v3249_v43 = vld [vmem:[%s6187_s4 + $0x218] sm:$0xff]  ;;  %vm2820_vm9 = vcmask 58368  }
 0x507   :  { %1554 = vmatmul.mubr.f32.gmra.mrb[16].mxu0 %v1432_v55  ;;  %v1560_v55 = vld [vmem:[%s6186_s5 + $0x8] sm:$0xf]  ;;  %v3843_v44 = vpack.c.bf16 %v3244_v40, %v3242_v35 }
 0x508   :  { %1796 = vmatprep.mubr.f32.mxu0 %v4084_v7  ;;  %3796 = vmatpush1.bf16.msra.mxu0 %v3795_v49 }
 0x509   :  { %3798 = vmatprep.subr.bf16.mxu0 %v3797_v45  ;;  %v1671_v45 = vld [vmem:[%s6187_s4 + $0x28] sm:$0xff] }
 0x50a   :  { %v3813_v17 = vpack.c.bf16 %v1673_v60, %v1671_v45  ;;  %v3246_v60 = vld [vmem:[%s6187_s4 + $0x200] sm:$0xff] }
 0x50c   :  { %3800 = vmatpush1.bf16.msra.mxu0 %v3799_v56 }
 0x50d   :  { %3802 = vmatprep.subr.bf16.mxu0 %v3801_v62 }
 0x510   :  { %3804 = vmatpush1.bf16.msra.mxu0 %v3803_v48  ;;  %v1670_v48 = vld [vmem:[%s6187_s4 + $0x20] sm:$0xff] }
 0x511   :  { %3806 = vmatprep.subr.bf16.mxu0 %v3805_v6 }
 0x514   :  { %3808 = vmatpush1.bf16.msra.mxu0 %v3807_v58  ;;  %v1691_v58 = vld [vmem:[%s6187_s4 + $0xc8] sm:$0xff]  ;;  %v2017_v35 = vpop.permute.xlu1 %2016 }
 0x515   :  { %3810 = vmatprep.subr.bf16.mxu0 %v3809_v23  ;;  %v3833_v23 = vpack.c.bf16 %v1693_v18, %v1691_v58  ;;  %v2083_v58 = vld [vmem:[%s6188_s7 + $0x88] sm:$0xff] }
 0x516   :  { %v3890_v18 = vpack.c.bf16 %v2083_v58, %v2082_v21 }
 0x5ce   :  { %v1540_v51 = vpop.f32.mrb[10].mxu0 }
 0x5cf   :  { %v1542_v53 = vpop.f32.mrb[11].mxu0  ;;  %v1565_v61 = vrot.slane %v1540_v51, 1 }
 0x5d2   :  { %v1545_v59 = vpop.f32.mrb[12].mxu0 }
 0x5d3   :  { %v1566_v63 = vrot.slane %v1545_v59, 1  ;;  %v1547_v1 = vpop.f32.mrb[13].mxu0 }
 0x5d5   :  { %v1567_v2 = vsel %vm147_vm0, %v1565_v61, %v1566_v63  ;;  %v1675_v61 = vld [vmem:[%s6187_s4 + $0x48] sm:$0xff] }
 0x5d6   :  { %v1550_v52 = vpop.f32.mrb[14].mxu0  ;;  %v1576_v3 = vmax.f32 %v1540_v51, %v1567_v2  ;;  %v1672_v51 = vld [vmem:[%s6187_s4 + $0x30] sm:$0xff] }
 0x5d7   :  { %v1568_v4 = vrot.slane %v1550_v52, 1  ;;  %v1552_v5 = vpop.f32.mrb[15].mxu0  ;;  %v3815_v1 = vpack.c.bf16 %v1672_v51, %v1670_v48  ;;  %v3252_v48 = vld [vmem:[%s6187_s4 + $0x230] sm:$0xff]  ;;  %v3255_v51 = vld [vmem:[%s6187_s4 + $0x248] sm:$0xff] }
 0x5d8   :  { %v1681_v5 = vld [vmem:[%s6187_s4 + $0x78] sm:$0xff] }
 0x5d9   :  { %v1569_v8 = vsel %vm147_vm0, %v1566_v63, %v1568_v4  ;;  %v1677_v63 = vld [vmem:[%s6187_s4 + $0x58] sm:$0xff] }
 0x5da   :  { %v1555_v10 = vpop.f32.mrb[16].mxu0  ;;  %v1577_v12 = vmax.f32 %v1545_v59, %v1569_v8  ;;  %v3817_v2 = vpack.c.bf16 %v1677_v63, %v1675_v61 }
 0x5db   :  { %v1570_v13 = vrot.slane %v1555_v10, 1  ;;  %v1557_v14 = vpop.f32.mrb[17].mxu0 }
 0x5dc   :  { %v3771_v37 = vpack.c.bf16 %v1577_v12, %v1576_v3  ;;  %v1676_v3 = vld [vmem:[%s6187_s4 + $0x50] sm:$0xff]  ;;  %v1678_v12 = vld [vmem:[%s6187_s4 + $0x60] sm:$0xff]  ;;  %v1683_v14 = vld [vmem:[%s6187_s4 + $0x88] sm:$0xff] }
 0x5dd   :  { %v1571_v15 = vsel %vm147_vm0, %v1568_v4, %v1570_v13  ;;  %v1579_v46 = vmax.f32 %v1555_v10, %v1570_v13  ;;  %v1679_v4 = vld [vmem:[%s6187_s4 + $0x68] sm:$0xff]  ;;  %v1680_v13 = vld [vmem:[%s6187_s4 + $0x70] sm:$0xff] }
 0x5de   :  { %v1578_v57 = vmax.f32 %v1550_v52, %v1571_v15  ;;  %3772 = vmatprep.subr.bf16.mxu1 %v3771_v37  ;;  %v1674_v52 = vld [vmem:[%s6187_s4 + $0x40] sm:$0xff]  ;;  %v3821_v10 = vpack.c.bf16 %v1681_v5, %v1679_v4  ;;  %v3823_v15 = vpack.c.bf16 %v1680_v13, %v1678_v12  ;;  %v3263_v12 = vld [vmem:[%s6187_s4 + $0x288] sm:$0xff]  ;;  %v3265_v13 = vld [vmem:[%s6187_s4 + $0x298] sm:$0xff] }
 0x5df   :  { %3774 = vmatpush3.bf16.msra.mxu1 %v3771_v37  ;;  %v3819_v8 = vpack.c.bf16 %v1676_v3, %v1674_v52  ;;  %v1685_v37 = vld [vmem:[%s6187_s4 + $0x98] sm:$0xff]  ;;  %v3259_v52 = vld [vmem:[%s6187_s4 + $0x268] sm:$0xff] }
 0x5e0   :  { %v3775_v16 = vpack.c.bf16 %v1579_v46, %v1578_v57  ;;  %v3825_v46 = vpack.c.bf16 %v1685_v37, %v1683_v14  ;;  %v1682_v57 = vld [vmem:[%s6187_s4 + $0x80] sm:$0xff]  ;;  %v3261_v3 = vld [vmem:[%s6187_s4 + $0x278] sm:$0xff]  ;;  %v3861_v37 = vpack.c.bf16 %v3265_v13, %v3263_v12 }
 0x5e1   :  { %v3857_v5 = vpack.c.bf16 %v3261_v3, %v3259_v52 }
 0x5e2   :  { %3777 = vmatprep.subr.msk.bf16.mxu1 %vm3776_vm13, %v3775_v16 }
 0x5e3   :  { %3780 = vmatpush3.bf16.msk.msra.mxu1 %vm3776_vm13, %v3775_v16  ;;  %v1684_v16 = vld [vmem:[%s6187_s4 + $0x90] sm:$0xff] }
 0x5e4   :  { %3865 = vmatprep.subr.bf16.mxu1 %v4086_v0  ;;  %v3827_v54 = vpack.c.bf16 %v1684_v16, %v1682_v57  ;;  %v2076_v16 = vld [vmem:[%s6188_s7 + $0x50] sm:$0xff] }
 0x5e6   :  { %3347 = vmatmul.mubr.msk.f32.vlgmr.msra.gmra.mrb[10].mxu1 %vm1580_vm10, %v1560_v55  ;;  %v1687_v55 = vld [vmem:[%s6187_s4 + $0xa8] sm:$0xff]  ;;  %vm2937_vm10 = vcmask 9216  }
 0x5e7   :  { %3867 = vmatpush1.bf16.msra.mxu1 %v3866_v27  ;;  %v3829_v6 = vpack.c.bf16 %v1689_v9, %v1687_v55  ;;  %v3241_v27 = vld [vmem:[%s6187_s4 + $0x1d8] sm:$0xff] }
 0x5e8   :  { %3868 = vmatprep.subr.bf16.mxu1 %v4086_v0  ;;  %v2077_v55 = vld [vmem:[%s6188_s7 + $0x58] sm:$0xff] }
 0x5e9   :  { %v3881_v9 = vpack.c.bf16 %v2077_v55, %v2076_v16 }
 0x5eb   :  { %3870 = vmatpush1.bf16.msra.mxu1 %v3869_v29  ;;  %v3837_v29 = vpack.c.bf16 %v3241_v27, %v3239_v26  ;;  %v2087_v26 = vld [vmem:[%s6188_s7 + $0xa8] sm:$0xff] }
 0x5ec   :  { %3871 = vmatprep.subr.bf16.mxu1 %v4086_v0  ;;  %v3896_v27 = vpack.c.bf16 %v2087_v26, %v2086_v25  ;;  %v2201_v25 = vld [vmem:[%s6137_s13] sm:$0xff]  ;;  %v2203_v26 = vld [vmem:[%s6137_s13 + $0x10] sm:$0xff] }
 0x5ef   :  { %3873 = vmatpush1.bf16.msra.mxu1 %v3872_v31  ;;  %v3243_v31 = vld [vmem:[%s6187_s4 + $0x1e8] sm:$0xff] }
 0x5f0   :  { %3874 = vmatprep.subr.bf16.mxu1 %v4086_v0 }
 0x5f3   :  { %3876 = vmatpush1.bf16.msra.mxu1 %v3875_v34  ;;  %v3841_v34 = vpack.c.bf16 %v3245_v32, %v3243_v31  ;;  %v2012_v31 = vpop.permute.xlu0 %2011 }
 0x5f4   :  { %3877 = vmatprep.subr.bf16.mxu1 %v4086_v0 }
 0x5f7   :  { %3879 = vmatpush1.bf16.msra.mxu1 %v3878_v42  ;;  %v3247_v42 = vld [vmem:[%s6187_s4 + $0x208] sm:$0xff] }
 0x5f8   :  { %3880 = vmatprep.subr.bf16.mxu1 %v4086_v0  ;;  %v3845_v45 = vpack.c.bf16 %v3249_v43, %v3247_v42 }
 0x5fb   :  { %3882 = vmatpush1.bf16.msra.mxu1 %v3881_v9 }
 0x5fc   :  { %3883 = vmatprep.subr.bf16.mxu1 %v4086_v0 }
 0x6b9   :  { %v5575_v49 = vpop.f32.mrb[10].mxu1 }
 0x6ba   :  { %v1726_v47 = vrot.slane %v5575_v49, 1  ;;  %v1920_v11 = vrot.slane %v5575_v49, 2  ;;  %v5585_v50 = vpop.f32.mrb[11].mxu1 }
 0x6bb   :  { %v1725_v56 = vrot.slane %v5585_v50, 1  ;;  %v1919_v62 = vrot.slane %v5585_v50, 2 }
 0x6bd   :  { %v1727_v53 = vsel %vm147_vm0, %v1725_v56, %v1726_v47  ;;  %v5599_v59 = vsel %vm375_vm2, %v1919_v62, %v1920_v11  ;;  %v3251_v56 = vld [vmem:[%s6187_s4 + $0x228] sm:$0xff]  ;;  %vm2032_vm2 = vcmask 523264  }
 0x6be   :  { %3234 = vmatmul.mubr.msk.f32.vlgmr.msra.gmra.mrb[18].mxu0 %vm663_vm3, %v1727_v53  ;;  %v3257_v53 = vld [vmem:[%s6187_s4 + $0x258] sm:$0xff] }
 0x6bf   :  { %3812 = vmatpush1.bf16.msra.mxu0 %v3811_v36  ;;  %1802 = vmatprep.mubr.f32.mxu0 %v4084_v7  ;;  %v3853_v63 = vpack.c.bf16 %v3257_v53, %v3255_v51 }
 0x6c0   :  { %3814 = vmatprep.subr.bf16.mxu0 %v3813_v17  ;;  %v3250_v17 = vld [vmem:[%s6187_s4 + $0x220] sm:$0xff] }
 0x6c1   :  { %v3851_v61 = vpack.c.bf16 %v3252_v48, %v3250_v17 }
 0x6c2   :  { %3235 = vmatmul.mubr.msk.f32.gmra.mrb[20].mxu0 %vm663_vm3, %v1726_v47  ;;  %v3248_v47 = vld [vmem:[%s6187_s4 + $0x210] sm:$0xff] }
 0x6c3   :  { %3816 = vmatpush1.bf16.msra.mxu0 %v3815_v1  ;;  %1877 = vmatprep.mubr.f32.mxu0 %v4084_v7  ;;  %v3847_v62 = vpack.c.bf16 %v3248_v47, %v3246_v60  ;;  %v3254_v1 = vld [vmem:[%s6187_s4 + $0x240] sm:$0xff] }
 0x6c4   :  { %3818 = vmatprep.subr.bf16.mxu0 %v3817_v2  ;;  %v3256_v2 = vld [vmem:[%s6187_s4 + $0x250] sm:$0xff] }
 0x6c5   :  { %v3855_v4 = vpack.c.bf16 %v3256_v2, %v3254_v1 }
 0x6c7   :  { %3820 = vmatpush1.bf16.msra.mxu0 %v3819_v8  ;;  %v3258_v8 = vld [vmem:[%s6187_s4 + $0x260] sm:$0xff] }
 0x6c8   :  { %3822 = vmatprep.subr.bf16.mxu0 %v3821_v10  ;;  %v3260_v10 = vld [vmem:[%s6187_s4 + $0x270] sm:$0xff] }
 0x6c9   :  { %v3859_v14 = vpack.c.bf16 %v3260_v10, %v3258_v8 }
 0x6cb   :  { %3824 = vmatpush1.bf16.msra.mxu0 %v3823_v15  ;;  %v3262_v15 = vld [vmem:[%s6187_s4 + $0x280] sm:$0xff] }
 0x6cc   :  { %3826 = vmatprep.subr.bf16.mxu0 %v3825_v46  ;;  %v3264_v46 = vld [vmem:[%s6187_s4 + $0x290] sm:$0xff] }
 0x6cd   :  { %v3863_v57 = vpack.c.bf16 %v3264_v46, %v3262_v15 }
 0x6cf   :  { %3828 = vmatpush1.bf16.msra.mxu0 %v3827_v54  ;;  %v2080_v54 = vld [vmem:[%s6188_s7 + $0x70] sm:$0xff] }
 0x6d0   :  { %3830 = vmatprep.subr.bf16.mxu0 %v3829_v6  ;;  %v2081_v6 = vld [vmem:[%s6188_s7 + $0x78] sm:$0xff] }
 0x6d1   :  { %v3887_v19 = vpack.c.bf16 %v2081_v6, %v2080_v54 }
 0x6d3   :  { %3832 = vmatpush1.bf16.msra.mxu0 %v3831_v22  ;;  %v2084_v22 = vld [vmem:[%s6188_s7 + $0x90] sm:$0xff] }
 0x6d4   :  { %3834 = vmatprep.subr.bf16.mxu0 %v3833_v23  ;;  %v2085_v23 = vld [vmem:[%s6188_s7 + $0x98] sm:$0xff] }
 0x6d5   :  { %v3893_v24 = vpack.c.bf16 %v2085_v23, %v2084_v22  ;;  %v2202_v22 = vld [vmem:[%s6137_s13 + $0x8] sm:$0xff]  ;;  %v2204_v23 = vld [vmem:[%s6137_s13 + $0x18] sm:$0xff] }
 0x6d7   :  { %3836 = vmatpush1.bf16.msra.mxu0 %v3835_v28  ;;  %v2088_v28 = vld [vmem:[%s6188_s7 + $0xb0] sm:$0xff] }
 0x6d8   :  { %3838 = vmatprep.subr.bf16.mxu0 %v3837_v29  ;;  %v2089_v29 = vld [vmem:[%s6188_s7 + $0xb8] sm:$0xff] }
 0x6d9   :  { %v3899_v30 = vpack.c.bf16 %v2089_v29, %v2088_v28 }
 0x6da   :  { %3236 = vmatmul.mubr.msk.f32.vlgmr.msra.gmra.mrb[18].mxu0 %vm663_vm3, %v5585_v50  ;;  %v3253_v50 = vld [vmem:[%s6187_s4 + $0x238] sm:$0xff] }
 0x6db   :  { %3840 = vmatpush1.bf16.msra.mxu0 %v3839_v33  ;;  %1883 = vmatprep.mubr.f32.mxu0 %v4084_v7  ;;  %v3849_v36 = vpack.c.bf16 %v3253_v50, %v3251_v56 }
 0x6dc   :  { %3842 = vmatprep.subr.bf16.mxu0 %v3841_v34 }
 0x6de   :  { %3237 = vmatmul.mubr.msk.f32.gmra.mrb[20].mxu0 %vm663_vm3, %v5575_v49  ;;  %v2079_v49 = vld [vmem:[%s6188_s7 + $0x68] sm:$0xff] }
 0x6df   :  { %3844 = vmatpush1.bf16.msra.mxu0 %v3843_v44  ;;  %1990 = vmatprep.mubr.f32.mxu0 %v4084_v7 }
 0x6e0   :  { %3846 = vmatprep.subr.bf16.mxu0 %v3845_v45 }
 0x6e3   :  { %3848 = vmatpush1.bf16.msra.mxu0 %v3847_v62 }
 0x6e4   :  { %3850 = vmatprep.subr.bf16.mxu0 %v3849_v36 }
 0x6e7   :  { %3852 = vmatpush1.bf16.msra.mxu0 %v3851_v61 }
 0x6e8   :  { %3854 = vmatprep.subr.bf16.mxu0 %v3853_v63 }
 0x6eb   :  { %3856 = vmatpush1.bf16.msra.mxu0 %v3855_v4 }
 0x6ec   :  { %3858 = vmatprep.subr.bf16.mxu0 %v3857_v5 }
 0x6ef   :  { %3860 = vmatpush1.bf16.msra.mxu0 %v3859_v14 }
 0x6f0   :  { %3862 = vmatprep.subr.bf16.mxu0 %v3861_v37 }
 0x6f3   :  { %3864 = vmatpush1.bf16.msra.mxu0 %v3863_v57 }
 0x6f4   :  { %3938 = vmatprep.subr.bf16.mxu0 %v4086_v0 }
 0x6f6   :  { %3266 = vmatmul.mubr.msk.f32.vlgmr.msra.gmra.mrb[18].mxu0 %vm663_vm3, %v5599_v59  ;;  %v2078_v59 = vld [vmem:[%s6188_s7 + $0x60] sm:$0xff] }
 0x6f7   :  { %1996 = vmatprep.mubr.f32.mxu0 %v4084_v7 }
 0x6fa   :  { %3267 = vmatmul.mubr.msk.f32.gmra.mrb[20].mxu0 %vm663_vm3, %v1920_v11  ;;  %v3884_v11 = vpack.c.bf16 %v2079_v49, %v2078_v59 }
 0x6fb   :  { %3353 = vmatprep.mubr.msk.f32.mxu0 %vm4091_vm8, %v4084_v7 }
 0x6fc   :  { %3885 = vmatpush1.bf16.msra.mxu1 %v3884_v11 }
 0x6fd   :  { %3886 = vmatprep.subr.bf16.mxu1 %v4086_v0 }
 0x700   :  { %3888 = vmatpush1.bf16.msra.mxu1 %v3887_v19 }
 0x701   :  { %3889 = vmatprep.subr.bf16.mxu1 %v4086_v0 }
 0x704   :  { %3891 = vmatpush1.bf16.msra.mxu1 %v3890_v18 }
 0x705   :  { %3892 = vmatprep.subr.bf16.mxu1 %v4086_v0 }
 0x708   :  { %3894 = vmatpush1.bf16.msra.mxu1 %v3893_v24  ;;  %v3901_v24 = vpack.c.bf16 %v2204_v23, %v2202_v22  ;;  %v2351_v22 = vld [vmem:[%s6141_s17 + $0xa8] sm:$0xff] }
 0x709   :  { %3895 = vmatprep.subr.bf16.mxu1 %v4086_v0 }
 0x70c   :  { %3897 = vmatpush1.bf16.msra.mxu1 %v3896_v27  ;;  %v3903_v27 = vpack.c.bf16 %v2203_v26, %v2201_v25 }
 0x70d   :  { %3898 = vmatprep.subr.bf16.mxu1 %v4086_v0 }
 0x710   :  { %3900 = vmatpush1.bf16.msra.mxu1 %v3899_v30 }
 0x711   :  { %3902 = vmatprep.subr.bf16.mxu1 %v3901_v24 }
 0x7c9   :  { %v5810_v38 = vpop.f32.mrb[18].mxu0 }
 0x7ca   :  { %v5812_v32 = vpop.f32.mrb[19].mxu0  ;;  %v2019_v34 = vmul.f32 %v2012_v31, %v5810_v38 }
 0x7cb   :  { %v2020_v33 = vmul.f32 %v2012_v31, %v5812_v32 }
 0x7cc   :  { %v2043_v60 = vmul.f32 %v2019_v34, %v5810_v38 }
 0x7cd   :  { %v5816_v40 = vpop.f32.mrb[20].mxu0  ;;  %v2044_v44 = vmul.f32 %v2020_v33, %v5812_v32  ;;  %v2033_v17 = vsel %vm2032_vm2, %v2020_v33, 0.0 }
 0x7ce   :  { %v2021_v42 = vmul.f32 %v2017_v35, %v5816_v40  ;;  %v5819_v43 = vpop.f32.mrb[21].mxu0 }
 0x7cf   :  { %v2022_v45 = vmul.f32 %v2017_v35, %v5819_v43  ;;  %v2055_v1 = vsel %vm2032_vm2, %v2044_v44, 0.0 }
 0x7d0   :  { %v2024_v47 = vsel %vm2023_vm14, %v2021_v42, 0.0  ;;  %v2045_v56 = vmul.f32 %v2021_v42, %v5816_v40 }
 0x7d1   :  { %v2025_v50 = vadd.f32 %v2024_v47, %v2019_v34  ;;  %v2035_v62 = vsel %vm2034_vm15, %v2022_v45, 0.0  ;;  %v2046_v36 = vmul.f32 %v2022_v45, %v5819_v43  ;;  %v2170_v47 = vld [vmem:[%s6138_s14] sm:$0x1] }
 0x7d2   :  { %v2047_v48 = vsel %vm2023_vm14, %v2045_v56, 0.0  ;;  %v2036_v51 = vadd.f32 %v2035_v62, %v2033_v17  ;;  %v2191_v62 = vld [vmem:[%s6139_s15] sm:$0x1] }
 0x7d3   :  { %v2026_v53 = vrot.slane %v2025_v50, 4  ;;  %v2048_v61 = vadd.f32 %v2047_v48, %v2043_v60  ;;  %v2056_v63 = vsel %vm2034_vm15, %v2046_v36, 0.0 }
 0x7d4   :  { %v2037_v2 = vrot.slane %v2036_v51, 4  ;;  %v2057_v52 = vadd.f32 %v2056_v63, %v2055_v1  ;;  %v2333_v1 = vld [vmem:[%s6141_s17 + $0x18] sm:$0xff] }
 0x7d5   :  { %v2027_v3 = vadd.f32 %v2026_v53, %v2025_v50  ;;  %v2049_v4 = vrot.slane %v2048_v61, 4  ;;  %v2330_v53 = vld [vmem:[%s6141_s17] sm:$0xff] }
 0x7d6   :  { %v2038_v5 = vadd.f32 %v2037_v2, %v2036_v51  ;;  %v2058_v8 = vrot.slane %v2057_v52, 4 }
 0x7d7   :  { %v2028_v10 = vrot.slane %v2027_v3, 2  ;;  %v2050_v12 = vadd.f32 %v2049_v4, %v2048_v61  ;;  %v2332_v61 = vld [vmem:[%s6141_s17 + $0x10] sm:$0xff] }
 0x7d8   :  { %v2039_v13 = vrot.slane %v2038_v5, 2  ;;  %v2059_v14 = vadd.f32 %v2058_v8, %v2057_v52  ;;  %v3909_v2 = vpack.c.bf16 %v2333_v1, %v2332_v61  ;;  %v2334_v52 = vld [vmem:[%s6141_s17 + $0x20] sm:$0xff]  ;;  %v2337_v8 = vld [vmem:[%s6141_s17 + $0x38] sm:$0xff] }
 0x7d9   :  { %v2051_v37 = vrot.slane %v2050_v12, 2  ;;  %v2029_v15 = vadd.f32 %v2028_v10, %v2027_v3  ;;  %v2335_v3 = vld [vmem:[%s6141_s17 + $0x28] sm:$0xff] }
 0x7da   :  { %v2040_v46 = vadd.f32 %v2039_v13, %v2038_v5  ;;  %v2060_v57 = vrot.slane %v2059_v14, 2  ;;  %v3912_v4 = vpack.c.bf16 %v2335_v3, %v2334_v52  ;;  %v2336_v5 = vld [vmem:[%s6141_s17 + $0x30] sm:$0xff]  ;;  %v2339_v13 = vld [vmem:[%s6141_s17 + $0x48] sm:$0xff] }
 0x7db   :  { %v2030_v16 = vrot.slane %v2029_v15, 1  ;;  %v2052_v55 = vadd.f32 %v2051_v37, %v2050_v12  ;;  %v3915_v10 = vpack.c.bf16 %v2337_v8, %v2336_v5  ;;  %v2338_v12 = vld [vmem:[%s6141_s17 + $0x40] sm:$0xff]  ;;  %v2340_v37 = vld [vmem:[%s6141_s17 + $0x50] sm:$0xff]  ;;  %v3275_v8 = vld [vmem:[%s6143_s19 + $0x68] sm:$0xff] }
 0x7dc   :  { %v2041_v9 = vrot.slane %v2040_v46, 1  ;;  %v2061_v59 = vadd.f32 %v2060_v57, %v2059_v14  ;;  %v3918_v14 = vpack.c.bf16 %v2339_v13, %v2338_v12  ;;  %v2342_v57 = vld [vmem:[%s6141_s17 + $0x60] sm:$0xff] }
 0x7dd   :  { %v2053_v49 = vrot.slane %v2052_v55, 1  ;;  %v2031_v54 = vadd.f32 %v2030_v16, %v2029_v15  ;;  %v2341_v15 = vld [vmem:[%s6141_s17 + $0x58] sm:$0xff]  ;;  %v2343_v16 = vld [vmem:[%s6141_s17 + $0x68] sm:$0xff]  ;;  %v3274_v5 = vld [vmem:[%s6143_s19 + $0x60] sm:$0xff] }
 0x7de   :  { %v2062_v11 = vrot.slane %v2061_v59, 1  ;;  %v2042_v19 = vadd.f32 %v2041_v9, %v2040_v46  ;;  %v3921_v46 = vpack.c.bf16 %v2341_v15, %v2340_v37  ;;  %v2344_v9 = vld [vmem:[%s6141_s17 + $0x70] sm:$0xff]  ;;  %v2434_v12 = vld [vmem:[%s6142_s18] sm:$0xf]  ;;  %v3943_v13 = vpack.c.bf16 %v3275_v8, %v3274_v5  ;;  %v3277_v37 = vld [vmem:[%s6143_s19 + $0x78] sm:$0xff] }
 0x7df   :  { %v2054_v6 = vadd.f32 %v2053_v49, %v2052_v55  ;;  %v3924_v55 = vpack.c.bf16 %v2343_v16, %v2342_v57  ;;  %v3279_v57 = vld [vmem:[%s6143_s19 + $0x88] sm:$0xff] }
 0x7e0   :  { %v2063_v21 = vadd.f32 %v2062_v11, %v2061_v59  ;;  %v2345_v59 = vld [vmem:[%s6141_s17 + $0x78] sm:$0xff]  ;;  %v2346_v11 = vld [vmem:[%s6141_s17 + $0x80] sm:$0xff] }
 0x7e1   :  { %v2064_v58 = vsel %vm1130_vm6, %v2031_v54, %v2054_v6  ;;  %v3927_v49 = vpack.c.bf16 %v2345_v59, %v2344_v9  ;;  %v2347_v54 = vld [vmem:[%s6141_s17 + $0x88] sm:$0xff]  ;;  %v3281_v9 = vld [vmem:[%s6143_s19 + $0x98] sm:$0xff] }
 0x7e2   :  { %v2065_v18 = vsel %vm1130_vm6, %v2042_v19, %v2063_v21  ;;  %v3930_v6 = vpack.c.bf16 %v2347_v54, %v2346_v11  ;;  %v2348_v19 = vld [vmem:[%s6141_s17 + $0x90] sm:$0xff]  ;;  %v2349_v21 = vld [vmem:[%s6141_s17 + $0x98] sm:$0xff]  ;;  %v3283_v11 = vld [vmem:[%s6143_s19 + $0xa8] sm:$0xff] }
 0x7e3   :  { %3268 = vmatprep.mubr.msk.f32.mxu1 %vm2032_vm2, %v2065_v18  ;;  %v2350_v18 = vld [vmem:[%s6141_s17 + $0xa0] sm:$0xff] }
 0x7e4   :  { %2158 = vmatmul.mubr.f32.vlgmr.msra.gmra.mrb[12].mxu1 %v2064_v58  ;;  %v3933_v58 = vpack.c.bf16 %v2349_v21, %v2348_v19  ;;  %v3936_v23 = vpack.c.bf16 %v2351_v22, %v2350_v18  ;;  %v3285_v19 = vld [vmem:[%s6143_s19 + $0xb8] sm:$0xff]  ;;  %v2522_v18 = vld [vmem:[%s6143_s19 + $0x8] sm:$0xff] }
 0x7e5   :  { %2273 = vmatprep.mubr.f32.mxu1 %v4084_v7  ;;  %3904 = vmatpush1.bf16.msra.mxu1 %v3903_v27 }
 0x7e6   :  { %3905 = vmatprep.subr.bf16.mxu1 %v4086_v0 }
 0x8b7   :  { %v2159_v28 = vpop.f32.mrb[12].mxu1 }
 0x8b8   :  { %v2163_v29 = vmul.f32 0.010416667, %v2159_v28  ;;  %v2161_v30 = vpop.f32.mrb[13].mxu1 }
 0x8ba   :  { %v2164_v31 = vmul.f32 %v2163_v29, %v2163_v29 }
 0x8bc   :  { %v2166_v33 = vrot.slane %v2164_v31, 7 }
 0x8be   :  { %v2168_v34 = vsub.f32 %v2163_v29, %v2166_v33 }
 0x8c0   :  { %v2169_v35 = vmax.f32 %v2168_v34, 0.0 }
 0x8c2   :  { %v2171_v42 = vadd.f32 1e-05, %v2169_v35 }
 0x8c4   :  { %4048 = vrsqrt.f32 %v2171_v42 }
 0x8ce   :  { %v4049_v44 = vpop.eup %4048 }
 0x8cf   :  { %v2180_v45 = vrot.slane %v4049_v44, %v5297_v20 }
 0x8d1   :  { %v2181_v60 = vcombine.high %v2180_v45, %v2180_v45 }
 0x8d3   :  { %v2188_v56 = vrot.slane %v2181_v60, %v5297_v20  ;;  %v2331_v20 = vld [vmem:[%s6141_s17 + $0x8] sm:$0xff]  ;;  %s4090_s17 = smov 112  }
 0x8d4   :  { %v3906_v63 = vpack.c.bf16 %v2331_v20, %v2330_v53 }
 0x8d5   :  { %v2190_v50 = vmul.f32 %v2188_v56, %v2170_v47 }
 0x8d7   :  { %v2192_v36 = vmul.f32 %v2190_v50, %v2163_v29 }
 0x8d9   :  { %v2193_v17 = vsub.f32 %v2191_v62, %v2192_v36 }
 0x8db   :  { %v2198_v48 = vrot.slane %v2193_v17, %v4711_v41 }
 0x8dd   :  { %v2200_v51 = vsel %vm1130_vm6, %v2190_v50, %v2198_v48 }
 0x8de   :  { %3269 = vmatmul.mubr.msk.f32.vlgmr.msra.gmra.mrb[14].mxu1 %vm2205_vm4, %v2200_v51 }
 0x8df   :  { %3907 = vmatpush1.bf16.msra.mxu1 %v3906_v63 }
 0x8e0   :  { %3908 = vmatprep.subr.bf16.mxu1 %v4086_v0 }
 0x8e3   :  { %3910 = vmatpush1.bf16.msra.mxu1 %v3909_v2 }
 0x8e4   :  { %3911 = vmatprep.subr.bf16.mxu1 %v4086_v0 }
 0x8e7   :  { %3913 = vmatpush1.bf16.msra.mxu1 %v3912_v4 }
 0x8e8   :  { %3914 = vmatprep.subr.bf16.mxu1 %v4086_v0 }
 0x8eb   :  { %3916 = vmatpush1.bf16.msra.mxu1 %v3915_v10 }
 0x8ec   :  { %3917 = vmatprep.subr.bf16.mxu1 %v4086_v0 }
 0x8ef   :  { %3919 = vmatpush1.bf16.msra.mxu1 %v3918_v14  ;;  %v3276_v14 = vld [vmem:[%s6143_s19 + $0x70] sm:$0xff] }
 0x8f0   :  { %3920 = vmatprep.subr.bf16.mxu1 %v4086_v0  ;;  %v3946_v15 = vpack.c.bf16 %v3277_v37, %v3276_v14 }
 0x8f3   :  { %3922 = vmatpush1.bf16.msra.mxu1 %v3921_v46  ;;  %v3278_v46 = vld [vmem:[%s6143_s19 + $0x80] sm:$0xff] }
 0x8f4   :  { %3923 = vmatprep.subr.bf16.mxu1 %v4086_v0  ;;  %v3949_v16 = vpack.c.bf16 %v3279_v57, %v3278_v46 }
 0x8f7   :  { %3925 = vmatpush1.bf16.msra.mxu1 %v3924_v55  ;;  %v3280_v55 = vld [vmem:[%s6143_s19 + $0x90] sm:$0xff] }
 0x8f8   :  { %3926 = vmatprep.subr.bf16.mxu1 %v4086_v0  ;;  %v3952_v59 = vpack.c.bf16 %v3281_v9, %v3280_v55 }
 0x8fb   :  { %3928 = vmatpush1.bf16.msra.mxu1 %v3927_v49  ;;  %v3282_v49 = vld [vmem:[%s6143_s19 + $0xa0] sm:$0xff] }
 0x8fc   :  { %3929 = vmatprep.subr.bf16.mxu1 %v4086_v0  ;;  %v3955_v54 = vpack.c.bf16 %v3283_v11, %v3282_v49 }
 0x8ff   :  { %3931 = vmatpush1.bf16.msra.mxu1 %v3930_v6  ;;  %v3284_v6 = vld [vmem:[%s6143_s19 + $0xb0] sm:$0xff] }
 0x900   :  { %3932 = vmatprep.subr.bf16.mxu1 %v4086_v0  ;;  %v3958_v21 = vpack.c.bf16 %v3285_v19, %v3284_v6  ;;  %v2714_v6 = vld [vmem:[%s6144_s20] sm:$0x1] }
 0x903   :  { %3934 = vmatpush1.bf16.msra.mxu1 %v3933_v58  ;;  %v2521_v58 = vld [vmem:[%s6143_s19] sm:$0xff] }
 0x904   :  { %3935 = vmatprep.subr.bf16.mxu1 %v4086_v0 }
 0x907   :  { %3937 = vmatpush1.bf16.msra.mxu1 %v3936_v23  ;;  %v3961_v23 = vpack.c.bf16 %v2522_v18, %v2521_v58  ;;  %v2725_v58 = vld [vmem:[%s6145_s21] sm:$0x1] }
 0x908   :  { %3978 = vmatprep.subr.bf16.mxu1 %v4086_v0 }
 0x9b1   :  { %v2275_v24 = vpop.f32.mrb[14].mxu1 }
 0x9b2   :  { %v2283_v25 = vrot.slane %v2275_v24, %v4711_v41  ;;  %v2277_v26 = vpop.f32.mrb[15].mxu1  ;;  %v2295_v30 = vrot.slane %v2275_v24, %v4705_v39 }
 0x9b3   :  { %v2287_v27 = vrot.slane %v2277_v26, %v4711_v41  ;;  %v2299_v34 = vrot.slane %v2277_v26, %v4705_v39  ;;  %v2523_v26 = vld [vmem:[%s6143_s19 + $0x10] sm:$0xff] }
 0x9b4   :  { %v2288_v28 = vmul.f32 %v2283_v25, %v5810_v38  ;;  %v2290_v29 = vmul.f32 %v2283_v25, %v5816_v40 }
 0x9b5   :  { %v2289_v31 = vmul.f32 %v2287_v27, %v5812_v32  ;;  %v2291_v33 = vmul.f32 %v2287_v27, %v5819_v43  ;;  %v2524_v27 = vld [vmem:[%s6143_s19 + $0x18] sm:$0xff] }
 0x9b6   :  { %v2300_v35 = vadd.f32 %v2295_v30, %v2288_v28  ;;  %v2302_v42 = vadd.f32 %v2295_v30, %v2290_v29  ;;  %v3964_v28 = vpack.c.bf16 %v2524_v27, %v2523_v26  ;;  %v2525_v29 = vld [vmem:[%s6143_s19 + $0x20] sm:$0xff]  ;;  %v2526_v30 = vld [vmem:[%s6143_s19 + $0x28] sm:$0xff] }
 0x9b7   :  { %v2301_v44 = vadd.f32 %v2299_v34, %v2289_v31  ;;  %v2303_v45 = vadd.f32 %v2299_v34, %v2291_v33  ;;  %v3967_v31 = vpack.c.bf16 %v2526_v30, %v2525_v29  ;;  %v2527_v33 = vld [vmem:[%s6143_s19 + $0x30] sm:$0xff]  ;;  %v2528_v34 = vld [vmem:[%s6143_s19 + $0x38] sm:$0xff] }
 0x9b8   :  { %v2304_v60 = vmax.f32 %v2300_v35, 0.0  ;;  %v2306_v38 = vmax.f32 %v2302_v42, 0.0  ;;  %v3970_v35 = vpack.c.bf16 %v2528_v34, %v2527_v33  ;;  %v2529_v42 = vld [vmem:[%s6143_s19 + $0x40] sm:$0xff] }
 0x9b9   :  { %v2305_v47 = vmax.f32 %v2301_v44, 0.0  ;;  %v2307_v56 = vmax.f32 %v2303_v45, 0.0  ;;  %v2530_v44 = vld [vmem:[%s6143_s19 + $0x48] sm:$0xff] }
 0x9ba   :  { %2312 = vrot.lane.b32.xlu0 %v2304_v60, %s4090_s17  ;;  %v3973_v45 = vpack.c.bf16 %v2530_v44, %v2529_v42 }
 0x9bb   :  { %2314 = vrot.lane.b32.xlu1 %v2305_v47, %s4090_s17 }
 0x9be   :  { %2316 = vrot.lane.b32.xlu0 %v2306_v38, %s4090_s17 }
 0x9bf   :  { %2318 = vrot.lane.b32.xlu1 %v2307_v56, %s4090_s17 }
 0xa2c   :  { %v2313_v40 = vpop.permute.xlu0 %2312 }
 0xa2d   :  { %v2315_v50 = vpop.permute.xlu1 %2314 }
 0xa2e   :  { %v2320_v32 = vsel %vm663_vm3, %v2313_v40, %v2315_v50  ;;  %v2327_v43 = vmax.f32 %v2305_v47, %v2315_v50  ;;  %v2532_v47 = vld [vmem:[%s6143_s19 + $0x58] sm:$0xff]  ;;  %v2737_v40 = vld [vmem:[%s6146_s22 + $0x8] sm:$0xff] }
 0xa2f   :  { %v2326_v39 = vmax.f32 %v2304_v60, %v2320_v32  ;;  %v2531_v60 = vld [vmem:[%s6143_s19 + $0x50] sm:$0xff] }
 0xa30   :  { %v2317_v62 = vpop.permute.xlu0 %2316  ;;  %3270 = vmatprep.mubr.msk.f32.mxu1 %vm2352_vm5, %v2327_v43  ;;  %v2738_v32 = vld [vmem:[%s6146_s22 + $0x10] sm:$0xff]  ;;  %v2739_v43 = vld [vmem:[%s6146_s22 + $0x18] sm:$0xff] }
 0xa31   :  { %2424 = vmatmul.mubr.f32.vlgmr.msra.gmra.mrb[16].mxu1 %v2326_v39  ;;  %v2319_v36 = vpop.permute.xlu1 %2318  ;;  %v3982_v39 = vpack.c.bf16 %v2739_v43, %v2738_v32 }
 0xa32   :  { %v2321_v17 = vsel %vm663_vm3, %v2317_v62, %v2319_v36  ;;  %v2329_v48 = vmax.f32 %v2307_v56, %v2319_v36  ;;  %vm3940_vm3 = vmpackc.low %vm1130_vm6, %vm4089_vm12  ;;  %v2736_v56 = vld [vmem:[%s6146_s22] sm:$0xff]  ;;  %v2741_v36 = vld [vmem:[%s6146_s22 + $0x28] sm:$0xff]  ;;  %vm2746_vm6 = vcmask 654336  }
 0xa33   :  { %v2328_v51 = vmax.f32 %v2306_v38, %v2321_v17  ;;  %v3976_v38 = vpack.c.bf16 %v2532_v47, %v2531_v60  ;;  %v3979_v50 = vpack.c.bf16 %v2737_v40, %v2736_v56  ;;  %v2740_v62 = vld [vmem:[%s6146_s22 + $0x20] sm:$0xff] }
 0xa34   :  { %3271 = vmatprep.mubr.msk.f32.mxu1 %vm2352_vm5, %v2329_v48  ;;  %v3985_v17 = vpack.c.bf16 %v2741_v36, %v2740_v62  ;;  %v2742_v48 = vld [vmem:[%s6146_s22 + $0x30] sm:$0xff] }
 0xa35   :  { %2429 = vmatmul.mubr.f32.gmra.mrb[18].mxu1 %v2328_v51  ;;  %v2743_v51 = vld [vmem:[%s6146_s22 + $0x38] sm:$0xff] }
 0xa36   :  { %3430 = vmatprep.mubr.msk.f32.mxu1 %vm4091_vm8, %v4084_v7  ;;  %3980 = vmatpush3.bf16.msra.mxu1 %v3979_v50 }
 0xa37   :  { %3981 = vmatprep.subr.bf16.mxu1 %v4086_v0 }
 0xa3a   :  { %3983 = vmatpush3.bf16.msra.mxu1 %v3982_v39 }
 0xa3b   :  { %3984 = vmatprep.subr.bf16.mxu1 %v4086_v0 }
 0xa3e   :  { %3986 = vmatpush3.bf16.msra.mxu1 %v3985_v17 }
 0xa3f   :  { %3987 = vmatprep.subr.bf16.mxu1 %v4086_v0 }
 0xb04   :  { %v2425_v53 = vpop.f32.mrb[16].mxu1 }
 0xb05   :  { %v2427_v20 = vpop.f32.mrb[17].mxu1  ;;  %v2437_v63 = vrot.slane %v2425_v53, 1 }
 0xb06   :  { %v2744_v20 = vld [vmem:[%s6146_s22 + $0x40] sm:$0xff] }
 0xb08   :  { %v2430_v61 = vpop.f32.mrb[18].mxu1 }
 0xb09   :  { %v2438_v1 = vrot.slane %v2430_v61, 1  ;;  %v2432_v2 = vpop.f32.mrb[19].mxu1 }
 0xb0b   :  { %v2439_v52 = vsel %vm147_vm0, %v2437_v63, %v2438_v1  ;;  %v2443_v3 = vmax.f32 %v2430_v61, %v2438_v1  ;;  %vm2444_vm0 = vcmask 72704   ;;  %v2745_v61 = vld [vmem:[%s6146_s22 + $0x48] sm:$0xff] }
 0xb0c   :  { %v2442_v4 = vmax.f32 %v2425_v53, %v2439_v52  ;;  %v3988_v53 = vpack.c.bf16 %v2743_v51, %v2742_v48  ;;  %v3991_v63 = vpack.c.bf16 %v2745_v61, %v2744_v20  ;;  %v2841_v51 = vld [vmem:[%s6147_s23] sm:$0x1] }
 0xb0d   :  { %v2852_v61 = vld [vmem:[%s6148_s24] sm:$0x1] }
 0xb0e   :  { %v3939_v10 = vpack.c.bf16 %v2443_v3, %v2442_v4  ;;  %3989 = vmatpush3.bf16.msra.mxu1 %v3988_v53 }
 0xb0f   :  { %3990 = vmatprep.subr.bf16.mxu1 %v4086_v0 }
 0xb10   :  { %3941 = vmatpush3.bf16.msk.msra.mxu0 %vm3940_vm3, %v3939_v10 }
 0xb11   :  { %3942 = vmatprep.subr.bf16.mxu0 %v4086_v0 }
 0xb12   :  { %3992 = vmatpush3.bf16.msra.mxu1 %v3991_v63 }
 0xb13   :  { %3354 = vmatmul.mubr.msk.f32.vlgmr.msra.gmra.mrb[22].mxu0 %vm2444_vm0, %v2434_v12  ;;  %3433 = vmatprep.subr.mxu1 %v4084_v7 }
 0xb14   :  { %3944 = vmatpush3.bf16.msra.mxu0 %v3943_v13  ;;  %3380 = vmatprep.mubr.msk.f32.mxu0 %vm4091_vm8, %v4084_v7 }
 0xb15   :  { %3945 = vmatprep.subr.bf16.mxu0 %v4086_v0 }
 0xb18   :  { %3947 = vmatpush3.bf16.msra.mxu0 %v3946_v15 }
 0xb19   :  { %3948 = vmatprep.subr.bf16.mxu0 %v4086_v0 }
 0xb1c   :  { %3950 = vmatpush3.bf16.msra.mxu0 %v3949_v16 }
 0xb1d   :  { %3951 = vmatprep.subr.bf16.mxu0 %v4086_v0 }
 0xb20   :  { %3953 = vmatpush3.bf16.msra.mxu0 %v3952_v59 }
 0xb21   :  { %3954 = vmatprep.subr.bf16.mxu0 %v4086_v0 }
 0xb24   :  { %3956 = vmatpush3.bf16.msra.mxu0 %v3955_v54 }
 0xb25   :  { %3957 = vmatprep.subr.bf16.mxu0 %v4086_v0 }
 0xb28   :  { %3959 = vmatpush3.bf16.msra.mxu0 %v3958_v21 }
 0xb29   :  { %3960 = vmatprep.subr.bf16.mxu0 %v4086_v0 }
 0xbe6   :  { %v2517_v22 = vpop.f32.mrb[22].mxu0 }
 0xbe7   :  { %v2547_v24 = vrot.slane %v2517_v22, 2  ;;  %v3355_v25 = vpop.f32.mrb[23].mxu0 }
 0xbe9   :  { %3381 = vmatmul.mubr.msk.f32.vlgmr.msra.gmra.mrb[24].mxu0 %vm155_vm1, %v2547_v24 }
 0xbea   :  { %3962 = vmatpush3.bf16.msra.mxu0 %v3961_v23  ;;  %3407 = vmatprep.mubr.msk.f32.mxu0 %vm4091_vm8, %v4084_v7 }
 0xbeb   :  { %3963 = vmatprep.subr.bf16.mxu0 %v4086_v0 }
 0xbee   :  { %3965 = vmatpush3.bf16.msra.mxu0 %v3964_v28  ;;  %v2863_v28 = vld [vmem:[%s6149_s25] sm:$0xff] }
 0xbef   :  { %3966 = vmatprep.subr.bf16.mxu0 %v4086_v0 }
 0xbf2   :  { %3968 = vmatpush3.bf16.msra.mxu0 %v3967_v31 }
 0xbf3   :  { %3969 = vmatprep.subr.bf16.mxu0 %v4086_v0 }
 0xbf6   :  { %3971 = vmatpush3.bf16.msra.mxu0 %v3970_v35 }
 0xbf7   :  { %3972 = vmatprep.subr.bf16.mxu0 %v4086_v0 }
 0xbfa   :  { %3974 = vmatpush3.bf16.msra.mxu0 %v3973_v45 }
 0xbfb   :  { %3975 = vmatprep.subr.bf16.mxu0 %v4086_v0 }
 0xbfe   :  { %3977 = vmatpush3.bf16.msra.mxu0 %v3976_v38 }
 0xc01   :  { %3408 = vmatmul.mubr.msk.f32.vlgmr.msra.gmra.mrb[24].mxu0 %vm155_vm1, %v2517_v22  ;;  %vm2692_vm1 = vcmask 648192  }
 0xcd4   :  { %v2688_v1 = vpop.f32.mrb[24].mxu0 }
 0xcd5   :  { %v2693_v2 = vsel %vm2692_vm1, %v2688_v1, 0.0  ;;  %v2702_v52 = vmul.f32 %v2688_v1, %v2688_v1  ;;  %v3409_v3 = vpop.f32.mrb[25].mxu0 }
 0xcd6   :  { %v2694_v4 = vrot.slane %v2693_v2, 4 }
 0xcd7   :  { %v2703_v5 = vsel %vm2692_vm1, %v2702_v52, 0.0 }
 0xcd8   :  { %v2695_v0 = vadd.f32 %v2694_v4, %v2693_v2  ;;  %v2704_v8 = vrot.slane %v2703_v5, 4 }
 0xcda   :  { %v2696_v10 = vrot.slane %v2695_v0, 2  ;;  %v2705_v12 = vadd.f32 %v2704_v8, %v2703_v5 }
 0xcdc   :  { %v2697_v13 = vadd.f32 %v2696_v10, %v2695_v0  ;;  %v2706_v14 = vrot.slane %v2705_v12, 2 }
 0xcde   :  { %v2698_v37 = vrot.slane %v2697_v13, 1  ;;  %v2707_v15 = vadd.f32 %v2706_v14, %v2705_v12 }
 0xce0   :  { %v2699_v46 = vadd.f32 %v2698_v37, %v2697_v13  ;;  %v2708_v57 = vrot.slane %v2707_v15, 1 }
 0xce2   :  { %v2701_v16 = vmul.f32 0.5, %v2699_v46  ;;  %v2709_v55 = vadd.f32 %v2708_v57, %v2707_v15 }
 0xce4   :  { %v2710_v9 = vmul.f32 0.5, %v2709_v55  ;;  %v2711_v59 = vmul.f32 %v2701_v16, %v2701_v16 }
 0xce6   :  { %v2712_v49 = vsub.f32 %v2710_v9, %v2711_v59 }
 0xce8   :  { %v2713_v11 = vmax.f32 %v2712_v49, 0.0 }
 0xcea   :  { %v2715_v54 = vadd.f32 1e-05, %v2713_v11 }
 0xcec   :  { %4050 = vrsqrt.f32 %v2715_v54 }
 0xcf6   :  { %v4051_v19 = vpop.eup %4050 }
 0xcf7   :  { %v2717_v21 = vmul.f32 %v4051_v19, %v2714_v6 }
 0xcf9   :  { %v2722_v18 = vrot.slane %v2717_v21, %v4711_v41  ;;  %v2726_v22 = vmul.f32 %v2717_v21, %v2701_v16 }
 0xcfb   :  { %v2727_v23 = vsub.f32 %v2725_v58, %v2726_v22  ;;  %v2724_v24 = vmul.f32 %v2722_v18, %v2688_v1 }
 0xcfd   :  { %v2732_v25 = vrot.slane %v2727_v23, %v4711_v41  ;;  %v2958_v23 = vld [vmem:[%s6150_s26] sm:$0x1]  ;;  %s4092_s26 = smov [#allocation2]  }
 0xcff   :  { %v2734_v26 = vadd.f32 %v2732_v25, %v2724_v24 }
 0xd01   :  { %v2735_v27 = vmax.f32 %v2734_v26, 0.0  ;;  %v2969_v26 = vld [vmem:[%s6151_s27] sm:$0x1]  ;;  %s2997_s27 = sshll.u32 %s4092_s26, 4  ;;  %s2998_s27 = int_to_ptr.vmem [resolvable:$true] %s2997_s27 }
 0xd02   :  { %s4060_s9 = scalar_lea.vmem %s2998_s27, 32  ;;  %p4065_p1 = scmp.lt.s32.totalorder %s2998_s27, %s2998_s27 }
 0xd03   :  { %3431 = vmatmul.mubr.msk.f32.vlgmr.msra.gmra.mrb[20].mxu1 %vm2746_vm6, %v2735_v27  ;;  %p4061_p0 = scmp.ne.s32.totalorder %s2998_s27, %s4060_s9  ;;  %p4066_p2 = scmp.lt.s32.totalorder %s4060_s9, %s4060_s9 }
 0xd04   :  { %3435 = vmatprep.mubr.msk.f32.mxu1 %vm4091_vm8, %v4084_v7  ;;  %3434 = vmatpush3.msra.mxu1 %v2863_v28 }
 0xd05   :  { %p4067_p3 = por %p4066_p2, %p4065_p1 }
 0xd07   :  { %p4068_p4 = pnand %p4067_p3, %p4061_p0 }
 0xdd6   :  { %v2816_v29 = vpop.f32.mrb[20].mxu1 }
 0xdd7   :  { %v2821_v30 = vsel %vm2820_vm9, %v2816_v29, 0.0  ;;  %v2829_v31 = vmul.f32 %v2816_v29, %v2816_v29  ;;  %v3432_v33 = vpop.f32.mrb[21].mxu1 }
 0xdd8   :  { %v2822_v34 = vrot.slane %v2821_v30, 4 }
 0xdd9   :  { %v2830_v35 = vsel %vm2820_vm9, %v2829_v31, 0.0 }
 0xdda   :  { %v2823_v42 = vadd.f32 %v2822_v34, %v2821_v30  ;;  %v2831_v44 = vrot.slane %v2830_v35, 4 }
 0xddc   :  { %v2824_v45 = vrot.slane %v2823_v42, 2  ;;  %v2832_v60 = vadd.f32 %v2831_v44, %v2830_v35 }
 0xdde   :  { %v2825_v47 = vadd.f32 %v2824_v45, %v2823_v42  ;;  %v2833_v38 = vrot.slane %v2832_v60, 2 }
 0xde0   :  { %v2826_v56 = vrot.slane %v2825_v47, 1  ;;  %v2834_v7 = vadd.f32 %v2833_v38, %v2832_v60 }
 0xde2   :  { %v2827_v40 = vadd.f32 %v2826_v56, %v2825_v47  ;;  %v2835_v50 = vrot.slane %v2834_v7, 1 }
 0xde4   :  { %v2828_v32 = vmul.f32 0.5, %v2827_v40  ;;  %v2836_v43 = vadd.f32 %v2835_v50, %v2834_v7 }
 0xde6   :  { %v2837_v39 = vmul.f32 0.5, %v2836_v43  ;;  %v2838_v62 = vmul.f32 %v2828_v32, %v2828_v32 }
 0xde8   :  { %v2839_v36 = vsub.f32 %v2837_v39, %v2838_v62 }
 0xdea   :  { %v2840_v17 = vmax.f32 %v2839_v36, 0.0 }
 0xdec   :  { %v2842_v48 = vadd.f32 1e-05, %v2840_v17 }
 0xdee   :  { %4052 = vrsqrt.f32 %v2842_v48 }
 0xdf8   :  { %v4053_v53 = vpop.eup %4052 }
 0xdf9   :  { %v2844_v20 = vmul.f32 %v4053_v53, %v2841_v51 }
 0xdfb   :  { %v2849_v63 = vrot.slane %v2844_v20, %v4711_v41  ;;  %v2853_v1 = vmul.f32 %v2844_v20, %v2828_v32 }
 0xdfd   :  { %v2854_v2 = vsub.f32 %v2852_v61, %v2853_v1  ;;  %v2851_v52 = vmul.f32 %v2849_v63, %v2816_v29 }
 0xdff   :  { %v2859_v3 = vrot.slane %v2854_v2, %v4711_v41 }
 0xe01   :  { %v2861_v4 = vadd.f32 %v2859_v3, %v2851_v52 }
 0xe03   :  { %v2862_v5 = vmax.f32 %v2861_v4, 0.0 }
 0xe05   :  { %3436 = vmatmul.mubr.msk.f32.vlgmr.msra.gmra.mrb[22].mxu1 %vm1274_vm7, %v2862_v5 }
 0xed8   :  { %v2933_v0 = vpop.f32.mrb[22].mxu1 }
 0xed9   :  { %v2938_v8 = vsel %vm2937_vm10, %v2933_v0, 0.0  ;;  %v2946_v10 = vmul.f32 %v2933_v0, %v2933_v0  ;;  %v3437_v12 = vpop.f32.mrb[23].mxu1 }
 0xeda   :  { %v2939_v13 = vrot.slane %v2938_v8, 4 }
 0xedb   :  { %v2947_v14 = vsel %vm2937_vm10, %v2946_v10, 0.0 }
 0xedc   :  { %v2940_v37 = vadd.f32 %v2939_v13, %v2938_v8  ;;  %v2948_v15 = vrot.slane %v2947_v14, 4 }
 0xede   :  { %v2941_v46 = vrot.slane %v2940_v37, 2  ;;  %v2949_v57 = vadd.f32 %v2948_v15, %v2947_v14 }
 0xee0   :  { %v2942_v16 = vadd.f32 %v2941_v46, %v2940_v37  ;;  %v2950_v55 = vrot.slane %v2949_v57, 2 }
 0xee2   :  { %v2943_v9 = vrot.slane %v2942_v16, 1  ;;  %v2951_v59 = vadd.f32 %v2950_v55, %v2949_v57 }
 0xee4   :  { %v2944_v49 = vadd.f32 %v2943_v9, %v2942_v16  ;;  %v2952_v11 = vrot.slane %v2951_v59, 1 }
 0xee6   :  { %v2945_v54 = vmul.f32 0.5, %v2944_v49  ;;  %v2953_v6 = vadd.f32 %v2952_v11, %v2951_v59 }
 0xee8   :  { %v2954_v19 = vmul.f32 0.5, %v2953_v6  ;;  %v2955_v21 = vmul.f32 %v2945_v54, %v2945_v54 }
 0xeea   :  { %v2956_v58 = vsub.f32 %v2954_v19, %v2955_v21 }
 0xeec   :  { %v2957_v18 = vmax.f32 %v2956_v58, 0.0 }
 0xeee   :  { %v2959_v22 = vadd.f32 1e-05, %v2957_v18 }
 0xef0   :  { %4054 = vrsqrt.f32 %v2959_v22 }
 0xefa   :  { %v4055_v24 = vpop.eup %4054 }
 0xefb   :  { %v2961_v25 = vmul.f32 %v4055_v24, %v2958_v23 }
 0xefd   :  { %v2966_v27 = vrot.slane %v2961_v25, %v4711_v41  ;;  %v2970_v28 = vmul.f32 %v2961_v25, %v2945_v54 }
 0xeff   :  { %v2971_v29 = vsub.f32 %v2969_v26, %v2970_v28  ;;  %v2968_v30 = vmul.f32 %v2966_v27, %v2933_v0 }
 0xf01   :  { %v2976_v31 = vrot.slane %v2971_v29, %v4711_v41 }
 0xf03   :  { %v2978_v33 = vadd.f32 %v2976_v31, %v2968_v30 }
 0xf05   :  { %v2979_v34 = vsel %vm2937_vm10, %v2978_v33, -inf }
 0xf06   :  { %2980 = vmax.xlane.f32.xlu0 %v2979_v34 }
 0xf93   :  { %v2981_v35 = vpop.xlane.xlu0 %2980 }
 0xf94   :  { %v2982_v42 = vsub.f32 %v2978_v33, %v2981_v35 }
 0xf96   :  { %v2983_v44 = vmul.f32 1.442695, %v2982_v42 }
 0xf98   :  { %4056 = vpow2.f32 %v2983_v44 }
 0xfa2   :  { %v4057_v45 = vpop.eup %4056 }
 0xfa3   :  { %v2985_v60 = vsel %vm2937_vm10, %v4057_v45, 0.0 }
 0xfa4   :  { %2986 = vadd.xlane.f32.xlu1 %v2985_v60 }
0x1031   :  { %v2987_v47 = vpop.xlane.xlu1 %2986 }
0x1032   :  { %4058 = vrcp.f32 %v2987_v47 }
0x103c   :  { %v4059_v38 = vpop.eup %4058 }
0x103d   :  { %v2989_v56 = vmul.f32 %v4059_v38, %v4057_v45 }
0x103f   :  { %2990 = vst.msk [vmem:[#allocation2] sm:$0x3] %vm2937_vm10, %v2989_v56 }
0x1040   :  { %4071 = shalt.err (!%p4068_p4)
}
0x1041   :  { %s4072_s14 = scalar_lea.hbm %s6152_s28, 32 }
0x1042   :  { %p4073_p5 = scmp.ne.s32.totalorder %s6152_s28, %s4072_s14  ;;  %p4076_p6 = scmp.lt.u32.totalorder %s4072_s14, %s6152_s28 }
0x1044   :  { %p4078_p7 = pnand %p4076_p6, %p4073_p5 }
0x1046   :  { %4081 = shalt.err (!%p4078_p7)
}
0x1047   :  { %3000 = dma.vmem_to_hbm [thread:$0]  %s2998_s27, 32, %s6152_s28, [#allocation3]  }
0x1048   :  { %4082 = dma.done.wait [#allocation3], 32  }
0x1049   :  { %4083 = vsyncadd [#allocation3], 4294967264 }
0x104a   :  { %3004 = vsyncpa [#allocation3], 1 }

</bundles_post_ra>
